<compile_context>
chip_gen: v6e
topology: v6e:2x2x1
jax: 0.10.0
libtpu: 0.0.40
codegen_flags: <defaults>
</compile_context>

<pallas_src>
import functools

import jax
import jax.numpy as jnp
from jax.experimental import pallas as pl
from jax.experimental.pallas import tpu as pltpu

INPUT_DIM = 32
VOCAB_DIM = 64
HIDDEN = 64          # bert_hidden
N_HEADS = 2
HEAD_DIM = HIDDEN // N_HEADS
N_LAYERS = 2
INTER = HIDDEN * 2   # intermediate_size
LN_EPS = 1e-12       # BertConfig layer_norm_eps default


def _layer_norm(x, g, b):
    """Single-pass LayerNorm: var = E[x^2] - E[x]^2, clamped at 0."""
    mu = jnp.mean(x, axis=-1, keepdims=True)
    msq = jnp.mean(x * x, axis=-1, keepdims=True)
    var = jnp.maximum(msq - mu * mu, 0.0)
    return (x - mu) * jax.lax.rsqrt(var + LN_EPS) * g + b


def token_vector_bert_kernel(
    x_ref, tp_w, tp_b, emb, eln_g, eln_b,
    wqkv, bqkv, wo_h, bo, aln_g, aln_b,
    iw, ib, ow, ob, oln_g, oln_b,
    head_w, head_b,
    out_ref, *, batch, seq, use_bf16,
):
    rows = batch * seq

    if use_bf16:
        cast = lambda a: a.astype(jnp.bfloat16)   # MXU operands only
    else:
        cast = lambda a: a

    def mm(a, b):
        return jnp.dot(cast(a), cast(b), preferred_element_type=jnp.float32)

    x = x_ref[...]                                           # (rows, Din)

    # token_proj: Linear(input_dim -> vocab_dim)
    h = mm(x, tp_w[...]) + tp_b[...]

    # BertEmbeddings: broadcast-add (pos + token_type) table, then LayerNorm.
    h = (h.reshape(batch, seq, HIDDEN) + emb[...]).reshape(rows, HIDDEN)
    h = _layer_norm(h, eln_g[...], eln_b[...])

    scale = 1.0 / (HEAD_DIM ** 0.5)
    for l in range(N_LAYERS):
        # --- self-attention: fused QKV projection (one N=3*HIDDEN matmul) ---
        qkv = mm(h, wqkv[l]) + bqkv[l]                       # (rows, 3*HIDDEN)

        def head_major(base):
            # (rows, HIDDEN) slab -> (N_HEADS*batch, seq, HEAD_DIM) head-major
            # batch, using only lane slices, a leading-axis stack and
            # leading-dim reshapes (all layout-trivial on TPU).
            cols = [qkv[:, base + hd * HEAD_DIM: base + (hd + 1) * HEAD_DIM]
                    for hd in range(N_HEADS)]
            return jnp.stack(cols, axis=0).reshape(
                N_HEADS * batch, seq, HEAD_DIM)

        q = head_major(0)
        k = head_major(HIDDEN)
        v = head_major(2 * HIDDEN)

        # Head-batched attention: one batched contraction + ONE softmax pass
        # over the merged (heads*batch) batch dim.
        s = jnp.einsum("bqd,bkd->bqk", cast(q), cast(k),
                       preferred_element_type=jnp.float32) * scale
        s = s - jnp.max(s, axis=-1, keepdims=True)
        p = jnp.exp(s)
        p = p * pl.reciprocal(jnp.sum(p, axis=-1, keepdims=True), approx=True)
        ctx = jnp.einsum("bqk,bkd->bqd", cast(p), cast(v),
                         preferred_element_type=jnp.float32)
        ctx = ctx.reshape(N_HEADS, rows, HEAD_DIM)

        # Head concat folded into the output projection:
        #   concat_h(ctx_h) @ Wo == sum_h ctx_h @ Wo[h]   (one batched einsum)
        parts = jnp.einsum("hrd,hdo->hro", cast(ctx), cast(wo_h[l]),
                           preferred_element_type=jnp.float32)
        attn = jnp.sum(parts, axis=0) + bo[l]
        h = _layer_norm(attn + h, aln_g[l], aln_b[l])

        # --- feed-forward: intermediate (tanh GELU -> EUP) + output ---
        ff = mm(h, iw[l]) + ib[l]
        ff = jax.nn.gelu(ff, approximate=True)
        ff = mm(ff, ow[l]) + ob[l]
        h = _layer_norm(ff + h, oln_g[l], oln_b[l])

    # Pre-composed mlm_head @ decoder_proj: single output projection.
    out_ref[...] = mm(h, head_w[...]) + head_b[...]


def token_vector_bert_forward(x, params, *, use_bf16_matmul=False):
    B, S, Din = x.shape
    rows = B * S

    # --- wrapper-side parameter fusion (runs once, outside the kernel) ---
    emb = params["pos"] + params["tt"]                                # (S, HIDDEN)
    wqkv = jnp.concatenate([params["wq"], params["wk"], params["wv"]], axis=-1)
    bqkv = jnp.concatenate([params["bq"], params["bk"], params["bv"]], axis=-1)
    wo_h = params["wo"].reshape(N_LAYERS, N_HEADS, HEAD_DIM, HIDDEN)
    # mlm_head and decoder_proj are linear-after-linear: pre-compose exactly.
    head_w = params["mlm_w"] @ params["dec_w"]                        # (HIDDEN, Din)
    head_b = params["mlm_b"] @ params["dec_w"] + params["dec_b"]      # (1, Din)

    param_list = [
        params["tp_w"], params["tp_b"], emb, params["eln_g"], params["eln_b"],
        wqkv, bqkv, wo_h, params["bo"], params["aln_g"], params["aln_b"],
        params["iw"], params["ib"], params["ow"], params["ob"],
        params["oln_g"], params["oln_b"], head_w, head_b,
    ]

    x2 = x.reshape(rows, Din)   # token slab: all tokens on the matmul M axis

    # Single grid step: everything is resident in VMEM; full-array blocks are
    # exempt from the (8,128) divisibility rule.
    in_specs = [pl.BlockSpec((rows, Din), lambda i: (0, 0))]
    for p in param_list:
        in_specs.append(
            pl.BlockSpec(p.shape, (lambda nd: (lambda i: (0,) * nd))(p.ndim)))
    out_spec = pl.BlockSpec((rows, Din), lambda i: (0, 0))

    # Advisory cost estimate for the XLA scheduler.
    tok = rows
    mm_flops_per_tok = (
        2 * Din * VOCAB_DIM
        + N_LAYERS * (2 * HIDDEN * 3 * HIDDEN            # fused QKV
                      + 2 * 2 * N_HEADS * S * HEAD_DIM   # scores + weighted sum
                      + 2 * HIDDEN * HIDDEN              # attention output proj
                      + 2 * HIDDEN * INTER               # FFN in
                      + 2 * INTER * HIDDEN)              # FFN out
        + 2 * HIDDEN * Din)                              # fused mlm+decoder head
    flops = tok * mm_flops_per_tok
    transcendentals = tok * N_LAYERS * (N_HEADS * S + INTER + 6)
    bytes_accessed = 4 * (2 * tok * Din + sum(int(p.size) for p in param_list))

    out2 = pl.pallas_call(
        functools.partial(token_vector_bert_kernel, batch=B, seq=S,
                          use_bf16=use_bf16_matmul),
        out_shape=jax.ShapeDtypeStruct((rows, Din), jnp.float32),
        grid_spec=pltpu.PrefetchScalarGridSpec(
            num_scalar_prefetch=0,
            grid=(1,),
            in_specs=in_specs,
            out_specs=out_spec,
        ),
        compiler_params=pltpu.CompilerParams(
            dimension_semantics=("arbitrary",)),
        cost_estimate=pl.CostEstimate(
            flops=int(flops),
            transcendentals=int(transcendentals),
            bytes_accessed=int(bytes_accessed),
        ),
    )(x2, *param_list)
    return out2.reshape(B, S, Din)


def init_params(key, input_dim=INPUT_DIM, seq_len=8):
    keys = iter(jax.random.split(key, 64))
    nrm = lambda shape, s=0.02: jax.random.normal(next(keys), shape, jnp.float32) * s
    return dict(
        # token_proj
        tp_w=nrm((input_dim, VOCAB_DIM)),
        tp_b=nrm((1, VOCAB_DIM)),
        # embeddings (position emb sliced to seq_len, token_type row 0)
        pos=nrm((seq_len, HIDDEN)),
        tt=nrm((1, HIDDEN)),
        eln_g=jnp.ones((1, HIDDEN), jnp.float32),
        eln_b=jnp.zeros((1, HIDDEN), jnp.float32),
        # per-layer attention
        wq=nrm((N_LAYERS, HIDDEN, HIDDEN)),
        bq=nrm((N_LAYERS, 1, HIDDEN)),
        wk=nrm((N_LAYERS, HIDDEN, HIDDEN)),
        bk=nrm((N_LAYERS, 1, HIDDEN)),
        wv=nrm((N_LAYERS, HIDDEN, HIDDEN)),
        bv=nrm((N_LAYERS, 1, HIDDEN)),
        wo=nrm((N_LAYERS, HIDDEN, HIDDEN)),
        bo=nrm((N_LAYERS, 1, HIDDEN)),
        aln_g=jnp.ones((N_LAYERS, 1, HIDDEN), jnp.float32),
        aln_b=jnp.zeros((N_LAYERS, 1, HIDDEN), jnp.float32),
        # per-layer feed-forward
        iw=nrm((N_LAYERS, HIDDEN, INTER)),
        ib=nrm((N_LAYERS, 1, INTER)),
        ow=nrm((N_LAYERS, INTER, HIDDEN)),
        ob=nrm((N_LAYERS, 1, HIDDEN)),
        oln_g=jnp.ones((N_LAYERS, 1, HIDDEN), jnp.float32),
        oln_b=jnp.zeros((N_LAYERS, 1, HIDDEN), jnp.float32),
        # heads
        mlm_w=nrm((HIDDEN, VOCAB_DIM)),
        mlm_b=nrm((1, VOCAB_DIM)),
        dec_w=nrm((VOCAB_DIM, input_dim)),
        dec_b=nrm((1, input_dim)),
    )


def ref_forward(x, p):
    """Pure-JAX reference with the PyTorch module's semantics (erf GELU,
    exact softmax divide, un-fused head projections) for verification."""
    def ln(h, g, b):
        mu = h.mean(-1, keepdims=True)
        var = ((h - mu) ** 2).mean(-1, keepdims=True)
        return (h - mu) / jnp.sqrt(var + LN_EPS) * g + b

    h = x @ p["tp_w"] + p["tp_b"]
    h = h + p["pos"][None] + p["tt"][None]
    h = ln(h, p["eln_g"], p["eln_b"])
    B, S, _ = h.shape
    for l in range(N_LAYERS):
        q = h @ p["wq"][l] + p["bq"][l]
        k = h @ p["wk"][l] + p["bk"][l]
        v = h @ p["wv"][l] + p["bv"][l]
        qh = q.reshape(B, S, N_HEADS, HEAD_DIM).transpose(0, 2, 1, 3)
        kh = k.reshape(B, S, N_HEADS, HEAD_DIM).transpose(0, 2, 1, 3)
        vh = v.reshape(B, S, N_HEADS, HEAD_DIM).transpose(0, 2, 1, 3)
        s = jnp.einsum("bhqd,bhkd->bhqk", qh, kh) / jnp.sqrt(float(HEAD_DIM))
        a = jax.nn.softmax(s, axis=-1)
        ctx = jnp.einsum("bhqk,bhkd->bhqd", a, vh).transpose(0, 2, 1, 3)
        ctx = ctx.reshape(B, S, HIDDEN)
        attn_out = ctx @ p["wo"][l] + p["bo"][l]
        h = ln(attn_out + h, p["aln_g"][l], p["aln_b"][l])
        ff = jax.nn.gelu(h @ p["iw"][l] + p["ib"][l], approximate=False)
        ff = ff @ p["ow"][l] + p["ob"][l]
        h = ln(ff + h, p["oln_g"][l], p["oln_b"][l])
    logits = h @ p["mlm_w"] + p["mlm_b"]
    return logits @ p["dec_w"] + p["dec_b"]


if __name__ == "__main__":
    B, S = 8, 8   # 64 tokens: small, single-grid-step, all-resident workload
    key = jax.random.PRNGKey(0)
    kx, kp = jax.random.split(key)
    x = jax.random.normal(kx, (B, S, INPUT_DIM), jnp.float32)
    params = init_params(kp, INPUT_DIM, S)

    out = jax.block_until_ready(token_vector_bert_forward(x, params))
    ref = ref_forward(x, params)

    assert out.shape == (B, S, INPUT_DIM), out.shape
    assert jnp.allclose(out, ref, rtol=2e-3, atol=2e-3), (
        "mismatch vs reference; max abs err = %f"
        % float(jnp.max(jnp.abs(out - ref))))
    print("KERNEL_OK")
</pallas_src>

<mosaic_0001>
module attributes {stable_mosaic.version = 11 : i64} {
  func.func @token_vector_bert_kernel(%arg0: i32, %arg1: memref<64x32xf32, #tpu.memory_space<vmem>>, %arg2: memref<32x64xf32, #tpu.memory_space<vmem>>, %arg3: memref<1x64xf32, #tpu.memory_space<vmem>>, %arg4: memref<8x64xf32, #tpu.memory_space<vmem>>, %arg5: memref<1x64xf32, #tpu.memory_space<vmem>>, %arg6: memref<1x64xf32, #tpu.memory_space<vmem>>, %arg7: memref<2x64x192xf32, #tpu.memory_space<vmem>>, %arg8: memref<2x1x192xf32, #tpu.memory_space<vmem>>, %arg9: memref<2x2x32x64xf32, #tpu.memory_space<vmem>>, %arg10: memref<2x1x64xf32, #tpu.memory_space<vmem>>, %arg11: memref<2x1x64xf32, #tpu.memory_space<vmem>>, %arg12: memref<2x1x64xf32, #tpu.memory_space<vmem>>, %arg13: memref<2x64x128xf32, #tpu.memory_space<vmem>>, %arg14: memref<2x1x128xf32, #tpu.memory_space<vmem>>, %arg15: memref<2x128x64xf32, #tpu.memory_space<vmem>>, %arg16: memref<2x1x64xf32, #tpu.memory_space<vmem>>, %arg17: memref<2x1x64xf32, #tpu.memory_space<vmem>>, %arg18: memref<2x1x64xf32, #tpu.memory_space<vmem>>, %arg19: memref<64x32xf32, #tpu.memory_space<vmem>>, %arg20: memref<1x32xf32, #tpu.memory_space<vmem>>, %arg21: memref<64x32xf32, #tpu.memory_space<vmem>>) attributes {dimension_semantics = [#tpu.dimension_semantics<arbitrary>], iteration_bounds = array<i64: 1>, scalar_prefetch = 0 : i64, scratch_operands = 0 : i64, tpu.core_type = #tpu.core_type<tc>, window_params = [{pipeline_mode = #tpu.pipeline_mode<synchronous>, transform_indices = @transform_0, window_bounds = array<i64: 64, 32>}, {pipeline_mode = #tpu.pipeline_mode<synchronous>, transform_indices = @transform_1, window_bounds = array<i64: 32, 64>}, {pipeline_mode = #tpu.pipeline_mode<synchronous>, transform_indices = @transform_2, window_bounds = array<i64: 1, 64>}, {pipeline_mode = #tpu.pipeline_mode<synchronous>, transform_indices = @transform_3, window_bounds = array<i64: 8, 64>}, {pipeline_mode = #tpu.pipeline_mode<synchronous>, transform_indices = @transform_4, window_bounds = array<i64: 1, 64>}, {pipeline_mode = #tpu.pipeline_mode<synchronous>, transform_indices = @transform_5, window_bounds = array<i64: 1, 64>}, {pipeline_mode = #tpu.pipeline_mode<synchronous>, transform_indices = @transform_6, window_bounds = array<i64: 2, 64, 192>}, {pipeline_mode = #tpu.pipeline_mode<synchronous>, transform_indices = @transform_7, window_bounds = array<i64: 2, 1, 192>}, {pipeline_mode = #tpu.pipeline_mode<synchronous>, transform_indices = @transform_8, window_bounds = array<i64: 2, 2, 32, 64>}, {pipeline_mode = #tpu.pipeline_mode<synchronous>, transform_indices = @transform_9, window_bounds = array<i64: 2, 1, 64>}, {pipeline_mode = #tpu.pipeline_mode<synchronous>, transform_indices = @transform_10, window_bounds = array<i64: 2, 1, 64>}, {pipeline_mode = #tpu.pipeline_mode<synchronous>, transform_indices = @transform_11, window_bounds = array<i64: 2, 1, 64>}, {pipeline_mode = #tpu.pipeline_mode<synchronous>, transform_indices = @transform_12, window_bounds = array<i64: 2, 64, 128>}, {pipeline_mode = #tpu.pipeline_mode<synchronous>, transform_indices = @transform_13, window_bounds = array<i64: 2, 1, 128>}, {pipeline_mode = #tpu.pipeline_mode<synchronous>, transform_indices = @transform_14, window_bounds = array<i64: 2, 128, 64>}, {pipeline_mode = #tpu.pipeline_mode<synchronous>, transform_indices = @transform_15, window_bounds = array<i64: 2, 1, 64>}, {pipeline_mode = #tpu.pipeline_mode<synchronous>, transform_indices = @transform_16, window_bounds = array<i64: 2, 1, 64>}, {pipeline_mode = #tpu.pipeline_mode<synchronous>, transform_indices = @transform_17, window_bounds = array<i64: 2, 1, 64>}, {pipeline_mode = #tpu.pipeline_mode<synchronous>, transform_indices = @transform_18, window_bounds = array<i64: 64, 32>}, {pipeline_mode = #tpu.pipeline_mode<synchronous>, transform_indices = @transform_19, window_bounds = array<i64: 1, 32>}, {pipeline_mode = #tpu.pipeline_mode<synchronous>, transform_indices = @transform_20, window_bounds = array<i64: 64, 32>}]} {
    %c0 = arith.constant 0 : index
    %c0_0 = arith.constant 0 : index
    %0 = vector.load %arg1[%c0, %c0_0] : memref<64x32xf32, #tpu.memory_space<vmem>>, vector<64x32xf32>
    %c0_1 = arith.constant 0 : index
    %c0_2 = arith.constant 0 : index
    %1 = vector.load %arg2[%c0_1, %c0_2] : memref<32x64xf32, #tpu.memory_space<vmem>>, vector<32x64xf32>
    %cst = arith.constant dense<0.000000e+00> : vector<64x64xf32>
    %2 = tpu.matmul %0, %1, %cst {dimension_numbers = #tpu.dot_dimension_numbers<[1], [0], [0], [1], [0, 0, 1, 1], [], []>} : vector<64x32xf32>, vector<32x64xf32>, vector<64x64xf32> -> vector<64x64xf32>
    %c0_3 = arith.constant 0 : index
    %c0_4 = arith.constant 0 : index
    %3 = vector.load %arg3[%c0_3, %c0_4] : memref<1x64xf32, #tpu.memory_space<vmem>>, vector<1x64xf32>
    %4 = vector.broadcast %3 : vector<1x64xf32> to vector<64x64xf32>
    %5 = arith.addf %2, %4 : vector<64x64xf32>
    %6 = vector.shape_cast %5 : vector<64x64xf32> to vector<8x8x64xf32>
    %c0_5 = arith.constant 0 : index
    %c0_6 = arith.constant 0 : index
    %7 = vector.load %arg4[%c0_5, %c0_6] : memref<8x64xf32, #tpu.memory_space<vmem>>, vector<8x64xf32>
    %8 = vector.shape_cast %7 : vector<8x64xf32> to vector<1x8x64xf32>
    %9 = vector.broadcast %8 : vector<1x8x64xf32> to vector<8x8x64xf32>
    %10 = arith.addf %6, %9 : vector<8x8x64xf32>
    %11 = vector.shape_cast %10 : vector<8x8x64xf32> to vector<64x64xf32>
    %c0_7 = arith.constant 0 : index
    %c0_8 = arith.constant 0 : index
    %12 = vector.load %arg5[%c0_7, %c0_8] : memref<1x64xf32, #tpu.memory_space<vmem>>, vector<1x64xf32>
    %c0_9 = arith.constant 0 : index
    %c0_10 = arith.constant 0 : index
    %13 = vector.load %arg6[%c0_9, %c0_10] : memref<1x64xf32, #tpu.memory_space<vmem>>, vector<1x64xf32>
    %cst_11 = arith.constant dense<0.000000e+00> : vector<64xf32>
    %14 = vector.multi_reduction <add>, %11, %cst_11 [1] : vector<64x64xf32> to vector<64xf32>
    %15 = vector.shape_cast %14 : vector<64xf32> to vector<64x1xf32>
    %cst_12 = arith.constant 6.400000e+01 : f32
    %16 = vector.broadcast %cst_12 : f32 to vector<64x1xf32>
    %17 = arith.divf %15, %16 : vector<64x1xf32>
    %18 = arith.mulf %11, %11 : vector<64x64xf32>
    %cst_13 = arith.constant dense<0.000000e+00> : vector<64xf32>
    %19 = vector.multi_reduction <add>, %18, %cst_13 [1] : vector<64x64xf32> to vector<64xf32>
    %20 = vector.shape_cast %19 : vector<64xf32> to vector<64x1xf32>
    %cst_14 = arith.constant 6.400000e+01 : f32
    %21 = vector.broadcast %cst_14 : f32 to vector<64x1xf32>
    %22 = arith.divf %20, %21 : vector<64x1xf32>
    %23 = arith.mulf %17, %17 : vector<64x1xf32>
    %24 = arith.subf %22, %23 : vector<64x1xf32>
    %cst_15 = arith.constant 0.000000e+00 : f32
    %25 = vector.broadcast %cst_15 : f32 to vector<64x1xf32>
    %26 = arith.maximumf %24, %25 : vector<64x1xf32>
    %27 = vector.broadcast %17 : vector<64x1xf32> to vector<64x64xf32>
    %28 = arith.subf %11, %27 : vector<64x64xf32>
    %cst_16 = arith.constant 9.99999996E-13 : f32
    %29 = vector.broadcast %cst_16 : f32 to vector<64x1xf32>
    %30 = arith.addf %26, %29 : vector<64x1xf32>
    %31 = math.rsqrt %30 : vector<64x1xf32>
    %32 = vector.broadcast %31 : vector<64x1xf32> to vector<64x64xf32>
    %33 = arith.mulf %28, %32 : vector<64x64xf32>
    %34 = vector.broadcast %12 : vector<1x64xf32> to vector<64x64xf32>
    %35 = arith.mulf %33, %34 : vector<64x64xf32>
    %36 = vector.broadcast %13 : vector<1x64xf32> to vector<64x64xf32>
    %37 = arith.addf %35, %36 : vector<64x64xf32>
    %c0_17 = arith.constant 0 : index
    %c0_18 = arith.constant 0 : index
    %c0_19 = arith.constant 0 : index
    %38 = vector.load %arg7[%c0_17, %c0_18, %c0_19] : memref<2x64x192xf32, #tpu.memory_space<vmem>>, vector<1x64x192xf32>
    %39 = vector.shape_cast %38 : vector<1x64x192xf32> to vector<64x192xf32>
    %cst_20 = arith.constant dense<0.000000e+00> : vector<64x192xf32>
    %40 = tpu.matmul %37, %39, %cst_20 {dimension_numbers = #tpu.dot_dimension_numbers<[1], [0], [0], [1], [0, 0, 1, 1], [], []>} : vector<64x64xf32>, vector<64x192xf32>, vector<64x192xf32> -> vector<64x192xf32>
    %c0_21 = arith.constant 0 : index
    %c0_22 = arith.constant 0 : index
    %c0_23 = arith.constant 0 : index
    %41 = vector.load %arg8[%c0_21, %c0_22, %c0_23] : memref<2x1x192xf32, #tpu.memory_space<vmem>>, vector<1x1x192xf32>
    %42 = vector.shape_cast %41 : vector<1x1x192xf32> to vector<1x192xf32>
    %43 = vector.broadcast %42 : vector<1x192xf32> to vector<64x192xf32>
    %44 = arith.addf %40, %43 : vector<64x192xf32>
    %45 = vector.extract_strided_slice %44 {offsets = [0, 0], sizes = [64, 32], strides = [1, 1]} : vector<64x192xf32> to vector<64x32xf32>
    %46 = vector.extract_strided_slice %44 {offsets = [0, 32], sizes = [64, 32], strides = [1, 1]} : vector<64x192xf32> to vector<64x32xf32>
    %47 = vector.shape_cast %45 : vector<64x32xf32> to vector<1x64x32xf32>
    %48 = vector.shape_cast %46 : vector<64x32xf32> to vector<1x64x32xf32>
    %49 = tpu.concatenate %47, %48 in 0 : vector<1x64x32xf32>, vector<1x64x32xf32> -> vector<2x64x32xf32>
    %50 = vector.shape_cast %49 : vector<2x64x32xf32> to vector<16x8x32xf32>
    %51 = vector.extract_strided_slice %44 {offsets = [0, 64], sizes = [64, 32], strides = [1, 1]} : vector<64x192xf32> to vector<64x32xf32>
    %52 = vector.extract_strided_slice %44 {offsets = [0, 96], sizes = [64, 32], strides = [1, 1]} : vector<64x192xf32> to vector<64x32xf32>
    %53 = vector.shape_cast %51 : vector<64x32xf32> to vector<1x64x32xf32>
    %54 = vector.shape_cast %52 : vector<64x32xf32> to vector<1x64x32xf32>
    %55 = tpu.concatenate %53, %54 in 0 : vector<1x64x32xf32>, vector<1x64x32xf32> -> vector<2x64x32xf32>
    %56 = vector.shape_cast %55 : vector<2x64x32xf32> to vector<16x8x32xf32>
    %57 = vector.extract_strided_slice %44 {offsets = [0, 128], sizes = [64, 32], strides = [1, 1]} : vector<64x192xf32> to vector<64x32xf32>
    %58 = vector.extract_strided_slice %44 {offsets = [0, 160], sizes = [64, 32], strides = [1, 1]} : vector<64x192xf32> to vector<64x32xf32>
    %59 = vector.shape_cast %57 : vector<64x32xf32> to vector<1x64x32xf32>
    %60 = vector.shape_cast %58 : vector<64x32xf32> to vector<1x64x32xf32>
    %61 = tpu.concatenate %59, %60 in 0 : vector<1x64x32xf32>, vector<1x64x32xf32> -> vector<2x64x32xf32>
    %62 = vector.shape_cast %61 : vector<2x64x32xf32> to vector<16x8x32xf32>
    "tpu.trace_start"() <{level = 10 : i32, message = "bqd,bkd->bqk"}> : () -> ()
    %cst_24 = arith.constant dense<0.000000e+00> : vector<16x8x8xf32>
    %63 = tpu.matmul %50, %56, %cst_24 {dimension_numbers = #tpu.dot_dimension_numbers<[2], [2], [1], [1], [0, 0, 0, 1, 1, 1], [0], [0]>} : vector<16x8x32xf32>, vector<16x8x32xf32>, vector<16x8x8xf32> -> vector<16x8x8xf32>
    "tpu.trace_stop"() : () -> ()
    %cst_25 = arith.constant 0.176776692 : f32
    %64 = vector.broadcast %cst_25 : f32 to vector<16x8x8xf32>
    %65 = arith.mulf %63, %64 : vector<16x8x8xf32>
    %cst_26 = arith.constant dense<0xFF800000> : vector<16x8xf32>
    %66 = vector.multi_reduction <maximumf>, %65, %cst_26 [2] : vector<16x8x8xf32> to vector<16x8xf32>
    %67 = vector.shape_cast %66 : vector<16x8xf32> to vector<16x8x1xf32>
    %68 = vector.broadcast %67 : vector<16x8x1xf32> to vector<16x8x8xf32>
    %69 = arith.subf %65, %68 : vector<16x8x8xf32>
    %70 = math.exp %69 : vector<16x8x8xf32>
    %cst_27 = arith.constant dense<0.000000e+00> : vector<16x8xf32>
    %71 = vector.multi_reduction <add>, %70, %cst_27 [2] : vector<16x8x8xf32> to vector<16x8xf32>
    %72 = vector.shape_cast %71 : vector<16x8xf32> to vector<16x8x1xf32>
    %73 = tpu.reciprocal %72 {approx = true} : vector<16x8x1xf32> -> vector<16x8x1xf32>
    %74 = vector.broadcast %73 : vector<16x8x1xf32> to vector<16x8x8xf32>
    %75 = arith.mulf %70, %74 : vector<16x8x8xf32>
    "tpu.trace_start"() <{level = 10 : i32, message = "bqk,bkd->bqd"}> : () -> ()
    %cst_28 = arith.constant dense<0.000000e+00> : vector<16x8x32xf32>
    %76 = tpu.matmul %75, %62, %cst_28 {dimension_numbers = #tpu.dot_dimension_numbers<[2], [1], [1], [2], [0, 0, 0, 1, 1, 2], [0], [0]>} : vector<16x8x8xf32>, vector<16x8x32xf32>, vector<16x8x32xf32> -> vector<16x8x32xf32>
    "tpu.trace_stop"() : () -> ()
    %77 = vector.shape_cast %76 : vector<16x8x32xf32> to vector<2x64x32xf32>
    %c0_29 = arith.constant 0 : index
    %c0_30 = arith.constant 0 : index
    %c0_31 = arith.constant 0 : index
    %c0_32 = arith.constant 0 : index
    %78 = vector.load %arg9[%c0_29, %c0_30, %c0_31, %c0_32] : memref<2x2x32x64xf32, #tpu.memory_space<vmem>>, vector<1x2x32x64xf32>
    %79 = vector.shape_cast %78 : vector<1x2x32x64xf32> to vector<2x32x64xf32>
    "tpu.trace_start"() <{level = 10 : i32, message = "hrd,hdo->hro"}> : () -> ()
    %cst_33 = arith.constant dense<0.000000e+00> : vector<2x64x64xf32>
    %80 = tpu.matmul %77, %79, %cst_33 {dimension_numbers = #tpu.dot_dimension_numbers<[2], [1], [1], [2], [0, 0, 0, 1, 1, 2], [0], [0]>} : vector<2x64x32xf32>, vector<2x32x64xf32>, vector<2x64x64xf32> -> vector<2x64x64xf32>
    "tpu.trace_stop"() : () -> ()
    %cst_34 = arith.constant dense<0.000000e+00> : vector<64x64xf32>
    %81 = vector.multi_reduction <add>, %80, %cst_34 [0] : vector<2x64x64xf32> to vector<64x64xf32>
    %c0_35 = arith.constant 0 : index
    %c0_36 = arith.constant 0 : index
    %c0_37 = arith.constant 0 : index
    %82 = vector.load %arg10[%c0_35, %c0_36, %c0_37] : memref<2x1x64xf32, #tpu.memory_space<vmem>>, vector<1x1x64xf32>
    %83 = vector.shape_cast %82 : vector<1x1x64xf32> to vector<1x64xf32>
    %84 = vector.broadcast %83 : vector<1x64xf32> to vector<64x64xf32>
    %85 = arith.addf %81, %84 : vector<64x64xf32>
    %86 = arith.addf %85, %37 : vector<64x64xf32>
    %c0_38 = arith.constant 0 : index
    %c0_39 = arith.constant 0 : index
    %c0_40 = arith.constant 0 : index
    %87 = vector.load %arg11[%c0_38, %c0_39, %c0_40] : memref<2x1x64xf32, #tpu.memory_space<vmem>>, vector<1x1x64xf32>
    %88 = vector.shape_cast %87 : vector<1x1x64xf32> to vector<1x64xf32>
    %c0_41 = arith.constant 0 : index
    %c0_42 = arith.constant 0 : index
    %c0_43 = arith.constant 0 : index
    %89 = vector.load %arg12[%c0_41, %c0_42, %c0_43] : memref<2x1x64xf32, #tpu.memory_space<vmem>>, vector<1x1x64xf32>
    %90 = vector.shape_cast %89 : vector<1x1x64xf32> to vector<1x64xf32>
    %cst_44 = arith.constant dense<0.000000e+00> : vector<64xf32>
    %91 = vector.multi_reduction <add>, %86, %cst_44 [1] : vector<64x64xf32> to vector<64xf32>
    %92 = vector.shape_cast %91 : vector<64xf32> to vector<64x1xf32>
    %cst_45 = arith.constant 6.400000e+01 : f32
    %93 = vector.broadcast %cst_45 : f32 to vector<64x1xf32>
    %94 = arith.divf %92, %93 : vector<64x1xf32>
    %95 = arith.mulf %86, %86 : vector<64x64xf32>
    %cst_46 = arith.constant dense<0.000000e+00> : vector<64xf32>
    %96 = vector.multi_reduction <add>, %95, %cst_46 [1] : vector<64x64xf32> to vector<64xf32>
    %97 = vector.shape_cast %96 : vector<64xf32> to vector<64x1xf32>
    %cst_47 = arith.constant 6.400000e+01 : f32
    %98 = vector.broadcast %cst_47 : f32 to vector<64x1xf32>
    %99 = arith.divf %97, %98 : vector<64x1xf32>
    %100 = arith.mulf %94, %94 : vector<64x1xf32>
    %101 = arith.subf %99, %100 : vector<64x1xf32>
    %cst_48 = arith.constant 0.000000e+00 : f32
    %102 = vector.broadcast %cst_48 : f32 to vector<64x1xf32>
    %103 = arith.maximumf %101, %102 : vector<64x1xf32>
    %104 = vector.broadcast %94 : vector<64x1xf32> to vector<64x64xf32>
    %105 = arith.subf %86, %104 : vector<64x64xf32>
    %cst_49 = arith.constant 9.99999996E-13 : f32
    %106 = vector.broadcast %cst_49 : f32 to vector<64x1xf32>
    %107 = arith.addf %103, %106 : vector<64x1xf32>
    %108 = math.rsqrt %107 : vector<64x1xf32>
    %109 = vector.broadcast %108 : vector<64x1xf32> to vector<64x64xf32>
    %110 = arith.mulf %105, %109 : vector<64x64xf32>
    %111 = vector.broadcast %88 : vector<1x64xf32> to vector<64x64xf32>
    %112 = arith.mulf %110, %111 : vector<64x64xf32>
    %113 = vector.broadcast %90 : vector<1x64xf32> to vector<64x64xf32>
    %114 = arith.addf %112, %113 : vector<64x64xf32>
    %c0_50 = arith.constant 0 : index
    %c0_51 = arith.constant 0 : index
    %c0_52 = arith.constant 0 : index
    %115 = vector.load %arg13[%c0_50, %c0_51, %c0_52] : memref<2x64x128xf32, #tpu.memory_space<vmem>>, vector<1x64x128xf32>
    %116 = vector.shape_cast %115 : vector<1x64x128xf32> to vector<64x128xf32>
    %cst_53 = arith.constant dense<0.000000e+00> : vector<64x128xf32>
    %117 = tpu.matmul %114, %116, %cst_53 {dimension_numbers = #tpu.dot_dimension_numbers<[1], [0], [0], [1], [0, 0, 1, 1], [], []>} : vector<64x64xf32>, vector<64x128xf32>, vector<64x128xf32> -> vector<64x128xf32>
    %c0_54 = arith.constant 0 : index
    %c0_55 = arith.constant 0 : index
    %c0_56 = arith.constant 0 : index
    %118 = vector.load %arg14[%c0_54, %c0_55, %c0_56] : memref<2x1x128xf32, #tpu.memory_space<vmem>>, vector<1x1x128xf32>
    %119 = vector.shape_cast %118 : vector<1x1x128xf32> to vector<1x128xf32>
    %120 = vector.broadcast %119 : vector<1x128xf32> to vector<64x128xf32>
    %121 = arith.addf %117, %120 : vector<64x128xf32>
    %122 = arith.mulf %121, %121 : vector<64x128xf32>
    %123 = arith.mulf %121, %122 : vector<64x128xf32>
    %cst_57 = arith.constant 4.471500e-02 : f32
    %124 = vector.broadcast %cst_57 : f32 to vector<64x128xf32>
    %125 = arith.mulf %124, %123 : vector<64x128xf32>
    %126 = arith.addf %121, %125 : vector<64x128xf32>
    %cst_58 = arith.constant 0.797884583 : f32
    %127 = vector.broadcast %cst_58 : f32 to vector<64x128xf32>
    %128 = arith.mulf %127, %126 : vector<64x128xf32>
    %129 = math.tanh %128 : vector<64x128xf32>
    %cst_59 = arith.constant 1.000000e+00 : f32
    %130 = vector.broadcast %cst_59 : f32 to vector<64x128xf32>
    %131 = arith.addf %130, %129 : vector<64x128xf32>
    %cst_60 = arith.constant 5.000000e-01 : f32
    %132 = vector.broadcast %cst_60 : f32 to vector<64x128xf32>
    %133 = arith.mulf %132, %131 : vector<64x128xf32>
    %134 = arith.mulf %121, %133 : vector<64x128xf32>
    %c0_61 = arith.constant 0 : index
    %c0_62 = arith.constant 0 : index
    %c0_63 = arith.constant 0 : index
    %135 = vector.load %arg15[%c0_61, %c0_62, %c0_63] : memref<2x128x64xf32, #tpu.memory_space<vmem>>, vector<1x128x64xf32>
    %136 = vector.shape_cast %135 : vector<1x128x64xf32> to vector<128x64xf32>
    %cst_64 = arith.constant dense<0.000000e+00> : vector<64x64xf32>
    %137 = tpu.matmul %134, %136, %cst_64 {dimension_numbers = #tpu.dot_dimension_numbers<[1], [0], [0], [1], [0, 0, 1, 1], [], []>} : vector<64x128xf32>, vector<128x64xf32>, vector<64x64xf32> -> vector<64x64xf32>
    %c0_65 = arith.constant 0 : index
    %c0_66 = arith.constant 0 : index
    %c0_67 = arith.constant 0 : index
    %138 = vector.load %arg16[%c0_65, %c0_66, %c0_67] : memref<2x1x64xf32, #tpu.memory_space<vmem>>, vector<1x1x64xf32>
    %139 = vector.shape_cast %138 : vector<1x1x64xf32> to vector<1x64xf32>
    %140 = vector.broadcast %139 : vector<1x64xf32> to vector<64x64xf32>
    %141 = arith.addf %137, %140 : vector<64x64xf32>
    %142 = arith.addf %141, %114 : vector<64x64xf32>
    %c0_68 = arith.constant 0 : index
    %c0_69 = arith.constant 0 : index
    %c0_70 = arith.constant 0 : index
    %143 = vector.load %arg17[%c0_68, %c0_69, %c0_70] : memref<2x1x64xf32, #tpu.memory_space<vmem>>, vector<1x1x64xf32>
    %144 = vector.shape_cast %143 : vector<1x1x64xf32> to vector<1x64xf32>
    %c0_71 = arith.constant 0 : index
    %c0_72 = arith.constant 0 : index
    %c0_73 = arith.constant 0 : index
    %145 = vector.load %arg18[%c0_71, %c0_72, %c0_73] : memref<2x1x64xf32, #tpu.memory_space<vmem>>, vector<1x1x64xf32>
    %146 = vector.shape_cast %145 : vector<1x1x64xf32> to vector<1x64xf32>
    %cst_74 = arith.constant dense<0.000000e+00> : vector<64xf32>
    %147 = vector.multi_reduction <add>, %142, %cst_74 [1] : vector<64x64xf32> to vector<64xf32>
    %148 = vector.shape_cast %147 : vector<64xf32> to vector<64x1xf32>
    %cst_75 = arith.constant 6.400000e+01 : f32
    %149 = vector.broadcast %cst_75 : f32 to vector<64x1xf32>
    %150 = arith.divf %148, %149 : vector<64x1xf32>
    %151 = arith.mulf %142, %142 : vector<64x64xf32>
    %cst_76 = arith.constant dense<0.000000e+00> : vector<64xf32>
    %152 = vector.multi_reduction <add>, %151, %cst_76 [1] : vector<64x64xf32> to vector<64xf32>
    %153 = vector.shape_cast %152 : vector<64xf32> to vector<64x1xf32>
    %cst_77 = arith.constant 6.400000e+01 : f32
    %154 = vector.broadcast %cst_77 : f32 to vector<64x1xf32>
    %155 = arith.divf %153, %154 : vector<64x1xf32>
    %156 = arith.mulf %150, %150 : vector<64x1xf32>
    %157 = arith.subf %155, %156 : vector<64x1xf32>
    %cst_78 = arith.constant 0.000000e+00 : f32
    %158 = vector.broadcast %cst_78 : f32 to vector<64x1xf32>
    %159 = arith.maximumf %157, %158 : vector<64x1xf32>
    %160 = vector.broadcast %150 : vector<64x1xf32> to vector<64x64xf32>
    %161 = arith.subf %142, %160 : vector<64x64xf32>
    %cst_79 = arith.constant 9.99999996E-13 : f32
    %162 = vector.broadcast %cst_79 : f32 to vector<64x1xf32>
    %163 = arith.addf %159, %162 : vector<64x1xf32>
    %164 = math.rsqrt %163 : vector<64x1xf32>
    %165 = vector.broadcast %164 : vector<64x1xf32> to vector<64x64xf32>
    %166 = arith.mulf %161, %165 : vector<64x64xf32>
    %167 = vector.broadcast %144 : vector<1x64xf32> to vector<64x64xf32>
    %168 = arith.mulf %166, %167 : vector<64x64xf32>
    %169 = vector.broadcast %146 : vector<1x64xf32> to vector<64x64xf32>
    %170 = arith.addf %168, %169 : vector<64x64xf32>
    %c1 = arith.constant 1 : index
    %c0_80 = arith.constant 0 : index
    %c0_81 = arith.constant 0 : index
    %171 = vector.load %arg7[%c1, %c0_80, %c0_81] : memref<2x64x192xf32, #tpu.memory_space<vmem>>, vector<1x64x192xf32>
    %172 = vector.shape_cast %171 : vector<1x64x192xf32> to vector<64x192xf32>
    %cst_82 = arith.constant dense<0.000000e+00> : vector<64x192xf32>
    %173 = tpu.matmul %170, %172, %cst_82 {dimension_numbers = #tpu.dot_dimension_numbers<[1], [0], [0], [1], [0, 0, 1, 1], [], []>} : vector<64x64xf32>, vector<64x192xf32>, vector<64x192xf32> -> vector<64x192xf32>
    %c1_83 = arith.constant 1 : index
    %c0_84 = arith.constant 0 : index
    %c0_85 = arith.constant 0 : index
    %174 = vector.load %arg8[%c1_83, %c0_84, %c0_85] : memref<2x1x192xf32, #tpu.memory_space<vmem>>, vector<1x1x192xf32>
    %175 = vector.shape_cast %174 : vector<1x1x192xf32> to vector<1x192xf32>
    %176 = vector.broadcast %175 : vector<1x192xf32> to vector<64x192xf32>
    %177 = arith.addf %173, %176 : vector<64x192xf32>
    %178 = vector.extract_strided_slice %177 {offsets = [0, 0], sizes = [64, 32], strides = [1, 1]} : vector<64x192xf32> to vector<64x32xf32>
    %179 = vector.extract_strided_slice %177 {offsets = [0, 32], sizes = [64, 32], strides = [1, 1]} : vector<64x192xf32> to vector<64x32xf32>
    %180 = vector.shape_cast %178 : vector<64x32xf32> to vector<1x64x32xf32>
    %181 = vector.shape_cast %179 : vector<64x32xf32> to vector<1x64x32xf32>
    %182 = tpu.concatenate %180, %181 in 0 : vector<1x64x32xf32>, vector<1x64x32xf32> -> vector<2x64x32xf32>
    %183 = vector.shape_cast %182 : vector<2x64x32xf32> to vector<16x8x32xf32>
    %184 = vector.extract_strided_slice %177 {offsets = [0, 64], sizes = [64, 32], strides = [1, 1]} : vector<64x192xf32> to vector<64x32xf32>
    %185 = vector.extract_strided_slice %177 {offsets = [0, 96], sizes = [64, 32], strides = [1, 1]} : vector<64x192xf32> to vector<64x32xf32>
    %186 = vector.shape_cast %184 : vector<64x32xf32> to vector<1x64x32xf32>
    %187 = vector.shape_cast %185 : vector<64x32xf32> to vector<1x64x32xf32>
    %188 = tpu.concatenate %186, %187 in 0 : vector<1x64x32xf32>, vector<1x64x32xf32> -> vector<2x64x32xf32>
    %189 = vector.shape_cast %188 : vector<2x64x32xf32> to vector<16x8x32xf32>
    %190 = vector.extract_strided_slice %177 {offsets = [0, 128], sizes = [64, 32], strides = [1, 1]} : vector<64x192xf32> to vector<64x32xf32>
    %191 = vector.extract_strided_slice %177 {offsets = [0, 160], sizes = [64, 32], strides = [1, 1]} : vector<64x192xf32> to vector<64x32xf32>
    %192 = vector.shape_cast %190 : vector<64x32xf32> to vector<1x64x32xf32>
    %193 = vector.shape_cast %191 : vector<64x32xf32> to vector<1x64x32xf32>
    %194 = tpu.concatenate %192, %193 in 0 : vector<1x64x32xf32>, vector<1x64x32xf32> -> vector<2x64x32xf32>
    %195 = vector.shape_cast %194 : vector<2x64x32xf32> to vector<16x8x32xf32>
    "tpu.trace_start"() <{level = 10 : i32, message = "bqd,bkd->bqk"}> : () -> ()
    %cst_86 = arith.constant dense<0.000000e+00> : vector<16x8x8xf32>
    %196 = tpu.matmul %183, %189, %cst_86 {dimension_numbers = #tpu.dot_dimension_numbers<[2], [2], [1], [1], [0, 0, 0, 1, 1, 1], [0], [0]>} : vector<16x8x32xf32>, vector<16x8x32xf32>, vector<16x8x8xf32> -> vector<16x8x8xf32>
    "tpu.trace_stop"() : () -> ()
    %cst_87 = arith.constant 0.176776692 : f32
    %197 = vector.broadcast %cst_87 : f32 to vector<16x8x8xf32>
    %198 = arith.mulf %196, %197 : vector<16x8x8xf32>
    %cst_88 = arith.constant dense<0xFF800000> : vector<16x8xf32>
    %199 = vector.multi_reduction <maximumf>, %198, %cst_88 [2] : vector<16x8x8xf32> to vector<16x8xf32>
    %200 = vector.shape_cast %199 : vector<16x8xf32> to vector<16x8x1xf32>
    %201 = vector.broadcast %200 : vector<16x8x1xf32> to vector<16x8x8xf32>
    %202 = arith.subf %198, %201 : vector<16x8x8xf32>
    %203 = math.exp %202 : vector<16x8x8xf32>
    %cst_89 = arith.constant dense<0.000000e+00> : vector<16x8xf32>
    %204 = vector.multi_reduction <add>, %203, %cst_89 [2] : vector<16x8x8xf32> to vector<16x8xf32>
    %205 = vector.shape_cast %204 : vector<16x8xf32> to vector<16x8x1xf32>
    %206 = tpu.reciprocal %205 {approx = true} : vector<16x8x1xf32> -> vector<16x8x1xf32>
    %207 = vector.broadcast %206 : vector<16x8x1xf32> to vector<16x8x8xf32>
    %208 = arith.mulf %203, %207 : vector<16x8x8xf32>
    "tpu.trace_start"() <{level = 10 : i32, message = "bqk,bkd->bqd"}> : () -> ()
    %cst_90 = arith.constant dense<0.000000e+00> : vector<16x8x32xf32>
    %209 = tpu.matmul %208, %195, %cst_90 {dimension_numbers = #tpu.dot_dimension_numbers<[2], [1], [1], [2], [0, 0, 0, 1, 1, 2], [0], [0]>} : vector<16x8x8xf32>, vector<16x8x32xf32>, vector<16x8x32xf32> -> vector<16x8x32xf32>
    "tpu.trace_stop"() : () -> ()
    %210 = vector.shape_cast %209 : vector<16x8x32xf32> to vector<2x64x32xf32>
    %c1_91 = arith.constant 1 : index
    %c0_92 = arith.constant 0 : index
    %c0_93 = arith.constant 0 : index
    %c0_94 = arith.constant 0 : index
    %211 = vector.load %arg9[%c1_91, %c0_92, %c0_93, %c0_94] : memref<2x2x32x64xf32, #tpu.memory_space<vmem>>, vector<1x2x32x64xf32>
    %212 = vector.shape_cast %211 : vector<1x2x32x64xf32> to vector<2x32x64xf32>
    "tpu.trace_start"() <{level = 10 : i32, message = "hrd,hdo->hro"}> : () -> ()
    %cst_95 = arith.constant dense<0.000000e+00> : vector<2x64x64xf32>
    %213 = tpu.matmul %210, %212, %cst_95 {dimension_numbers = #tpu.dot_dimension_numbers<[2], [1], [1], [2], [0, 0, 0, 1, 1, 2], [0], [0]>} : vector<2x64x32xf32>, vector<2x32x64xf32>, vector<2x64x64xf32> -> vector<2x64x64xf32>
    "tpu.trace_stop"() : () -> ()
    %cst_96 = arith.constant dense<0.000000e+00> : vector<64x64xf32>
    %214 = vector.multi_reduction <add>, %213, %cst_96 [0] : vector<2x64x64xf32> to vector<64x64xf32>
    %c1_97 = arith.constant 1 : index
    %c0_98 = arith.constant 0 : index
    %c0_99 = arith.constant 0 : index
    %215 = vector.load %arg10[%c1_97, %c0_98, %c0_99] : memref<2x1x64xf32, #tpu.memory_space<vmem>>, vector<1x1x64xf32>
    %216 = vector.shape_cast %215 : vector<1x1x64xf32> to vector<1x64xf32>
    %217 = vector.broadcast %216 : vector<1x64xf32> to vector<64x64xf32>
    %218 = arith.addf %214, %217 : vector<64x64xf32>
    %219 = arith.addf %218, %170 : vector<64x64xf32>
    %c1_100 = arith.constant 1 : index
    %c0_101 = arith.constant 0 : index
    %c0_102 = arith.constant 0 : index
    %220 = vector.load %arg11[%c1_100, %c0_101, %c0_102] : memref<2x1x64xf32, #tpu.memory_space<vmem>>, vector<1x1x64xf32>
    %221 = vector.shape_cast %220 : vector<1x1x64xf32> to vector<1x64xf32>
    %c1_103 = arith.constant 1 : index
    %c0_104 = arith.constant 0 : index
    %c0_105 = arith.constant 0 : index
    %222 = vector.load %arg12[%c1_103, %c0_104, %c0_105] : memref<2x1x64xf32, #tpu.memory_space<vmem>>, vector<1x1x64xf32>
    %223 = vector.shape_cast %222 : vector<1x1x64xf32> to vector<1x64xf32>
    %cst_106 = arith.constant dense<0.000000e+00> : vector<64xf32>
    %224 = vector.multi_reduction <add>, %219, %cst_106 [1] : vector<64x64xf32> to vector<64xf32>
    %225 = vector.shape_cast %224 : vector<64xf32> to vector<64x1xf32>
    %cst_107 = arith.constant 6.400000e+01 : f32
    %226 = vector.broadcast %cst_107 : f32 to vector<64x1xf32>
    %227 = arith.divf %225, %226 : vector<64x1xf32>
    %228 = arith.mulf %219, %219 : vector<64x64xf32>
    %cst_108 = arith.constant dense<0.000000e+00> : vector<64xf32>
    %229 = vector.multi_reduction <add>, %228, %cst_108 [1] : vector<64x64xf32> to vector<64xf32>
    %230 = vector.shape_cast %229 : vector<64xf32> to vector<64x1xf32>
    %cst_109 = arith.constant 6.400000e+01 : f32
    %231 = vector.broadcast %cst_109 : f32 to vector<64x1xf32>
    %232 = arith.divf %230, %231 : vector<64x1xf32>
    %233 = arith.mulf %227, %227 : vector<64x1xf32>
    %234 = arith.subf %232, %233 : vector<64x1xf32>
    %cst_110 = arith.constant 0.000000e+00 : f32
    %235 = vector.broadcast %cst_110 : f32 to vector<64x1xf32>
    %236 = arith.maximumf %234, %235 : vector<64x1xf32>
    %237 = vector.broadcast %227 : vector<64x1xf32> to vector<64x64xf32>
    %238 = arith.subf %219, %237 : vector<64x64xf32>
    %cst_111 = arith.constant 9.99999996E-13 : f32
    %239 = vector.broadcast %cst_111 : f32 to vector<64x1xf32>
    %240 = arith.addf %236, %239 : vector<64x1xf32>
    %241 = math.rsqrt %240 : vector<64x1xf32>
    %242 = vector.broadcast %241 : vector<64x1xf32> to vector<64x64xf32>
    %243 = arith.mulf %238, %242 : vector<64x64xf32>
    %244 = vector.broadcast %221 : vector<1x64xf32> to vector<64x64xf32>
    %245 = arith.mulf %243, %244 : vector<64x64xf32>
    %246 = vector.broadcast %223 : vector<1x64xf32> to vector<64x64xf32>
    %247 = arith.addf %245, %246 : vector<64x64xf32>
    %c1_112 = arith.constant 1 : index
    %c0_113 = arith.constant 0 : index
    %c0_114 = arith.constant 0 : index
    %248 = vector.load %arg13[%c1_112, %c0_113, %c0_114] : memref<2x64x128xf32, #tpu.memory_space<vmem>>, vector<1x64x128xf32>
    %249 = vector.shape_cast %248 : vector<1x64x128xf32> to vector<64x128xf32>
    %cst_115 = arith.constant dense<0.000000e+00> : vector<64x128xf32>
    %250 = tpu.matmul %247, %249, %cst_115 {dimension_numbers = #tpu.dot_dimension_numbers<[1], [0], [0], [1], [0, 0, 1, 1], [], []>} : vector<64x64xf32>, vector<64x128xf32>, vector<64x128xf32> -> vector<64x128xf32>
    %c1_116 = arith.constant 1 : index
    %c0_117 = arith.constant 0 : index
    %c0_118 = arith.constant 0 : index
    %251 = vector.load %arg14[%c1_116, %c0_117, %c0_118] : memref<2x1x128xf32, #tpu.memory_space<vmem>>, vector<1x1x128xf32>
    %252 = vector.shape_cast %251 : vector<1x1x128xf32> to vector<1x128xf32>
    %253 = vector.broadcast %252 : vector<1x128xf32> to vector<64x128xf32>
    %254 = arith.addf %250, %253 : vector<64x128xf32>
    %255 = arith.mulf %254, %254 : vector<64x128xf32>
    %256 = arith.mulf %254, %255 : vector<64x128xf32>
    %cst_119 = arith.constant 4.471500e-02 : f32
    %257 = vector.broadcast %cst_119 : f32 to vector<64x128xf32>
    %258 = arith.mulf %257, %256 : vector<64x128xf32>
    %259 = arith.addf %254, %258 : vector<64x128xf32>
    %cst_120 = arith.constant 0.797884583 : f32
    %260 = vector.broadcast %cst_120 : f32 to vector<64x128xf32>
    %261 = arith.mulf %260, %259 : vector<64x128xf32>
    %262 = math.tanh %261 : vector<64x128xf32>
    %cst_121 = arith.constant 1.000000e+00 : f32
    %263 = vector.broadcast %cst_121 : f32 to vector<64x128xf32>
    %264 = arith.addf %263, %262 : vector<64x128xf32>
    %cst_122 = arith.constant 5.000000e-01 : f32
    %265 = vector.broadcast %cst_122 : f32 to vector<64x128xf32>
    %266 = arith.mulf %265, %264 : vector<64x128xf32>
    %267 = arith.mulf %254, %266 : vector<64x128xf32>
    %c1_123 = arith.constant 1 : index
    %c0_124 = arith.constant 0 : index
    %c0_125 = arith.constant 0 : index
    %268 = vector.load %arg15[%c1_123, %c0_124, %c0_125] : memref<2x128x64xf32, #tpu.memory_space<vmem>>, vector<1x128x64xf32>
    %269 = vector.shape_cast %268 : vector<1x128x64xf32> to vector<128x64xf32>
    %cst_126 = arith.constant dense<0.000000e+00> : vector<64x64xf32>
    %270 = tpu.matmul %267, %269, %cst_126 {dimension_numbers = #tpu.dot_dimension_numbers<[1], [0], [0], [1], [0, 0, 1, 1], [], []>} : vector<64x128xf32>, vector<128x64xf32>, vector<64x64xf32> -> vector<64x64xf32>
    %c1_127 = arith.constant 1 : index
    %c0_128 = arith.constant 0 : index
    %c0_129 = arith.constant 0 : index
    %271 = vector.load %arg16[%c1_127, %c0_128, %c0_129] : memref<2x1x64xf32, #tpu.memory_space<vmem>>, vector<1x1x64xf32>
    %272 = vector.shape_cast %271 : vector<1x1x64xf32> to vector<1x64xf32>
    %273 = vector.broadcast %272 : vector<1x64xf32> to vector<64x64xf32>
    %274 = arith.addf %270, %273 : vector<64x64xf32>
    %275 = arith.addf %274, %247 : vector<64x64xf32>
    %c1_130 = arith.constant 1 : index
    %c0_131 = arith.constant 0 : index
    %c0_132 = arith.constant 0 : index
    %276 = vector.load %arg17[%c1_130, %c0_131, %c0_132] : memref<2x1x64xf32, #tpu.memory_space<vmem>>, vector<1x1x64xf32>
    %277 = vector.shape_cast %276 : vector<1x1x64xf32> to vector<1x64xf32>
    %c1_133 = arith.constant 1 : index
    %c0_134 = arith.constant 0 : index
    %c0_135 = arith.constant 0 : index
    %278 = vector.load %arg18[%c1_133, %c0_134, %c0_135] : memref<2x1x64xf32, #tpu.memory_space<vmem>>, vector<1x1x64xf32>
    %279 = vector.shape_cast %278 : vector<1x1x64xf32> to vector<1x64xf32>
    %cst_136 = arith.constant dense<0.000000e+00> : vector<64xf32>
    %280 = vector.multi_reduction <add>, %275, %cst_136 [1] : vector<64x64xf32> to vector<64xf32>
    %281 = vector.shape_cast %280 : vector<64xf32> to vector<64x1xf32>
    %cst_137 = arith.constant 6.400000e+01 : f32
    %282 = vector.broadcast %cst_137 : f32 to vector<64x1xf32>
    %283 = arith.divf %281, %282 : vector<64x1xf32>
    %284 = arith.mulf %275, %275 : vector<64x64xf32>
    %cst_138 = arith.constant dense<0.000000e+00> : vector<64xf32>
    %285 = vector.multi_reduction <add>, %284, %cst_138 [1] : vector<64x64xf32> to vector<64xf32>
    %286 = vector.shape_cast %285 : vector<64xf32> to vector<64x1xf32>
    %cst_139 = arith.constant 6.400000e+01 : f32
    %287 = vector.broadcast %cst_139 : f32 to vector<64x1xf32>
    %288 = arith.divf %286, %287 : vector<64x1xf32>
    %289 = arith.mulf %283, %283 : vector<64x1xf32>
    %290 = arith.subf %288, %289 : vector<64x1xf32>
    %cst_140 = arith.constant 0.000000e+00 : f32
    %291 = vector.broadcast %cst_140 : f32 to vector<64x1xf32>
    %292 = arith.maximumf %290, %291 : vector<64x1xf32>
    %293 = vector.broadcast %283 : vector<64x1xf32> to vector<64x64xf32>
    %294 = arith.subf %275, %293 : vector<64x64xf32>
    %cst_141 = arith.constant 9.99999996E-13 : f32
    %295 = vector.broadcast %cst_141 : f32 to vector<64x1xf32>
    %296 = arith.addf %292, %295 : vector<64x1xf32>
    %297 = math.rsqrt %296 : vector<64x1xf32>
    %298 = vector.broadcast %297 : vector<64x1xf32> to vector<64x64xf32>
    %299 = arith.mulf %294, %298 : vector<64x64xf32>
    %300 = vector.broadcast %277 : vector<1x64xf32> to vector<64x64xf32>
    %301 = arith.mulf %299, %300 : vector<64x64xf32>
    %302 = vector.broadcast %279 : vector<1x64xf32> to vector<64x64xf32>
    %303 = arith.addf %301, %302 : vector<64x64xf32>
    %c0_142 = arith.constant 0 : index
    %c0_143 = arith.constant 0 : index
    %304 = vector.load %arg19[%c0_142, %c0_143] : memref<64x32xf32, #tpu.memory_space<vmem>>, vector<64x32xf32>
    %cst_144 = arith.constant dense<0.000000e+00> : vector<64x32xf32>
    %305 = tpu.matmul %303, %304, %cst_144 {dimension_numbers = #tpu.dot_dimension_numbers<[1], [0], [0], [1], [0, 0, 1, 1], [], []>} : vector<64x64xf32>, vector<64x32xf32>, vector<64x32xf32> -> vector<64x32xf32>
    %c0_145 = arith.constant 0 : index
    %c0_146 = arith.constant 0 : index
    %306 = vector.load %arg20[%c0_145, %c0_146] : memref<1x32xf32, #tpu.memory_space<vmem>>, vector<1x32xf32>
    %307 = vector.broadcast %306 : vector<1x32xf32> to vector<64x32xf32>
    %308 = arith.addf %305, %307 : vector<64x32xf32>
    %c0_147 = arith.constant 0 : index
    %c0_148 = arith.constant 0 : index
    %309 = vector.load %arg21[%c0_147, %c0_148] : memref<64x32xf32, #tpu.memory_space<vmem>>, vector<64x32xf32>
    tpu.vector_store %arg21[%c0_147, %c0_148], %308 {strides = array<i32>} : memref<64x32xf32, #tpu.memory_space<vmem>>, vector<64x32xf32>,
    return
  }
  func.func @transform_0(%arg0: i32) -> (i32, i32) {
    %c0_i32 = arith.constant 0 : i32
    %c0_i32_0 = arith.constant 0 : i32
    %c0_i32_1 = arith.constant 0 : i32
    return %c0_i32, %c0_i32_0 : i32, i32
  }
  func.func @transform_1(%arg0: i32) -> (i32, i32) {
    %c0_i32 = arith.constant 0 : i32
    %c0_i32_0 = arith.constant 0 : i32
    %c0_i32_1 = arith.constant 0 : i32
    return %c0_i32, %c0_i32_0 : i32, i32
  }
  func.func @transform_2(%arg0: i32) -> (i32, i32) {
    %c0_i32 = arith.constant 0 : i32
    %c0_i32_0 = arith.constant 0 : i32
    %c0_i32_1 = arith.constant 0 : i32
    return %c0_i32, %c0_i32_0 : i32, i32
  }
  func.func @transform_3(%arg0: i32) -> (i32, i32) {
    %c0_i32 = arith.constant 0 : i32
    %c0_i32_0 = arith.constant 0 : i32
    %c0_i32_1 = arith.constant 0 : i32
    return %c0_i32, %c0_i32_0 : i32, i32
  }
  func.func @transform_4(%arg0: i32) -> (i32, i32) {
    %c0_i32 = arith.constant 0 : i32
    %c0_i32_0 = arith.constant 0 : i32
    %c0_i32_1 = arith.constant 0 : i32
    return %c0_i32, %c0_i32_0 : i32, i32
  }
  func.func @transform_5(%arg0: i32) -> (i32, i32) {
    %c0_i32 = arith.constant 0 : i32
    %c0_i32_0 = arith.constant 0 : i32
    %c0_i32_1 = arith.constant 0 : i32
    return %c0_i32, %c0_i32_0 : i32, i32
  }
  func.func @transform_6(%arg0: i32) -> (i32, i32, i32) {
    %c0_i32 = arith.constant 0 : i32
    %c0_i32_0 = arith.constant 0 : i32
    %c0_i32_1 = arith.constant 0 : i32
    %c0_i32_2 = arith.constant 0 : i32
    return %c0_i32, %c0_i32_0, %c0_i32_1 : i32, i32, i32
  }
  func.func @transform_7(%arg0: i32) -> (i32, i32, i32) {
    %c0_i32 = arith.constant 0 : i32
    %c0_i32_0 = arith.constant 0 : i32
    %c0_i32_1 = arith.constant 0 : i32
    %c0_i32_2 = arith.constant 0 : i32
    return %c0_i32, %c0_i32_0, %c0_i32_1 : i32, i32, i32
  }
  func.func @transform_8(%arg0: i32) -> (i32, i32, i32, i32) {
    %c0_i32 = arith.constant 0 : i32
    %c0_i32_0 = arith.constant 0 : i32
    %c0_i32_1 = arith.constant 0 : i32
    %c0_i32_2 = arith.constant 0 : i32
    %c0_i32_3 = arith.constant 0 : i32
    return %c0_i32, %c0_i32_0, %c0_i32_1, %c0_i32_2 : i32, i32, i32, i32
  }
  func.func @transform_9(%arg0: i32) -> (i32, i32, i32) {
    %c0_i32 = arith.constant 0 : i32
    %c0_i32_0 = arith.constant 0 : i32
    %c0_i32_1 = arith.constant 0 : i32
    %c0_i32_2 = arith.constant 0 : i32
    return %c0_i32, %c0_i32_0, %c0_i32_1 : i32, i32, i32
  }
  func.func @transform_10(%arg0: i32) -> (i32, i32, i32) {
    %c0_i32 = arith.constant 0 : i32
    %c0_i32_0 = arith.constant 0 : i32
    %c0_i32_1 = arith.constant 0 : i32
    %c0_i32_2 = arith.constant 0 : i32
    return %c0_i32, %c0_i32_0, %c0_i32_1 : i32, i32, i32
  }
  func.func @transform_11(%arg0: i32) -> (i32, i32, i32) {
    %c0_i32 = arith.constant 0 : i32
    %c0_i32_0 = arith.constant 0 : i32
    %c0_i32_1 = arith.constant 0 : i32
    %c0_i32_2 = arith.constant 0 : i32
    return %c0_i32, %c0_i32_0, %c0_i32_1 : i32, i32, i32
  }
  func.func @transform_12(%arg0: i32) -> (i32, i32, i32) {
    %c0_i32 = arith.constant 0 : i32
    %c0_i32_0 = arith.constant 0 : i32
    %c0_i32_1 = arith.constant 0 : i32
    %c0_i32_2 = arith.constant 0 : i32
    return %c0_i32, %c0_i32_0, %c0_i32_1 : i32, i32, i32
  }
  func.func @transform_13(%arg0: i32) -> (i32, i32, i32) {
    %c0_i32 = arith.constant 0 : i32
    %c0_i32_0 = arith.constant 0 : i32
    %c0_i32_1 = arith.constant 0 : i32
    %c0_i32_2 = arith.constant 0 : i32
    return %c0_i32, %c0_i32_0, %c0_i32_1 : i32, i32, i32
  }
  func.func @transform_14(%arg0: i32) -> (i32, i32, i32) {
    %c0_i32 = arith.constant 0 : i32
    %c0_i32_0 = arith.constant 0 : i32
    %c0_i32_1 = arith.constant 0 : i32
    %c0_i32_2 = arith.constant 0 : i32
    return %c0_i32, %c0_i32_0, %c0_i32_1 : i32, i32, i32
  }
  func.func @transform_15(%arg0: i32) -> (i32, i32, i32) {
    %c0_i32 = arith.constant 0 : i32
    %c0_i32_0 = arith.constant 0 : i32
    %c0_i32_1 = arith.constant 0 : i32
    %c0_i32_2 = arith.constant 0 : i32
    return %c0_i32, %c0_i32_0, %c0_i32_1 : i32, i32, i32
  }
  func.func @transform_16(%arg0: i32) -> (i32, i32, i32) {
    %c0_i32 = arith.constant 0 : i32
    %c0_i32_0 = arith.constant 0 : i32
    %c0_i32_1 = arith.constant 0 : i32
    %c0_i32_2 = arith.constant 0 : i32
    return %c0_i32, %c0_i32_0, %c0_i32_1 : i32, i32, i32
  }
  func.func @transform_17(%arg0: i32) -> (i32, i32, i32) {
    %c0_i32 = arith.constant 0 : i32
    %c0_i32_0 = arith.constant 0 : i32
    %c0_i32_1 = arith.constant 0 : i32
    %c0_i32_2 = arith.constant 0 : i32
    return %c0_i32, %c0_i32_0, %c0_i32_1 : i32, i32, i32
  }
  func.func @transform_18(%arg0: i32) -> (i32, i32) {
    %c0_i32 = arith.constant 0 : i32
    %c0_i32_0 = arith.constant 0 : i32
    %c0_i32_1 = arith.constant 0 : i32
    return %c0_i32, %c0_i32_0 : i32, i32
  }
  func.func @transform_19(%arg0: i32) -> (i32, i32) {
    %c0_i32 = arith.constant 0 : i32
    %c0_i32_0 = arith.constant 0 : i32
    %c0_i32_1 = arith.constant 0 : i32
    return %c0_i32, %c0_i32_0 : i32, i32
  }
  func.func @transform_20(%arg0: i32) -> (i32, i32) {
    %c0_i32 = arith.constant 0 : i32
    %c0_i32_0 = arith.constant 0 : i32
    %c0_i32_1 = arith.constant 0 : i32
    return %c0_i32, %c0_i32_0 : i32, i32
  }
}

</mosaic_0001>

<bundles_post_ra>
// kernel: tpu_custom_call.1
= control target key start
LH: loop header
LB: loop body
LE: loop exit
PB: predicated region body
PF: predicated region fallthrough
CT: control target
= control target key end

     0   :  { %s11835_s0 = inlined_call_operand.vmem [shape: f32[64,32], index: 0, kind: input, shape index: {}]   ;;  %s11836_s1 = inlined_call_operand.vmem [shape: f32[32,64], index: 1, kind: input, shape index: {}]   ;;  %s11837_s2 = inlined_call_operand.hbm [shape: f32[1,64], index: 2, kind: input, shape index: {}]   ;;  %s11838_s3 = inlined_call_operand.hbm [shape: f32[8,64], index: 3, kind: input, shape index: {}]   ;;  %s11839_s4 = inlined_call_operand.hbm [shape: f32[1,64], index: 4, kind: input, shape index: {}]   ;;  %s11840_s5 = inlined_call_operand.hbm [shape: f32[1,64], index: 5, kind: input, shape index: {}]   ;;  %s11841_s6 = inlined_call_operand.vmem [shape: f32[2,64,192], index: 6, kind: input, shape index: {}]   ;;  %s11842_s7 = inlined_call_operand.vmem [shape: f32[2,1,192], index: 7, kind: input, shape index: {}]   ;;  %s11843_s8 = inlined_call_operand.vmem [shape: f32[2,2,32,64], index: 8, kind: input, shape index: {}]   ;;  %s11844_s9 = inlined_call_operand.vmem [shape: f32[2,1,64], index: 9, kind: input, shape index: {}]   ;;  %s11845_s10 = inlined_call_operand.vmem [shape: f32[2,1,64], index: 10, kind: input, shape index: {}]   ;;  %s11846_s11 = inlined_call_operand.vmem [shape: f32[2,1,64], index: 11, kind: input, shape index: {}]   ;;  %s11847_s12 = inlined_call_operand.vmem [shape: f32[2,64,128], index: 12, kind: input, shape index: {}]   ;;  %s11848_s13 = inlined_call_operand.vmem [shape: f32[2,1,128], index: 13, kind: input, shape index: {}]   ;;  %s11849_s14 = inlined_call_operand.vmem [shape: f32[2,128,64], index: 14, kind: input, shape index: {}]   ;;  %s11850_s15 = inlined_call_operand.vmem [shape: f32[2,1,64], index: 15, kind: input, shape index: {}]   ;;  %s11851_s16 = inlined_call_operand.vmem [shape: f32[2,1,64], index: 16, kind: input, shape index: {}]   ;;  %s11852_s17 = inlined_call_operand.vmem [shape: f32[2,1,64], index: 17, kind: input, shape index: {}]   ;;  %s11853_s18 = inlined_call_operand.vmem [shape: f32[64,32], index: 18, kind: input, shape index: {}]   ;;  %s11854_s19 = inlined_call_operand.vmem [shape: f32[1,32], index: 19, kind: input, shape index: {}]   ;;  %s11855_s20 = inlined_call_operand.vmem [shape: f32[64,32], index: 20, kind: output, shape index: {}]  }
   0x1   :  { %11858 = sst [smem:[#allocation12_spill]] %s11835_s0 }
   0x2   :  { %11859 = sst [smem:[#allocation13_spill]] %s11836_s1 }
   0x3   :  { %11860 = sst [smem:[#allocation14_spill]] %s11837_s2 }
   0x4   :  { %11861 = sst [smem:[#allocation15_spill]] %s11838_s3 }
   0x5   :  { %11862 = sst [smem:[#allocation16_spill]] %s11839_s4 }
   0x6   :  { %25 = vsyncpa [#allocation3], 0 }
   0x7   :  { %26 = vsyncpa [#allocation5], 0 }
   0x8   :  { %27 = vsyncpa [#allocation8], 0  ;;  %s9618_s1 = smov [#allocation4]   ;;  %s9619_s23 = smov [#allocation2]  }
   0x9   :  { %s48_s22 = sshll.u32 %s9618_s1, 4  ;;  %s38_s24 = sshll.u32 %s9619_s23, 4  ;;  %s49_s22 = int_to_ptr.vmem [resolvable:$true] %s48_s22  ;;  %s39_s24 = int_to_ptr.vmem [resolvable:$true] %s38_s24 }
   0xa   :  { %s9540_s2 = scalar_lea.vmem %s49_s22, 128  ;;  %p9545_p1 = scmp.lt.s32.totalorder %s49_s22, %s49_s22 }
   0xb   :  { %p9541_p0 = scmp.ne.s32.totalorder %s49_s22, %s9540_s2  ;;  %p9546_p2 = scmp.lt.s32.totalorder %s9540_s2, %s9540_s2 }
   0xd   :  { %p9547_p3 = por %p9546_p2, %p9545_p1 }
   0xf   :  { %p9548_p4 = pnand %p9547_p3, %p9541_p0 }
  0x11   :  { %9551 = shalt.err (!%p9548_p4)
}
  0x12   :  { %s11863_s26 = sld [smem:[#allocation15_spill]]  ;;  %s9560_s27 = scalar_lea.vmem %s39_s24, 16 }
  0x13   :  { %p9561_p5 = scmp.ne.s32.totalorder %s39_s24, %s9560_s27  ;;  %s9564_s28 = scalar_lea.vmem %s39_s24, 32 }
  0x14   :  { %p9565_p6 = scmp.lt.s32.totalorder %s39_s24, %s39_s24  ;;  %p9566_p7 = scmp.lt.s32.totalorder %s9564_s28, %s9560_s27 }
  0x16   :  { %p9567_p8 = por %p9566_p7, %p9565_p6 }
  0x18   :  { %51 = dma.hbm_to_vmem [thread:$0]  %s11863_s26, 128, %s49_s22, [#allocation5]  }
  0x19   :  { %p9568_p9 = pnand %p9567_p8, %p9561_p5 }
  0x1b   :  { %9571 = shalt.err (!%p9568_p9)
}
  0x1c   :  { %s11864_s30 = sld [smem:[#allocation14_spill]]  ;;  %s9620_s0 = smov [#allocation6]  }
  0x1d   :  { %s58_s21 = sshll.u32 %s9620_s0, 4  ;;  %s9621_s1 = smov [#allocation7]   ;;  %s59_s21 = int_to_ptr.vmem [resolvable:$true] %s58_s21 }
  0x1e   :  { %s68_s23 = sshll.u32 %s9621_s1, 4  ;;  %s9580_s2 = scalar_lea.vmem %s59_s21, 16  ;;  %s69_s23 = int_to_ptr.vmem [resolvable:$true] %s68_s23 }
  0x1f   :  { %p9581_p10 = scmp.ne.s32.totalorder %s59_s21, %s9580_s2  ;;  %s9584_s22 = scalar_lea.vmem %s59_s21, 32 }
  0x20   :  { %p9585_p11 = scmp.lt.s32.totalorder %s59_s21, %s59_s21  ;;  %p9586_p12 = scmp.lt.s32.totalorder %s9584_s22, %s9580_s2 }
  0x22   :  { %41 = dma.hbm_to_vmem [thread:$0]  %s11864_s30, 16, %s39_s24, [#allocation3]  }
  0x23   :  { %p9587_p13 = por %p9586_p12, %p9585_p11 }
  0x25   :  { %p9588_p0 = pnand %p9587_p13, %p9581_p10 }
  0x27   :  { %9591 = shalt.err (!%p9588_p0)
}
  0x28   :  { %s11865_s26 = sld [smem:[#allocation16_spill]]  ;;  %s9600_s27 = scalar_lea.vmem %s69_s23, 16 }
  0x29   :  { %p9601_p1 = scmp.ne.s32.totalorder %s69_s23, %s9600_s27  ;;  %s9604_s24 = scalar_lea.vmem %s69_s23, 32 }
  0x2a   :  { %p9605_p2 = scmp.lt.s32.totalorder %s69_s23, %s69_s23  ;;  %p9606_p3 = scmp.lt.s32.totalorder %s9604_s24, %s9600_s27 }
  0x2c   :  { %p9607_p4 = por %p9606_p3, %p9605_p2 }
  0x2e   :  { %61 = dma.hbm_to_vmem [thread:$0]  %s11865_s26, 16, %s59_s21, [#allocation5]  }
  0x2f   :  { %p9608_p5 = pnand %p9607_p4, %p9601_p1 }
  0x31   :  { %9611 = shalt.err (!%p9608_p5)
}
  0x32   :  { %71 = dma.hbm_to_vmem [thread:$0]  %s11840_s5, 16, %s69_s23, [#allocation8]  }
  0x33   :  { %9612 = dma.done.wait [#allocation3], 16  }
  0x34   :  { %9613 = vsyncadd [#allocation3], 4294967280 }
  0x35   :  { %9614 = dma.done.wait [#allocation5], 144  }
  0x36   :  { %9615 = vsyncadd [#allocation5], 4294967152 }
  0x37   :  { %9616 = dma.done.wait [#allocation8], 16  }
  0x38   :  { %9617 = vsyncadd [#allocation8], 4294967280  ;;  %vm131_vm0 = vcmask 261120   ;;  %s11866_s0 = sld [smem:[#allocation13_spill]]  ;;  %v8158_v12 = vld [vmem:[#allocation2] ss:$0 sm:$0xff] }
  0x39   :  { %s11867_s25 = sld [smem:[#allocation12_spill]]  ;;  %v261_v14 = vld [vmem:[#allocation4] sm:$0xff]  ;;  %vm272_vm1 = vcmask 523264   ;;  %v445_v62 = vld [vmem:[%s11841_s6 + $0x78] sm:$0xff]  ;;  %v444_v63 = vld [vmem:[%s11841_s6 + $0x70] sm:$0xff]  ;;  %s9623_s27 = smov 96  }
  0x3a   :  { %498 = vmatprep.subr.mxu1 %v445_v62  ;;  %vm9624_vm2 = vmmov 0   ;;  %s9625_s24 = smov 64   ;;  %vm1883_vm3 = vcmask 64512  }
  0x3b   :  { %499 = vmatpush1.msra.mxu1 %v444_v63 }
  0x3e   :  { %v123_v0 = vld [vmem:[%s11866_s0 + $0x18] sm:$0xff]  ;;  %v122_v1 = vld [vmem:[%s11866_s0 + $0x10] sm:$0xff]  ;;  %v121_v3 = vld [vmem:[%s11866_s0 + $0x8] sm:$0xff] }
  0x3f   :  { %8692 = vmatprep.subr.mxu0 %v123_v0  ;;  %v112_v2 = vld [vmem:[%s11867_s25] sm:$0xff]  ;;  %v113_v5 = vld [vmem:[%s11867_s25 + $0x8] sm:$0xff]  ;;  %v114_v6 = vld [vmem:[%s11867_s25 + $0x10] sm:$0xff] }
  0x40   :  { %8693 = vmatpush3.msra.mxu0 %v123_v0  ;;  %8700 = vmatprep.mubr.msk.f32.mxu0 %vm131_vm0, %v112_v2  ;;  %v120_v4 = vld [vmem:[%s11866_s0] sm:$0xff]  ;;  %v115_v7 = vld [vmem:[%s11867_s25 + $0x18] sm:$0xff]  ;;  %v117_v9 = vld [vmem:[%s11867_s25 + $0x28] sm:$0xff] }
  0x41   :  { %8694 = vmatprep.subr.mxu0 %v122_v1  ;;  %v116_v8 = vld [vmem:[%s11867_s25 + $0x20] sm:$0xff]  ;;  %v118_v10 = vld [vmem:[%s11867_s25 + $0x30] sm:$0xff]  ;;  %v119_v11 = vld [vmem:[%s11867_s25 + $0x38] sm:$0xff] }
  0x42   :  { %8695 = vmatpush3.msra.mxu0 %v122_v1  ;;  %v443_v0 = vld [vmem:[%s11841_s6 + $0x68] sm:$0xff]  ;;  %v442_v1 = vld [vmem:[%s11841_s6 + $0x60] sm:$0xff]  ;;  %v441_v2 = vld [vmem:[%s11841_s6 + $0x58] sm:$0xff] }
  0x43   :  { %8696 = vmatprep.subr.mxu0 %v121_v3  ;;  %500 = vmatprep.subr.mxu1 %v443_v0 }
  0x44   :  { %8697 = vmatpush3.msra.mxu0 %v121_v3  ;;  %501 = vmatpush1.msra.mxu1 %v442_v1  ;;  %v440_v3 = vld [vmem:[%s11841_s6 + $0x50] sm:$0xff] }
  0x45   :  { %8698 = vmatprep.subr.mxu0 %v120_v4  ;;  %502 = vmatprep.subr.mxu1 %v441_v2 }
  0x46   :  { %8699 = vmatpush3.msra.mxu0 %v120_v4  ;;  %503 = vmatpush1.msra.mxu1 %v440_v3  ;;  %v439_v4 = vld [vmem:[%s11841_s6 + $0x48] sm:$0xff] }
  0x47   :  { %8701 = vmatmul.mubr.msk.f32.vlgmr.msra.gmra.mxu0 %vm131_vm0, %v113_v5  ;;  %504 = vmatprep.subr.mxu1 %v439_v4  ;;  %v438_v5 = vld [vmem:[%s11841_s6 + $0x40] sm:$0xff] }
  0x48   :  { %8703 = vmatprep.mubr.msk.f32.mxu0 %vm131_vm0, %v114_v6  ;;  %505 = vmatpush1.msra.mxu1 %v438_v5  ;;  %v437_v6 = vld [vmem:[%s11841_s6 + $0x38] sm:$0xff] }
  0x49   :  { %506 = vmatprep.subr.mxu1 %v437_v6 }
  0x4b   :  { %8704 = vmatmul.mubr.msk.f32.gmra.mxu0 %vm131_vm0, %v115_v7  ;;  %v436_v7 = vld [vmem:[%s11841_s6 + $0x30] sm:$0xff] }
  0x4c   :  { %8706 = vmatprep.mubr.msk.f32.mxu0 %vm131_vm0, %v116_v8  ;;  %507 = vmatpush1.msra.mxu1 %v436_v7  ;;  %v435_v8 = vld [vmem:[%s11841_s6 + $0x28] sm:$0xff] }
  0x4d   :  { %508 = vmatprep.subr.mxu1 %v435_v8 }
  0x4f   :  { %8707 = vmatmul.mubr.msk.f32.gmra.mxu0 %vm131_vm0, %v117_v9  ;;  %v434_v9 = vld [vmem:[%s11841_s6 + $0x20] sm:$0xff] }
  0x50   :  { %8709 = vmatprep.mubr.msk.f32.mxu0 %vm131_vm0, %v118_v10  ;;  %509 = vmatpush1.msra.mxu1 %v434_v9  ;;  %v433_v10 = vld [vmem:[%s11841_s6 + $0x18] sm:$0xff] }
  0x51   :  { %510 = vmatprep.subr.mxu1 %v433_v10 }
  0x53   :  { %8710 = vmatmul.mubr.msk.f32.gmra.mxu0 %vm131_vm0, %v119_v11  ;;  %v432_v11 = vld [vmem:[%s11841_s6 + $0x10] sm:$0xff] }
  0x54   :  { %511 = vmatpush1.msra.mxu1 %v432_v11 }
 0x107   :  { %v8702_v13 = vpop.f32.mrf.mxu0 }
 0x108   :  { %v228_v15 = vadd.f32 %v8702_v13, %v8158_v12  ;;  %v430_v13 = vld [vmem:[%s11841_s6] sm:$0xff] }
 0x109   :  { %v222_v16 = vpop.f32.mrf.mxu0 }
 0x10a   :  { %v9787_v17 = vadd.f32 %v261_v14, %v228_v15  ;;  %v223_v18 = vadd.f32 %v8158_v12, %v222_v16 }
 0x10b   :  { %v8705_v19 = vpop.f32.mrf.mxu0 }
 0x10c   :  { %v9789_v20 = vadd.f32 %v261_v14, %v223_v18  ;;  %v276_v21 = vsel %vm272_vm1, %v9787_v17, 0.0  ;;  %v238_v22 = vadd.f32 %v8705_v19, %v8158_v12  ;;  %v307_v23 = vmul.f32 %v9787_v17, %v9787_v17 }
 0x10d   :  { %277 = vadd.xlane.f32.xlu1 %v276_v21  ;;  %v232_v24 = vpop.f32.mrf.mxu0 }
 0x10e   :  { %v9795_v25 = vadd.f32 %v261_v14, %v238_v22  ;;  %v273_v26 = vsel %vm272_vm1, %v9789_v20, 0.0  ;;  %v233_v27 = vadd.f32 %v8158_v12, %v232_v24  ;;  %v306_v28 = vmul.f32 %v9789_v20, %v9789_v20 }
 0x10f   :  { %274 = vadd.xlane.f32.xlu0 %v273_v26  ;;  %v8708_v29 = vpop.f32.mrf.mxu0  ;;  %v317_v31 = vsel %vm272_vm1, %v307_v23, 0.0 }
 0x110   :  { %v9801_v30 = vadd.f32 %v261_v14, %v233_v27  ;;  %v248_v32 = vadd.f32 %v8708_v29, %v8158_v12  ;;  %v314_v34 = vsel %vm272_vm1, %v306_v28, 0.0  ;;  %v309_v37 = vmul.f32 %v9795_v25, %v9795_v25 }
 0x111   :  { %318 = vadd.xlane.f32.xlu1 %v317_v31  ;;  %v242_v33 = vpop.f32.mrf.mxu0  ;;  %v282_v47 = vsel %vm272_vm1, %v9795_v25, 0.0 }
 0x112   :  { %v308_v35 = vmul.f32 %v9801_v30, %v9801_v30  ;;  %v243_v36 = vadd.f32 %v8158_v12, %v242_v33  ;;  %v279_v39 = vsel %vm272_vm1, %v9801_v30, 0.0  ;;  %v9814_v43 = vadd.f32 %v261_v14, %v248_v32 }
 0x113   :  { %315 = vadd.xlane.f32.xlu0 %v314_v34  ;;  %v8711_v38 = vpop.f32.mrf.mxu0  ;;  %v323_v44 = vsel %vm272_vm1, %v309_v37, 0.0 }
 0x114   :  { %v320_v40 = vsel %vm272_vm1, %v308_v35, 0.0  ;;  %v9812_v41 = vadd.f32 %v261_v14, %v243_v36  ;;  %v258_v48 = vadd.f32 %v8711_v38, %v8158_v12  ;;  %v311_v51 = vmul.f32 %v9814_v43, %v9814_v43 }
 0x115   :  { %321 = vadd.xlane.f32.xlu1 %v320_v40  ;;  %v252_v42 = vpop.f32.mrf.mxu0  ;;  %v288_v56 = vsel %vm272_vm1, %v9814_v43, 0.0 }
 0x116   :  { %v253_v45 = vadd.f32 %v8158_v12, %v252_v42  ;;  %v310_v46 = vmul.f32 %v9812_v41, %v9812_v41  ;;  %v285_v52 = vsel %vm272_vm1, %v9812_v41, 0.0  ;;  %v9828_v53 = vadd.f32 %v261_v14, %v258_v48  ;;  %v431_v12 = vld [vmem:[%s11841_s6 + $0x8] sm:$0xff] }
 0x117   :  { %280 = vadd.xlane.f32.xlu0 %v279_v39  ;;  %v329_v54 = vsel %vm272_vm1, %v311_v51, 0.0  ;;  %512 = vmatprep.subr.mxu1 %v431_v12 }
 0x118   :  { %v9821_v49 = vadd.f32 %v261_v14, %v253_v45  ;;  %v326_v50 = vsel %vm272_vm1, %v310_v46, 0.0  ;;  %v313_v58 = vmul.f32 %v9828_v53, %v9828_v53  ;;  %v294_v61 = vsel %vm272_vm1, %v9828_v53, 0.0  ;;  %513 = vmatpush1.msra.mxu1 %v430_v13 }
 0x119   :  { %324 = vadd.xlane.f32.xlu1 %v323_v44  ;;  %v9622_v14 = vmov 0.0  }
 0x11a   :  { %v312_v55 = vmul.f32 %v9821_v49, %v9821_v49  ;;  %v291_v59 = vsel %vm272_vm1, %v9821_v49, 0.0  ;;  %v335_v60 = vsel %vm272_vm1, %v313_v58, 0.0  ;;  %546 = vmatprep.mubr.f32.mxu1 %v9622_v14  ;;  %8712 = vmatprep.subr.mxu0 %v9622_v14 }
 0x11b   :  { %283 = vadd.xlane.f32.xlu0 %v282_v47  ;;  %8747 = vmatprep.subr.mxu1 %v9622_v14 }
 0x11c   :  { %v332_v57 = vsel %vm272_vm1, %v312_v55, 0.0  ;;  %8714 = vmatprep.mubr.msk.f32.mxu0 %vm9624_vm2, %v9622_v14 }
 0x11d   :  { %327 = vadd.xlane.f32.xlu1 %v326_v50 }
 0x11f   :  { %286 = vadd.xlane.f32.xlu0 %v285_v52 }
 0x121   :  { %330 = vadd.xlane.f32.xlu1 %v329_v54 }
 0x123   :  { %289 = vadd.xlane.f32.xlu0 %v288_v56 }
 0x125   :  { %333 = vadd.xlane.f32.xlu1 %v332_v57 }
 0x127   :  { %292 = vadd.xlane.f32.xlu0 %v291_v59 }
 0x129   :  { %336 = vadd.xlane.f32.xlu1 %v335_v60 }
 0x12b   :  { %295 = vadd.xlane.f32.xlu0 %v294_v61 }
 0x196   :  { %v278_v15 = vpop.xlane.xlu1 %277 }
 0x197   :  { %v9894_v16 = vmul.f32 0.015625, %v278_v15 }
 0x198   :  { %v275_v18 = vpop.xlane.xlu0 %274 }
 0x199   :  { %v298_v19 = vmul.f32 0.015625, %v275_v18  ;;  %v347_v22 = vmul.f32 %v9894_v16, %v9894_v16  ;;  %v371_v11 = vsub.f32 %v9787_v17, %v9894_v16 }
 0x19a   :  { %v319_v21 = vpop.xlane.xlu1 %318 }
 0x19b   :  { %v339_v23 = vmul.f32 0.015625, %v319_v21  ;;  %v346_v26 = vmul.f32 %v298_v19, %v298_v19  ;;  %v370_v12 = vsub.f32 %v9789_v20, %v298_v19  ;;  %v8168_v20 = vld [vmem:[#allocation7] ss:$0 sm:$0xff] }
 0x19c   :  { %v316_v24 = vpop.xlane.xlu0 %315 }
 0x19d   :  { %v355_v27 = vsub.f32 %v339_v23, %v347_v22  ;;  %v338_v28 = vmul.f32 0.015625, %v316_v24 }
 0x19e   :  { %v322_v29 = vpop.xlane.xlu1 %321 }
 0x19f   :  { %v363_v31 = vmax.f32 %v355_v27, 0.0  ;;  %v354_v32 = vsub.f32 %v338_v28, %v346_v26  ;;  %v340_v37 = vmul.f32 0.015625, %v322_v29  ;;  %v8167_v29 = vld [vmem:[#allocation6] ss:$0 sm:$0xff] }
 0x1a0   :  { %v281_v33 = vpop.xlane.xlu0 %280 }
 0x1a1   :  { %v379_v34 = vadd.f32 1e-12, %v363_v31  ;;  %v362_v35 = vmax.f32 %v354_v32, 0.0  ;;  %v9898_v36 = vmul.f32 0.015625, %v281_v33 }
 0x1a2   :  { %v325_v38 = vpop.xlane.xlu1 %324 }
 0x1a3   :  { %v378_v39 = vadd.f32 1e-12, %v362_v35  ;;  %v348_v40 = vmul.f32 %v9898_v36, %v9898_v36  ;;  %9292 = vrsqrt.f32 %v379_v34  ;;  %v341_v46 = vmul.f32 0.015625, %v325_v38 }
 0x1a4   :  { %v284_v42 = vpop.xlane.xlu0 %283  ;;  %v372_v32 = vsub.f32 %v9801_v30, %v9898_v36 }
 0x1a5   :  { %9294 = vrsqrt.f32 %v378_v39  ;;  %v356_v44 = vsub.f32 %v340_v37, %v348_v40  ;;  %v9902_v45 = vmul.f32 0.015625, %v284_v42 }
 0x1a6   :  { %v328_v47 = vpop.xlane.xlu1 %327 }
 0x1a7   :  { %v364_v48 = vmax.f32 %v356_v44, 0.0  ;;  %v349_v50 = vmul.f32 %v9902_v45, %v9902_v45  ;;  %v342_v56 = vmul.f32 0.015625, %v328_v47  ;;  %v373_v39 = vsub.f32 %v9795_v25, %v9902_v45 }
 0x1a8   :  { %v287_v51 = vpop.xlane.xlu0 %286 }
 0x1a9   :  { %v380_v52 = vadd.f32 1e-12, %v364_v48  ;;  %v357_v54 = vsub.f32 %v341_v46, %v349_v50  ;;  %v9906_v55 = vmul.f32 0.015625, %v287_v51 }
 0x1aa   :  { %v331_v57 = vpop.xlane.xlu1 %330 }
 0x1ab   :  { %9296 = vrsqrt.f32 %v380_v52  ;;  %v365_v58 = vmax.f32 %v357_v54, 0.0  ;;  %v350_v59 = vmul.f32 %v9906_v55, %v9906_v55  ;;  %v343_v0 = vmul.f32 0.015625, %v331_v57 }
 0x1ac   :  { %v290_v60 = vpop.xlane.xlu0 %289  ;;  %v374_v47 = vsub.f32 %v9812_v41, %v9906_v55 }
 0x1ad   :  { %v381_v61 = vadd.f32 1e-12, %v365_v58  ;;  %v358_v62 = vsub.f32 %v342_v56, %v350_v59  ;;  %v9910_v63 = vmul.f32 0.015625, %v290_v60 }
 0x1ae   :  { %v334_v1 = vpop.xlane.xlu1 %333 }
 0x1af   :  { %9298 = vrsqrt.f32 %v381_v61  ;;  %v366_v2 = vmax.f32 %v358_v62, 0.0  ;;  %v351_v3 = vmul.f32 %v9910_v63, %v9910_v63  ;;  %v344_v9 = vmul.f32 0.015625, %v334_v1 }
 0x1b0   :  { %v293_v4 = vpop.xlane.xlu0 %292  ;;  %v9293_v5 = vpop.eup %9292  ;;  %v375_v51 = vsub.f32 %v9814_v43, %v9910_v63 }
 0x1b1   :  { %v382_v6 = vadd.f32 1e-12, %v366_v2  ;;  %v359_v7 = vsub.f32 %v343_v0, %v351_v3  ;;  %v304_v8 = vmul.f32 0.015625, %v293_v4  ;;  %v395_v23 = vmul.f32 %v9293_v5, %v371_v11  ;;  %v446_v5 = vld [vmem:[%s11842_s7] sm:$0x3] }
 0x1b2   :  { %v9295_v10 = vpop.eup %9294  ;;  %v337_v13 = vpop.xlane.xlu1 %336  ;;  %v448_v2 = vlaneseq }
 0x1b3   :  { %9300 = vrsqrt.f32 %v382_v6  ;;  %v367_v15 = vmax.f32 %v359_v7, 0.0  ;;  %v352_v18 = vmul.f32 %v304_v8, %v304_v8  ;;  %v394_v22 = vmul.f32 %v9295_v10, %v370_v12 }
 0x1b4   :  { %v296_v21 = vpop.xlane.xlu0 %295  ;;  %v345_v28 = vmul.f32 0.015625, %v337_v13  ;;  %v409_v34 = vmul.f32 %v8167_v29, %v395_v23  ;;  %v376_v56 = vsub.f32 %v9821_v49, %v304_v8  ;;  %v9966_v3 = vshrl.u32 %v448_v2, 7 }
 0x1b5   :  { %v383_v24 = vadd.f32 1e-12, %v367_v15  ;;  %v360_v26 = vsub.f32 %v344_v9, %v352_v18  ;;  %v305_v27 = vmul.f32 0.015625, %v296_v21  ;;  %v408_v31 = vmul.f32 %v8167_v29, %v394_v22 }
 0x1b6   :  { %v9926_v36 = vadd.f32 %v8168_v20, %v409_v34  ;;  %v450_v4 = vsub.s32 0, %v9966_v3  ;;  %v454_v11 = vsub.s32 1, %v9966_v3 }
 0x1b7   :  { %9302 = vrsqrt.f32 %v383_v24  ;;  %v368_v17 = vmax.f32 %v360_v26, 0.0  ;;  %v353_v16 = vmul.f32 %v305_v27, %v305_v27  ;;  %v9919_v33 = vadd.f32 %v8168_v20, %v408_v31 }
 0x1b8   :  { %v9297_v19 = vpop.eup %9296  ;;  %v377_v43 = vsub.f32 %v9828_v53, %v305_v27  ;;  %v451_v6 = vrot.slane %v446_v5, %v450_v4  ;;  %v9989_v18 = vrot.slane %v446_v5, %v454_v11 }
 0x1b9   :  { %v384_v35 = vadd.f32 1e-12, %v368_v17  ;;  %v361_v37 = vsub.f32 %v345_v28, %v353_v16  ;;  %v396_v38 = vmul.f32 %v9297_v19, %v372_v32  ;;  %8169 = vmatmul.mubr.msk.f32.vlgmr.msra.gmra.mxu1 %vm272_vm1, %v9919_v33 }
 0x1ba   :  { %552 = vmatprep.mubr.f32.mxu1 %v9622_v14 }
 0x1bb   :  { %9304 = vrsqrt.f32 %v384_v35  ;;  %v369_v40 = vmax.f32 %v361_v37, 0.0  ;;  %v410_v42 = vmul.f32 %v8167_v29, %v396_v38 }
 0x1bc   :  { %v9299_v30 = vpop.eup %9298 }
 0x1bd   :  { %v385_v44 = vadd.f32 1e-12, %v369_v40  ;;  %v397_v46 = vmul.f32 %v9299_v30, %v373_v39  ;;  %8170 = vmatmul.mubr.msk.f32.gmra.mxu1 %vm272_vm1, %v9926_v36  ;;  %v9933_v45 = vadd.f32 %v8168_v20, %v410_v42 }
 0x1be   :  { %558 = vmatprep.mubr.f32.mxu1 %v9622_v14 }
 0x1bf   :  { %9306 = vrsqrt.f32 %v385_v44  ;;  %v411_v48 = vmul.f32 %v8167_v29, %v397_v46 }
 0x1c0   :  { %v9301_v25 = vpop.eup %9300 }
 0x1c1   :  { %v398_v50 = vmul.f32 %v9301_v25, %v374_v47  ;;  %8171 = vmatmul.mubr.msk.f32.gmra.mxu1 %vm272_vm1, %v9933_v45  ;;  %v9940_v54 = vadd.f32 %v8168_v20, %v411_v48 }
 0x1c2   :  { %564 = vmatprep.mubr.f32.mxu1 %v9622_v14 }
 0x1c3   :  { %v412_v41 = vmul.f32 %v8167_v29, %v398_v50 }
 0x1c4   :  { %v9303_v52 = vpop.eup %9302 }
 0x1c5   :  { %v399_v55 = vmul.f32 %v9303_v52, %v375_v51  ;;  %8172 = vmatmul.mubr.msk.f32.gmra.mxu1 %vm272_vm1, %v9940_v54  ;;  %v9946_v58 = vadd.f32 %v8168_v20, %v412_v41 }
 0x1c6   :  { %570 = vmatprep.mubr.f32.mxu1 %v9622_v14 }
 0x1c7   :  { %v413_v59 = vmul.f32 %v8167_v29, %v399_v55 }
 0x1c8   :  { %v9305_v57 = vpop.eup %9304 }
 0x1c9   :  { %v400_v60 = vmul.f32 %v9305_v57, %v376_v56  ;;  %8173 = vmatmul.mubr.msk.f32.gmra.mxu1 %vm272_vm1, %v9946_v58  ;;  %v9952_v62 = vadd.f32 %v8168_v20, %v413_v59 }
 0x1ca   :  { %576 = vmatprep.mubr.f32.mxu1 %v9622_v14 }
 0x1cb   :  { %v414_v63 = vmul.f32 %v8167_v29, %v400_v60 }
 0x1cc   :  { %v9307_v61 = vpop.eup %9306 }
 0x1cd   :  { %v401_v0 = vmul.f32 %v9307_v61, %v377_v43  ;;  %8174 = vmatmul.mubr.msk.f32.gmra.mxu1 %vm272_vm1, %v9952_v62  ;;  %v9957_v49 = vadd.f32 %v8168_v20, %v414_v63 }
 0x1ce   :  { %582 = vmatprep.mubr.f32.mxu1 %v9622_v14 }
 0x1cf   :  { %v415_v1 = vmul.f32 %v8167_v29, %v401_v0 }
 0x1d1   :  { %8175 = vmatmul.mubr.msk.f32.gmra.mxu1 %vm272_vm1, %v9957_v49  ;;  %v9962_v53 = vadd.f32 %v8168_v20, %v415_v1 }
 0x1d2   :  { %588 = vmatprep.mubr.f32.mxu1 %v9622_v14 }
 0x1d5   :  { %8176 = vmatmul.mubr.msk.f32.gmra.mxu1 %vm272_vm1, %v9962_v53 }
 0x1d6   :  { %8749 = vmatprep.mubr.msk.f32.mxu1 %vm9624_vm2, %v9622_v14 }
 0x279   :  { %v548_v7 = vpop.f32.mrf.mxu1 }
 0x27a   :  { %v9974_v8 = vadd.f32 %v548_v7, %v451_v6 }
 0x27b   :  { %v9976_v9 = vpop.f32.mrf.mxu1 }
 0x27c   :  { %603 = vrot.lane.b32.xlu0 %v9974_v8, %s9623_s27  ;;  %v10157_v7 = vadd.f32 %v9976_v9, %v9989_v18 }
 0x27d   :  { %v554_v10 = vpop.f32.mrf.mxu1 }
 0x27e   :  { %v9981_v12 = vadd.f32 %v554_v10, %v451_v6 }
 0x27f   :  { %v9983_v13 = vpop.f32.mrf.mxu1 }
 0x280   :  { %605 = vrot.lane.b32.xlu1 %v9981_v12, %s9623_s27  ;;  %v10168_v10 = vadd.f32 %v9983_v13, %v9989_v18 }
 0x281   :  { %v560_v15 = vpop.f32.mrf.mxu1 }
 0x282   :  { %v9991_v21 = vadd.f32 %v560_v15, %v451_v6 }
 0x283   :  { %v562_v22 = vpop.f32.mrf.mxu1 }
 0x284   :  { %v9994_v23 = vadd.f32 %v562_v22, %v9989_v18  ;;  %607 = vrot.lane.b32.xlu1 %v9991_v21, %s9623_s27 }
 0x285   :  { %v566_v24 = vpop.f32.mrf.mxu1 }
 0x286   :  { %v9998_v26 = vadd.f32 %v566_v24, %v451_v6 }
 0x287   :  { %v568_v27 = vpop.f32.mrf.mxu1 }
 0x288   :  { %v10001_v28 = vadd.f32 %v568_v27, %v9989_v18  ;;  %609 = vrot.lane.b32.xlu1 %v9998_v26, %s9623_s27 }
 0x289   :  { %v572_v29 = vpop.f32.mrf.mxu1 }
 0x28a   :  { %v10005_v31 = vadd.f32 %v572_v29, %v451_v6 }
 0x28b   :  { %v574_v32 = vpop.f32.mrf.mxu1 }
 0x28c   :  { %v10008_v17 = vadd.f32 %v574_v32, %v9989_v18  ;;  %611 = vrot.lane.b32.xlu0 %v10005_v31, %s9623_s27 }
 0x28d   :  { %v578_v16 = vpop.f32.mrf.mxu1 }
 0x28e   :  { %v10016_v20 = vadd.f32 %v578_v16, %v451_v6 }
 0x28f   :  { %v580_v19 = vpop.f32.mrf.mxu1 }
 0x290   :  { %v10019_v34 = vadd.f32 %v580_v19, %v9989_v18  ;;  %613 = vrot.lane.b32.xlu1 %v10016_v20, %s9623_s27 }
 0x291   :  { %v584_v35 = vpop.f32.mrf.mxu1 }
 0x292   :  { %v10023_v37 = vadd.f32 %v584_v35, %v451_v6 }
 0x293   :  { %v586_v38 = vpop.f32.mrf.mxu1 }
 0x294   :  { %v10026_v39 = vadd.f32 %v586_v38, %v9989_v18  ;;  %615 = vrot.lane.b32.xlu0 %v10023_v37, %s9623_s27 }
 0x295   :  { %v590_v40 = vpop.f32.mrf.mxu1 }
 0x296   :  { %v591_v30 = vadd.f32 %v590_v40, %v451_v6 }
 0x297   :  { %v10191_v19 = vpop.f32.mrf.mxu1 }
 0x298   :  { %651 = vrot.lane.b32.xlu0 %v9974_v8, %s9625_s24  ;;  %617 = vrot.lane.b32.xlu1 %v591_v30, %s9623_s27 }
 0x29c   :  { %803 = vrot.lane.b32.xlu0 %v9991_v21, %s9625_s24  ;;  %727 = vrot.lane.b32.xlu1 %v9981_v12, %s9625_s24 }
 0x2a0   :  { %955 = vrot.lane.b32.xlu0 %v10005_v31, %s9625_s24  ;;  %879 = vrot.lane.b32.xlu1 %v9998_v26, %s9625_s24 }
 0x2a4   :  { %1107 = vrot.lane.b32.xlu0 %v10023_v37, %s9625_s24  ;;  %1031 = vrot.lane.b32.xlu1 %v10016_v20, %s9625_s24 }
 0x2a8   :  { %1183 = vrot.lane.b32.xlu1 %v591_v30, %s9625_s24 }
 0x2ee   :  { %v604_v42 = vpop.permute.xlu0 %603 }
 0x2ef   :  { %1259 = vrot.lane.b32.xlu0 %v604_v42, %s9625_s24 }
 0x2f2   :  { %v606_v44 = vpop.permute.xlu1 %605 }
 0x2f3   :  { %1335 = vrot.lane.b32.xlu1 %v606_v44, %s9625_s24 }
 0x2f6   :  { %v10048_v46 = vpop.permute.xlu1 %607 }
 0x2f7   :  { %1411 = vrot.lane.b32.xlu0 %v10048_v46, %s9625_s24 }
 0x2fa   :  { %v10052_v47 = vpop.permute.xlu1 %609 }
 0x2fb   :  { %1487 = vrot.lane.b32.xlu1 %v10052_v47, %s9625_s24 }
 0x2fe   :  { %v10056_v25 = vpop.permute.xlu0 %611 }
 0x2ff   :  { %1563 = vrot.lane.b32.xlu0 %v10056_v25, %s9625_s24 }
 0x302   :  { %v10060_v48 = vpop.permute.xlu1 %613 }
 0x303   :  { %1639 = vrot.lane.b32.xlu1 %v10060_v48, %s9625_s24 }
 0x306   :  { %v10064_v50 = vpop.permute.xlu0 %615 }
 0x307   :  { %1715 = vrot.lane.b32.xlu0 %v10064_v50, %s9625_s24 }
 0x30a   :  { %v10068_v51 = vpop.permute.xlu1 %617  ;;  %v652_v52 = vpop.permute.xlu0 %651 }
 0x30b   :  { %1791 = vrot.lane.b32.xlu1 %v10068_v51, %s9625_s24  ;;  %8713 = vmatpush3.xpose.msk.msra.mxu0 %vm131_vm0, %v652_v52 }
 0x30c   :  { %8717 = vmatprep.subr.mxu0 %v9622_v14 }
 0x30e   :  { %v728_v41 = vpop.permute.xlu1 %727  ;;  %8715 = vmatmul.mubr.msk.f32.vlgmr.msra.gmra.mxu0 %vm131_vm0, %v9974_v8  ;;  %v804_v55 = vpop.permute.xlu0 %803 }
 0x30f   :  { %8718 = vmatpush3.xpose.msk.msra.mxu0 %vm131_vm0, %v728_v41  ;;  %8719 = vmatprep.mubr.msk.f32.mxu0 %vm9624_vm2, %v9622_v14 }
 0x310   :  { %8722 = vmatprep.subr.mxu0 %v9622_v14 }
 0x312   :  { %v880_v56 = vpop.permute.xlu1 %879  ;;  %8720 = vmatmul.mubr.msk.f32.vlgmr.msra.gmra.mxu0 %vm131_vm0, %v9981_v12  ;;  %v956_v59 = vpop.permute.xlu0 %955 }
 0x313   :  { %8723 = vmatpush3.xpose.msk.msra.mxu0 %vm131_vm0, %v804_v55  ;;  %8724 = vmatprep.mubr.msk.f32.mxu0 %vm9624_vm2, %v9622_v14 }
 0x314   :  { %8727 = vmatprep.subr.mxu0 %v9622_v14 }
 0x316   :  { %v1032_v57 = vpop.permute.xlu1 %1031  ;;  %8725 = vmatmul.mubr.msk.f32.vlgmr.msra.gmra.mxu0 %vm131_vm0, %v9991_v21  ;;  %v1108_v43 = vpop.permute.xlu0 %1107 }
 0x317   :  { %8728 = vmatpush3.xpose.msk.msra.mxu0 %vm131_vm0, %v880_v56  ;;  %8729 = vmatprep.mubr.msk.f32.mxu0 %vm9624_vm2, %v9622_v14 }
 0x318   :  { %8732 = vmatprep.subr.mxu0 %v9622_v14 }
 0x31a   :  { %v1184_v60 = vpop.permute.xlu1 %1183  ;;  %8730 = vmatmul.mubr.msk.f32.vlgmr.msra.gmra.mxu0 %vm131_vm0, %v9998_v26 }
 0x31b   :  { %8733 = vmatpush3.xpose.msk.msra.mxu0 %vm131_vm0, %v956_v59  ;;  %8748 = vmatpush3.xpose.msk.msra.mxu1 %vm131_vm0, %v1184_v60 }
 0x31c   :  { %8734 = vmatprep.mubr.msk.f32.mxu0 %vm9624_vm2, %v9622_v14  ;;  %8737 = vmatprep.subr.mxu0 %v9622_v14 }
 0x31d   :  { %8757 = vmatprep.subr.mxu1 %v9622_v14 }
 0x31e   :  { %8735 = vmatmul.mubr.msk.f32.vlgmr.msra.gmra.mxu0 %vm131_vm0, %v10005_v31  ;;  %8750 = vmatmul.mubr.msk.f32.vlgmr.msra.gmra.mxu1 %vm131_vm0, %v591_v30 }
 0x31f   :  { %8738 = vmatpush3.xpose.msk.msra.mxu0 %vm131_vm0, %v1032_v57  ;;  %8739 = vmatprep.mubr.msk.f32.mxu0 %vm9624_vm2, %v9622_v14 }
 0x320   :  { %8742 = vmatprep.subr.mxu0 %v9622_v14  ;;  %8759 = vmatprep.mubr.msk.f32.mxu1 %vm9624_vm2, %v9622_v14 }
 0x322   :  { %8740 = vmatmul.mubr.msk.f32.vlgmr.msra.gmra.mxu0 %vm131_vm0, %v10016_v20 }
 0x323   :  { %8743 = vmatpush3.xpose.msk.msra.mxu0 %vm131_vm0, %v1108_v43  ;;  %8744 = vmatprep.mubr.msk.f32.mxu0 %vm9624_vm2, %v9622_v14 }
 0x324   :  { %8752 = vmatprep.subr.mxu0 %v9622_v14 }
 0x326   :  { %8745 = vmatmul.mubr.msk.f32.vlgmr.msra.gmra.mxu0 %vm131_vm0, %v10023_v37 }
 0x327   :  { %8754 = vmatprep.mubr.msk.f32.mxu0 %vm9624_vm2, %v9622_v14 }
 0x361   :  { %v1260_v61 = vpop.permute.xlu0 %1259 }
 0x362   :  { %8753 = vmatpush3.xpose.msk.msra.mxu0 %vm131_vm0, %v1260_v61 }
 0x363   :  { %8762 = vmatprep.subr.mxu0 %v9622_v14 }
 0x365   :  { %v1336_v63 = vpop.permute.xlu1 %1335  ;;  %8755 = vmatmul.mubr.msk.f32.vlgmr.msra.gmra.mxu0 %vm131_vm0, %v604_v42 }
 0x366   :  { %8758 = vmatpush3.xpose.msk.msra.mxu1 %vm131_vm0, %v1336_v63  ;;  %8764 = vmatprep.mubr.msk.f32.mxu0 %vm9624_vm2, %v9622_v14 }
 0x367   :  { %8767 = vmatprep.subr.mxu1 %v9622_v14 }
 0x369   :  { %8760 = vmatmul.mubr.msk.f32.vlgmr.msra.gmra.mxu1 %vm131_vm0, %v606_v44  ;;  %v1412_v0 = vpop.permute.xlu0 %1411 }
 0x36a   :  { %8763 = vmatpush3.xpose.msk.msra.mxu0 %vm131_vm0, %v1412_v0  ;;  %8769 = vmatprep.mubr.msk.f32.mxu1 %vm9624_vm2, %v9622_v14 }
 0x36b   :  { %8772 = vmatprep.subr.mxu0 %v9622_v14 }
 0x36d   :  { %v1488_v1 = vpop.permute.xlu1 %1487  ;;  %8765 = vmatmul.mubr.msk.f32.vlgmr.msra.gmra.mxu0 %vm131_vm0, %v10048_v46 }
 0x36e   :  { %8768 = vmatpush3.xpose.msk.msra.mxu1 %vm131_vm0, %v1488_v1  ;;  %8774 = vmatprep.mubr.msk.f32.mxu0 %vm9624_vm2, %v9622_v14 }
 0x36f   :  { %8777 = vmatprep.subr.mxu1 %v9622_v14 }
 0x371   :  { %8770 = vmatmul.mubr.msk.f32.vlgmr.msra.gmra.mxu1 %vm131_vm0, %v10052_v47  ;;  %v1564_v2 = vpop.permute.xlu0 %1563 }
 0x372   :  { %8773 = vmatpush3.xpose.msk.msra.mxu0 %vm131_vm0, %v1564_v2  ;;  %8779 = vmatprep.mubr.msk.f32.mxu1 %vm9624_vm2, %v9622_v14 }
 0x373   :  { %8782 = vmatprep.subr.mxu0 %v9622_v14 }
 0x375   :  { %v1640_v5 = vpop.permute.xlu1 %1639  ;;  %8775 = vmatmul.mubr.msk.f32.vlgmr.msra.gmra.mxu0 %vm131_vm0, %v10056_v25 }
 0x376   :  { %8778 = vmatpush3.xpose.msk.msra.mxu1 %vm131_vm0, %v1640_v5  ;;  %8784 = vmatprep.mubr.msk.f32.mxu0 %vm9624_vm2, %v9622_v14 }
 0x377   :  { %8787 = vmatprep.subr.mxu1 %v9622_v14 }
 0x379   :  { %8780 = vmatmul.mubr.msk.f32.vlgmr.msra.gmra.mxu1 %vm131_vm0, %v10060_v48  ;;  %v1716_v6 = vpop.permute.xlu0 %1715 }
 0x37a   :  { %8783 = vmatpush3.xpose.msk.msra.mxu0 %vm131_vm0, %v1716_v6  ;;  %8789 = vmatprep.mubr.msk.f32.mxu1 %vm9624_vm2, %v9622_v14 }
 0x37b   :  { %8792 = vmatprep.subr.mxu0 %v9622_v14 }
 0x37d   :  { %v1792_v8 = vpop.permute.xlu1 %1791  ;;  %8785 = vmatmul.mubr.msk.f32.vlgmr.msra.gmra.mxu0 %vm131_vm0, %v10064_v50 }
 0x37e   :  { %8788 = vmatpush3.xpose.msk.msra.mxu1 %vm131_vm0, %v1792_v8  ;;  %8793 = vmatpush3.msra.mxu0 %v10157_v7 }
 0x37f   :  { %8797 = vmatprep.subr.mxu1 %v9622_v14  ;;  %8794 = vmatprep.mubr.msk.f32.mxu0 %vm9624_vm2, %v9622_v14 }
 0x380   :  { %8802 = vmatprep.subr.mxu0 %v9622_v14 }
 0x381   :  { %8790 = vmatmul.mubr.msk.f32.vlgmr.msra.gmra.mxu1 %vm131_vm0, %v10068_v51 }
 0x382   :  { %8798 = vmatpush3.msra.mxu1 %v10168_v10  ;;  %8799 = vmatprep.mubr.msk.f32.mxu1 %vm9624_vm2, %v9622_v14 }
 0x383   :  { %8807 = vmatprep.subr.mxu1 %v9622_v14 }
 0x3ce   :  { %v723_v9 = vpop.f32.mrf.mxu0 }
 0x3cf   :  { %v10177_v12 = vmul.f32 0.17677669, %v723_v9 }
 0x3d0   :  { %v8716_v15 = vpop.f32.mrf.mxu0 }
 0x3d1   :  { %v1884_v13 = vsel %vm1883_vm3, %v10177_v12, -inf }
 0x3d2   :  { %1885 = vmax.xlane.f32.xlu0 %v1884_v13  ;;  %v799_v21 = vpop.f32.mrf.mxu0 }
 0x3d3   :  { %v10181_v22 = vmul.f32 0.17677669, %v799_v21 }
 0x3d4   :  { %v8721_v24 = vpop.f32.mrf.mxu0 }
 0x3d5   :  { %v1887_v26 = vsel %vm1883_vm3, %v10181_v22, -inf }
 0x3d6   :  { %1888 = vmax.xlane.f32.xlu1 %v1887_v26  ;;  %v875_v27 = vpop.f32.mrf.mxu0 }
 0x3d7   :  { %v10185_v29 = vmul.f32 0.17677669, %v875_v27 }
 0x3d8   :  { %v8726_v31 = vpop.f32.mrf.mxu0 }
 0x3d9   :  { %v1890_v32 = vsel %vm1883_vm3, %v10185_v29, -inf }
 0x3da   :  { %1891 = vmax.xlane.f32.xlu0 %v1890_v32  ;;  %v951_v16 = vpop.f32.mrf.mxu0 }
 0x3db   :  { %v10189_v20 = vmul.f32 0.17677669, %v951_v16 }
 0x3dc   :  { %v8731_v35 = vpop.f32.mrf.mxu0 }
 0x3dd   :  { %v1893_v37 = vsel %vm1883_vm3, %v10189_v20, -inf }
 0x3de   :  { %v1255_v38 = vpop.f32.mrf.mxu1  ;;  %1894 = vmax.xlane.f32.xlu0 %v1893_v37  ;;  %v1027_v40 = vpop.f32.mrf.mxu0 }
 0x3df   :  { %v10195_v30 = vmul.f32 0.17677669, %v1027_v40  ;;  %v10201_v50 = vmul.f32 0.17677669, %v1255_v38 }
 0x3e0   :  { %v8736_v42 = vpop.f32.mrf.mxu0  ;;  %v8751_v44 = vpop.f32.mrf.mxu1 }
 0x3e1   :  { %v1896_v46 = vsel %vm1883_vm3, %v10195_v30, -inf  ;;  %v1905_v56 = vsel %vm1883_vm3, %v10201_v50, -inf }
 0x3e2   :  { %1897 = vmax.xlane.f32.xlu0 %v1896_v46  ;;  %v1103_v47 = vpop.f32.mrf.mxu0 }
 0x3e3   :  { %v10199_v25 = vmul.f32 0.17677669, %v1103_v47 }
 0x3e4   :  { %v8741_v48 = vpop.f32.mrf.mxu0 }
 0x3e5   :  { %v1899_v51 = vsel %vm1883_vm3, %v10199_v25, -inf }
 0x3e6   :  { %1900 = vmax.xlane.f32.xlu1 %v1899_v51  ;;  %v1179_v52 = vpop.f32.mrf.mxu0 }
 0x3e7   :  { %v10205_v41 = vmul.f32 0.17677669, %v1179_v52 }
 0x3e8   :  { %v8746_v55 = vpop.f32.mrf.mxu0 }
 0x3e9   :  { %v1902_v57 = vsel %vm1883_vm3, %v10205_v41, -inf }
 0x3ea   :  { %1906 = vmax.xlane.f32.xlu1 %v1905_v56  ;;  %1903 = vmax.xlane.f32.xlu0 %v1902_v57 }
 0x425   :  { %v1331_v59 = vpop.f32.mrf.mxu0 }
 0x426   :  { %v10211_v60 = vmul.f32 0.17677669, %v1331_v59 }
 0x427   :  { %v8756_v43 = vpop.f32.mrf.mxu0 }
 0x428   :  { %v1908_v61 = vsel %vm1883_vm3, %v10211_v60, -inf }
 0x429   :  { %v1407_v63 = vpop.f32.mrf.mxu1  ;;  %1909 = vmax.xlane.f32.xlu0 %v1908_v61 }
 0x42a   :  { %v10215_v0 = vmul.f32 0.17677669, %v1407_v63 }
 0x42b   :  { %v8761_v1 = vpop.f32.mrf.mxu1 }
 0x42c   :  { %v1911_v2 = vsel %vm1883_vm3, %v10215_v0, -inf }
 0x42d   :  { %1912 = vmax.xlane.f32.xlu1 %v1911_v2  ;;  %v1483_v5 = vpop.f32.mrf.mxu0 }
 0x42e   :  { %v10219_v6 = vmul.f32 0.17677669, %v1483_v5 }
 0x42f   :  { %v8766_v8 = vpop.f32.mrf.mxu0 }
 0x430   :  { %v1914_v9 = vsel %vm1883_vm3, %v10219_v6, -inf }
 0x431   :  { %v1559_v15 = vpop.f32.mrf.mxu1  ;;  %1915 = vmax.xlane.f32.xlu0 %v1914_v9 }
 0x432   :  { %v10223_v13 = vmul.f32 0.17677669, %v1559_v15 }
 0x433   :  { %v8771_v21 = vpop.f32.mrf.mxu1 }
 0x434   :  { %v1917_v24 = vsel %vm1883_vm3, %v10223_v13, -inf }
 0x435   :  { %1918 = vmax.xlane.f32.xlu1 %v1917_v24  ;;  %v1635_v26 = vpop.f32.mrf.mxu0 }
 0x436   :  { %v10227_v27 = vmul.f32 0.17677669, %v1635_v26 }
 0x437   :  { %v8776_v31 = vpop.f32.mrf.mxu0 }
 0x438   :  { %v1920_v32 = vsel %vm1883_vm3, %v10227_v27, -inf }
 0x439   :  { %v1711_v16 = vpop.f32.mrf.mxu1  ;;  %1921 = vmax.xlane.f32.xlu0 %v1920_v32 }
 0x43a   :  { %v10231_v35 = vmul.f32 0.17677669, %v1711_v16 }
 0x43b   :  { %v8781_v37 = vpop.f32.mrf.mxu1 }
 0x43c   :  { %v1923_v38 = vsel %vm1883_vm3, %v10231_v35, -inf }
 0x43d   :  { %1924 = vmax.xlane.f32.xlu1 %v1923_v38  ;;  %v1787_v40 = vpop.f32.mrf.mxu0 }
 0x43e   :  { %v10235_v42 = vmul.f32 0.17677669, %v1787_v40 }
 0x43f   :  { %v8786_v44 = vpop.f32.mrf.mxu0 }
 0x440   :  { %v1926_v46 = vsel %vm1883_vm3, %v10235_v42, -inf }
 0x441   :  { %v1863_v47 = vpop.f32.mrf.mxu1  ;;  %1927 = vmax.xlane.f32.xlu0 %v1926_v46 }
 0x442   :  { %v10257_v26 = vmul.f32 0.17677669, %v1863_v47 }
 0x443   :  { %v8791_v48 = vpop.f32.mrf.mxu1 }
 0x444   :  { %v1929_v16 = vsel %vm1883_vm3, %v10257_v26, -inf }
 0x44e   :  { %629 = vrot.lane.b32.xlu1 %v10168_v10, %s9623_s27 }
 0x452   :  { %631 = vrot.lane.b32.xlu1 %v9994_v23, %s9623_s27 }
 0x456   :  { %633 = vrot.lane.b32.xlu1 %v10001_v28, %s9623_s27 }
 0x457   :  { %627 = vrot.lane.b32.xlu0 %v10157_v7, %s9623_s27 }
 0x45b   :  { %v1886_v51 = vpop.xlane.xlu0 %1885 }
 0x45c   :  { %v1932_v52 = vsub.f32 %v10177_v12, %v1886_v51 }
 0x45e   :  { %v1948_v55 = vmul.f32 1.442695, %v1932_v52 }
 0x45f   :  { %v1889_v56 = vpop.xlane.xlu1 %1888 }
 0x460   :  { %9308 = vpow2.f32 %v1948_v55  ;;  %v1933_v10 = vsub.f32 %v10181_v22, %v1889_v56 }
 0x462   :  { %v1950_v63 = vmul.f32 1.442695, %v1933_v10 }
 0x463   :  { %v1892_v57 = vpop.xlane.xlu0 %1891 }
 0x464   :  { %v1934_v59 = vsub.f32 %v10185_v29, %v1892_v57 }
 0x466   :  { %v1952_v43 = vmul.f32 1.442695, %v1934_v59 }
 0x467   :  { %v1895_v61 = vpop.xlane.xlu0 %1894 }
 0x468   :  { %9310 = vpow2.f32 %v1952_v43  ;;  %v1935_v1 = vsub.f32 %v10189_v20, %v1895_v61 }
 0x469   :  { %9312 = vpow2.f32 %v1950_v63 }
 0x46a   :  { %v1954_v5 = vmul.f32 1.442695, %v1935_v1 }
 0x46b   :  { %v1898_v2 = vpop.xlane.xlu0 %1897 }
 0x46c   :  { %v1936_v7 = vsub.f32 %v10195_v30, %v1898_v2 }
 0x46d   :  { %v10253_v29 = vpop.eup %9308 }
 0x46e   :  { %v1956_v12 = vmul.f32 1.442695, %v1936_v7  ;;  %v1980_v30 = vsel %vm1883_vm3, %v10253_v29, 0.0 }
 0x46f   :  { %v1901_v8 = vpop.xlane.xlu1 %1900 }
 0x470   :  { %9314 = vpow2.f32 %v1956_v12  ;;  %v1937_v9 = vsub.f32 %v10199_v25, %v1901_v8 }
 0x471   :  { %9316 = vpow2.f32 %v1954_v5 }
 0x472   :  { %v1958_v22 = vmul.f32 1.442695, %v1937_v9 }
 0x473   :  { %v1907_v15 = vpop.xlane.xlu1 %1906  ;;  %v1904_v21 = vpop.xlane.xlu0 %1903 }
 0x474   :  { %v1939_v24 = vsub.f32 %v10201_v50, %v1907_v15  ;;  %v1938_v20 = vsub.f32 %v10205_v41, %v1904_v21  ;;  %9318 = vpow2.f32 %v1958_v22 }
 0x475   :  { %v10261_v31 = vpop.eup %9310 }
 0x476   :  { %v1962_v32 = vmul.f32 1.442695, %v1939_v24  ;;  %v1960_v25 = vmul.f32 1.442695, %v1938_v20  ;;  %1981 = vadd.xlane.f32.xlu0 %v1980_v30  ;;  %v1986_v50 = vsel %vm1883_vm3, %v10261_v31, 0.0  ;;  %v10267_v41 = vpop.eup %9312 }
 0x477   :  { %v1983_v38 = vsel %vm1883_vm3, %v10267_v41, 0.0 }
 0x478   :  { %9320 = vpow2.f32 %v1962_v32 }
 0x479   :  { %9322 = vpow2.f32 %v1960_v25 }
 0x47a   :  { %1930 = vmax.xlane.f32.xlu1 %v1929_v16  ;;  %1987 = vadd.xlane.f32.xlu0 %v1986_v50 }
 0x47d   :  { %v10269_v37 = vpop.eup %9314 }
 0x47e   :  { %v10273_v40 = vpop.eup %9316  ;;  %1984 = vadd.xlane.f32.xlu1 %v1983_v38  ;;  %v1992_v44 = vsel %vm1883_vm3, %v10269_v37, 0.0 }
 0x47f   :  { %1993 = vadd.xlane.f32.xlu0 %v1992_v44  ;;  %v1989_v46 = vsel %vm1883_vm3, %v10273_v40, 0.0 }
 0x481   :  { %v10279_v47 = vpop.eup %9318 }
 0x482   :  { %1990 = vadd.xlane.f32.xlu1 %v1989_v46  ;;  %v1995_v51 = vsel %vm1883_vm3, %v10279_v47, 0.0 }
 0x485   :  { %v10281_v48 = vpop.eup %9320 }
 0x486   :  { %v10285_v52 = vpop.eup %9322  ;;  %1996 = vadd.xlane.f32.xlu1 %v1995_v51  ;;  %v2001_v56 = vsel %vm1883_vm3, %v10281_v48, 0.0 }
 0x487   :  { %v1998_v55 = vsel %vm1883_vm3, %v10285_v52, 0.0 }
 0x488   :  { %1999 = vadd.xlane.f32.xlu0 %v1998_v55 }
 0x48a   :  { %2002 = vadd.xlane.f32.xlu1 %v2001_v56 }
 0x4b2   :  { %v1910_v57 = vpop.xlane.xlu0 %1909 }
 0x4b3   :  { %v1940_v59 = vsub.f32 %v10211_v60, %v1910_v57 }
 0x4b5   :  { %v1964_v10 = vmul.f32 1.442695, %v1940_v59 }
 0x4b6   :  { %v1913_v43 = vpop.xlane.xlu1 %1912 }
 0x4b7   :  { %9324 = vpow2.f32 %v1964_v10  ;;  %v1941_v61 = vsub.f32 %v10215_v0, %v1913_v43 }
 0x4b9   :  { %v1966_v63 = vmul.f32 1.442695, %v1941_v61 }
 0x4ba   :  { %v1916_v1 = vpop.xlane.xlu0 %1915 }
 0x4bb   :  { %9326 = vpow2.f32 %v1966_v63  ;;  %v1942_v2 = vsub.f32 %v10219_v6, %v1916_v1 }
 0x4bd   :  { %v1968_v7 = vmul.f32 1.442695, %v1942_v2 }
 0x4be   :  { %v1919_v6 = vpop.xlane.xlu1 %1918 }
 0x4bf   :  { %9328 = vpow2.f32 %v1968_v7  ;;  %v1943_v22 = vsub.f32 %v10223_v13, %v1919_v6 }
 0x4c1   :  { %v1970_v20 = vmul.f32 1.442695, %v1943_v22 }
 0x4c2   :  { %v1922_v15 = vpop.xlane.xlu0 %1921 }
 0x4c3   :  { %v1944_v24 = vsub.f32 %v10227_v27, %v1922_v15  ;;  %9330 = vpow2.f32 %v1970_v20 }
 0x4c4   :  { %v10294_v5 = vpop.eup %9324 }
 0x4c5   :  { %v2004_v12 = vsel %vm1883_vm3, %v10294_v5, 0.0  ;;  %v1972_v25 = vmul.f32 1.442695, %v1944_v24 }
 0x4c6   :  { %2005 = vadd.xlane.f32.xlu0 %v2004_v12  ;;  %v1925_v21 = vpop.xlane.xlu1 %1924 }
 0x4c7   :  { %v1945_v30 = vsub.f32 %v10231_v35, %v1925_v21  ;;  %9332 = vpow2.f32 %v1972_v25 }
 0x4c8   :  { %v10298_v8 = vpop.eup %9326 }
 0x4c9   :  { %v2007_v60 = vsel %vm1883_vm3, %v10298_v8, 0.0  ;;  %v1974_v16 = vmul.f32 1.442695, %v1945_v30 }
 0x4ca   :  { %2008 = vadd.xlane.f32.xlu1 %v2007_v60  ;;  %v1928_v32 = vpop.xlane.xlu0 %1927  ;;  %v10314_v44 = vpop.permute.xlu1 %629 }
 0x4cb   :  { %v1946_v50 = vsub.f32 %v10235_v42, %v1928_v32  ;;  %9334 = vpow2.f32 %v1974_v16 }
 0x4cc   :  { %v10302_v0 = vpop.eup %9328 }
 0x4cd   :  { %v2010_v9 = vsel %vm1883_vm3, %v10302_v0, 0.0  ;;  %v1976_v38 = vmul.f32 1.442695, %v1946_v50 }
 0x4ce   :  { %2011 = vadd.xlane.f32.xlu0 %v2010_v9  ;;  %v10316_v13 = vpop.permute.xlu1 %631  ;;  %v10320_v27 = vpop.permute.xlu0 %627 }
 0x4cf   :  { %9336 = vpow2.f32 %v1976_v38 }
 0x4d0   :  { %v10318_v46 = vpop.eup %9330 }
 0x4d1   :  { %v2013_v35 = vsel %vm1883_vm3, %v10318_v46, 0.0 }
 0x4d2   :  { %v10328_v42 = vpop.permute.xlu1 %633 }
 0x4d4   :  { %v10322_v51 = vpop.eup %9332 }
 0x4d5   :  { %v2016_v59 = vsel %vm1883_vm3, %v10322_v51, 0.0 }
 0x4d8   :  { %v10326_v55 = vpop.eup %9334 }
 0x4d9   :  { %v2019_v57 = vsel %vm1883_vm3, %v10326_v55, 0.0 }
 0x4db   :  { %637 = vrot.lane.b32.xlu1 %v10019_v34, %s9623_s27 }
 0x4dc   :  { %v10334_v10 = vpop.eup %9336 }
 0x4dd   :  { %v2022_v2 = vsel %vm1883_vm3, %v10334_v10, 0.0 }
 0x4e4   :  { %635 = vrot.lane.b32.xlu0 %v10008_v17, %s9623_s27 }
 0x4ff   :  { %2014 = vadd.xlane.f32.xlu1 %v2013_v35  ;;  %v1982_v56 = vpop.xlane.xlu0 %1981 }
 0x500   :  { %9338 = vrcp.f32 %v1982_v56 }
 0x503   :  { %v1931_v43 = vpop.xlane.xlu1 %1930  ;;  %2020 = vadd.xlane.f32.xlu1 %v2019_v57  ;;  %2017 = vadd.xlane.f32.xlu0 %v2016_v59  ;;  %v1988_v61 = vpop.xlane.xlu0 %1987 }
 0x504   :  { %v1947_v63 = vsub.f32 %v10257_v26, %v1931_v43  ;;  %9340 = vrcp.f32 %v1988_v61 }
 0x506   :  { %v1978_v1 = vmul.f32 1.442695, %v1947_v63 }
 0x507   :  { %v1985_v7 = vpop.xlane.xlu1 %1984  ;;  %2023 = vadd.xlane.f32.xlu0 %v2022_v2 }
 0x508   :  { %9342 = vpow2.f32 %v1978_v1  ;;  %v1994_v12 = vpop.xlane.xlu0 %1993 }
 0x509   :  { %9344 = vrcp.f32 %v1985_v7  ;;  %v3230_v7 = vld [vmem:[%s11843_s8 + $0x10] sm:$0xff] }
 0x50a   :  { %9346 = vrcp.f32 %v1994_v12  ;;  %v3229_v12 = vld [vmem:[%s11843_s8 + $0x8] sm:$0xff] }
 0x50b   :  { %v1991_v60 = vpop.xlane.xlu1 %1990 }
 0x50c   :  { %9348 = vrcp.f32 %v1991_v60  ;;  %v3235_v60 = vld [vmem:[%s11843_s8 + $0x38] sm:$0xff] }
 0x50d   :  { %v9339_v9 = vpop.eup %9338 }
 0x50e   :  { %v2044_v6 = vmul.f32 %v9339_v9, %v10253_v29 }
 0x50f   :  { %v1997_v22 = vpop.xlane.xlu1 %1996 }
 0x510   :  { %9350 = vrcp.f32 %v1997_v22  ;;  %8795 = vmatmul.mubr.msk.f32.vlgmr.msra.gmra.mxu0 %vm1883_vm3, %v2044_v6 }
 0x511   :  { %v9341_v26 = vpop.eup %9340  ;;  %8803 = vmatpush3.msra.mxu0 %v9994_v23  ;;  %v2000_v15 = vpop.xlane.xlu0 %1999  ;;  %8804 = vmatprep.mubr.msk.f32.mxu0 %vm9624_vm2, %v9622_v14 }
 0x512   :  { %9352 = vrcp.f32 %v2000_v15  ;;  %8812 = vmatprep.subr.mxu0 %v9622_v14  ;;  %v2046_v21 = vmul.f32 %v9341_v26, %v10261_v31  ;;  %v3234_v26 = vld [vmem:[%s11843_s8 + $0x30] sm:$0xff]  ;;  %v3233_v15 = vld [vmem:[%s11843_s8 + $0x28] sm:$0xff] }
 0x513   :  { %v2003_v24 = vpop.xlane.xlu1 %2002 }
 0x514   :  { %9354 = vrcp.f32 %v2003_v24  ;;  %8805 = vmatmul.mubr.msk.f32.vlgmr.msra.gmra.mxu0 %vm1883_vm3, %v2046_v21  ;;  %v3232_v21 = vld [vmem:[%s11843_s8 + $0x20] sm:$0xff] }
 0x515   :  { %v10347_v29 = vpop.eup %9342  ;;  %8813 = vmatpush3.msra.mxu0 %v10008_v17  ;;  %8814 = vmatprep.mubr.msk.f32.mxu0 %vm9624_vm2, %v9622_v14 }
 0x516   :  { %v9345_v23 = vpop.eup %9344  ;;  %v2025_v20 = vsel %vm1883_vm3, %v10347_v29, 0.0  ;;  %8822 = vmatprep.subr.mxu0 %v9622_v14 }
 0x517   :  { %v9347_v30 = vpop.eup %9346  ;;  %2026 = vadd.xlane.f32.xlu1 %v2025_v20  ;;  %v2045_v31 = vmul.f32 %v9345_v23, %v10267_v41 }
 0x518   :  { %v2048_v32 = vmul.f32 %v9347_v30, %v10269_v37 }
 0x519   :  { %v9349_v25 = vpop.eup %9348  ;;  %8800 = vmatmul.mubr.msk.f32.vlgmr.msra.gmra.mxu1 %vm1883_vm3, %v2045_v31 }
 0x51a   :  { %8808 = vmatpush3.msra.mxu1 %v10001_v28  ;;  %8815 = vmatmul.mubr.msk.f32.vlgmr.msra.gmra.mxu0 %vm1883_vm3, %v2048_v32  ;;  %v2047_v17 = vmul.f32 %v9349_v25, %v10273_v40  ;;  %v593_v40 = vadd.f32 %v10191_v19, %v9989_v18 }
 0x51b   :  { %8823 = vmatpush3.msra.mxu0 %v10026_v39  ;;  %8809 = vmatprep.mubr.msk.f32.mxu1 %vm9624_vm2, %v9622_v14 }
 0x51c   :  { %8817 = vmatprep.subr.mxu1 %v9622_v14  ;;  %8824 = vmatprep.mubr.msk.f32.mxu0 %vm9624_vm2, %v9622_v14 }
 0x51d   :  { %v9351_v41 = vpop.eup %9350  ;;  %8810 = vmatmul.mubr.msk.f32.vlgmr.msra.gmra.mxu1 %vm1883_vm3, %v2047_v17  ;;  %639 = vrot.lane.b32.xlu0 %v10026_v39, %s9623_s27 }
 0x51e   :  { %8818 = vmatpush3.msra.mxu1 %v10019_v34  ;;  %8819 = vmatprep.mubr.msk.f32.mxu1 %vm9624_vm2, %v9622_v14  ;;  %v2049_v28 = vmul.f32 %v9351_v41, %v10279_v47 }
 0x51f   :  { %v9353_v37 = vpop.eup %9352  ;;  %8827 = vmatprep.subr.mxu1 %v9622_v14  ;;  %8832 = vmatprep.subr.mxu0 %v9622_v14 }
 0x520   :  { %v2050_v16 = vmul.f32 %v9353_v37, %v10285_v52 }
 0x521   :  { %v9355_v50 = vpop.eup %9354  ;;  %8820 = vmatmul.mubr.msk.f32.vlgmr.msra.gmra.mxu1 %vm1883_vm3, %v2049_v28 }
 0x522   :  { %8828 = vmatpush3.msra.mxu1 %v593_v40  ;;  %8825 = vmatmul.mubr.msk.f32.vlgmr.msra.gmra.mxu0 %vm1883_vm3, %v2050_v16  ;;  %v2051_v34 = vmul.f32 %v9355_v50, %v10281_v48 }
 0x523   :  { %8833 = vmatpush3.msra.mxu0 %v10320_v27  ;;  %8829 = vmatprep.mubr.msk.f32.mxu1 %vm9624_vm2, %v9622_v14 }
 0x524   :  { %8837 = vmatprep.subr.mxu1 %v9622_v14  ;;  %8834 = vmatprep.mubr.msk.f32.mxu0 %vm9624_vm2, %v9622_v14 }
 0x525   :  { %8830 = vmatmul.mubr.msk.f32.vlgmr.msra.gmra.mxu1 %vm1883_vm3, %v2051_v34  ;;  %8842 = vmatprep.subr.mxu0 %v9622_v14 }
 0x526   :  { %8838 = vmatpush3.msra.mxu1 %v10314_v44  ;;  %8839 = vmatprep.mubr.msk.f32.mxu1 %vm9624_vm2, %v9622_v14 }
 0x527   :  { %8847 = vmatprep.subr.mxu1 %v9622_v14 }
 0x528   :  { %641 = vrot.lane.b32.xlu1 %v593_v40, %s9623_s27 }
 0x54f   :  { %v2006_v18 = vpop.xlane.xlu0 %2005 }
 0x550   :  { %9356 = vrcp.f32 %v2006_v18 }
 0x553   :  { %v2009_v39 = vpop.xlane.xlu1 %2008 }
 0x554   :  { %9358 = vrcp.f32 %v2009_v39 }
 0x557   :  { %v2012_v19 = vpop.xlane.xlu0 %2011 }
 0x558   :  { %9360 = vrcp.f32 %v2012_v19 }
 0x55d   :  { %v9357_v47 = vpop.eup %9356 }
 0x55e   :  { %v2052_v48 = vmul.f32 %v9357_v47, %v10294_v5 }
 0x560   :  { %8835 = vmatmul.mubr.msk.f32.vlgmr.msra.gmra.mxu0 %vm1883_vm3, %v2052_v48 }
 0x561   :  { %v9359_v52 = vpop.eup %9358  ;;  %8843 = vmatpush3.msra.mxu0 %v10316_v13  ;;  %8844 = vmatprep.mubr.msk.f32.mxu0 %vm9624_vm2, %v9622_v14  ;;  %v636_v13 = vpop.permute.xlu0 %635 }
 0x562   :  { %v2053_v38 = vmul.f32 %v9359_v52, %v10298_v8  ;;  %8852 = vmatprep.subr.mxu0 %v9622_v14  ;;  %v638_v8 = vpop.permute.xlu1 %637 }
 0x564   :  { %8840 = vmatmul.mubr.msk.f32.vlgmr.msra.gmra.mxu1 %vm1883_vm3, %v2053_v38 }
 0x565   :  { %v9361_v44 = vpop.eup %9360  ;;  %8848 = vmatpush3.msra.mxu1 %v10328_v42  ;;  %8849 = vmatprep.mubr.msk.f32.mxu1 %vm9624_vm2, %v9622_v14 }
 0x566   :  { %v2054_v5 = vmul.f32 %v9361_v44, %v10302_v0  ;;  %8857 = vmatprep.subr.mxu1 %v9622_v14 }
 0x568   :  { %8845 = vmatmul.mubr.msk.f32.vlgmr.msra.gmra.mxu0 %vm1883_vm3, %v2054_v5 }
 0x569   :  { %8853 = vmatpush3.msra.mxu0 %v636_v13  ;;  %8854 = vmatprep.mubr.msk.f32.mxu0 %vm9624_vm2, %v9622_v14 }
 0x56a   :  { %8862 = vmatprep.subr.mxu0 %v9622_v14 }
 0x588   :  { %v2015_v27 = vpop.xlane.xlu1 %2014 }
 0x589   :  { %9362 = vrcp.f32 %v2015_v27 }
 0x58c   :  { %v2021_v35 = vpop.xlane.xlu1 %2020  ;;  %v2018_v42 = vpop.xlane.xlu0 %2017 }
 0x58d   :  { %9364 = vrcp.f32 %v2021_v35 }
 0x58e   :  { %9366 = vrcp.f32 %v2018_v42 }
 0x590   :  { %v2024_v56 = vpop.xlane.xlu0 %2023 }
 0x591   :  { %9368 = vrcp.f32 %v2024_v56 }
 0x594   :  { %v640_v2 = vpop.permute.xlu0 %639 }
 0x596   :  { %v9363_v0 = vpop.eup %9362 }
 0x597   :  { %v2055_v57 = vmul.f32 %v9363_v0, %v10318_v46  ;;  %v3231_v46 = vld [vmem:[%s11843_s8 + $0x18] sm:$0xff] }
 0x599   :  { %8850 = vmatmul.mubr.msk.f32.vlgmr.msra.gmra.mxu1 %vm1883_vm3, %v2055_v57 }
 0x59a   :  { %v9365_v59 = vpop.eup %9364  ;;  %8858 = vmatpush3.msra.mxu1 %v638_v8  ;;  %8859 = vmatprep.mubr.msk.f32.mxu1 %vm9624_vm2, %v9622_v14 }
 0x59b   :  { %v9367_v43 = vpop.eup %9366  ;;  %v2057_v61 = vmul.f32 %v9365_v59, %v10326_v55  ;;  %8867 = vmatprep.subr.mxu1 %v9622_v14 }
 0x59c   :  { %v2056_v63 = vmul.f32 %v9367_v43, %v10322_v51 }
 0x59d   :  { %8860 = vmatmul.mubr.msk.f32.vlgmr.msra.gmra.mxu1 %vm1883_vm3, %v2057_v61 }
 0x59e   :  { %v9369_v1 = vpop.eup %9368  ;;  %8855 = vmatmul.mubr.msk.f32.vlgmr.msra.gmra.mxu0 %vm1883_vm3, %v2056_v63  ;;  %8869 = vmatprep.mubr.msk.f32.mxu1 %vm9624_vm2, %v9622_v14 }
 0x59f   :  { %8863 = vmatpush3.msra.mxu0 %v640_v2  ;;  %8864 = vmatprep.mubr.msk.f32.mxu0 %vm9624_vm2, %v9622_v14  ;;  %v2058_v55 = vmul.f32 %v9369_v1, %v10334_v10  ;;  %v3228_v10 = vld [vmem:[%s11843_s8] sm:$0xff] }
 0x5a0   :  { %v2027_v51 = vpop.xlane.xlu1 %2026  ;;  %8872 = vmatprep.subr.mxu0 %v3231_v46 }
 0x5a1   :  { %9370 = vrcp.f32 %v2027_v51 }
 0x5a2   :  { %8865 = vmatmul.mubr.msk.f32.vlgmr.msra.gmra.mxu0 %vm1883_vm3, %v2058_v55 }
 0x5a3   :  { %8873 = vmatpush3.msra.mxu0 %v3231_v46  ;;  %v10474_v46 = vld [vmem:[%s11844_s9] ss:$0 sm:$0xff] }
 0x5a4   :  { %v642_v9 = vpop.permute.xlu1 %641  ;;  %8874 = vmatprep.subr.mxu0 %v3230_v7 }
 0x5a5   :  { %8868 = vmatpush3.msra.mxu1 %v642_v9  ;;  %8875 = vmatpush3.msra.mxu0 %v3230_v7 }
 0x5a6   :  { %8876 = vmatprep.subr.mxu0 %v3229_v12  ;;  %8892 = vmatprep.subr.mxu1 %v3235_v60 }
 0x5a7   :  { %8877 = vmatpush3.msra.mxu0 %v3229_v12 }
 0x5a8   :  { %8878 = vmatprep.subr.mxu0 %v3228_v10 }
 0x5a9   :  { %8879 = vmatpush3.msra.mxu0 %v3228_v10 }
 0x5ae   :  { %v9371_v6 = vpop.eup %9370 }
 0x5af   :  { %v2059_v22 = vmul.f32 %v9371_v6, %v10347_v29 }
 0x5b1   :  { %8870 = vmatmul.mubr.msk.f32.vlgmr.msra.gmra.mxu1 %vm1883_vm3, %v2059_v22 }
 0x5b2   :  { %8893 = vmatpush3.msra.mxu1 %v3235_v60 }
 0x5b3   :  { %8894 = vmatprep.subr.mxu1 %v3234_v26 }
 0x5b4   :  { %8895 = vmatpush3.msra.mxu1 %v3234_v26 }
 0x5b5   :  { %8896 = vmatprep.subr.mxu1 %v3233_v15 }
 0x5b6   :  { %8897 = vmatpush3.msra.mxu1 %v3233_v15 }
 0x5b7   :  { %8898 = vmatprep.subr.mxu1 %v3232_v21 }
 0x5b8   :  { %8899 = vmatpush3.msra.mxu1 %v3232_v21 }
 0x5d0   :  { %v2129_v24 = vpop.f32.mrf.mxu0 }
 0x5d1   :  { %8880 = vmatprep.mubr.msk.f32.mxu0 %vm131_vm0, %v2129_v24  ;;  %v3705_v24 = vld [vmem:[%s11847_s12 + $0x30] sm:$0xff] }
 0x5d2   :  { %v8796_v29 = vpop.f32.mrf.mxu0 }
 0x5d4   :  { %v2275_v23 = vpop.f32.mrf.mxu0 }
 0x5d6   :  { %v8806_v20 = vpop.f32.mrf.mxu0 }
 0x5d7   :  { %v3703_v20 = vld [vmem:[%s11847_s12 + $0x20] sm:$0xff] }
 0x5d9   :  { %v2202_v30 = vpop.f32.mrf.mxu1 }
 0x5da   :  { %v2421_v31 = vpop.f32.mrf.mxu0  ;;  %8881 = vmatmul.mubr.msk.f32.vlgmr.msra.gmra.mxu0 %vm131_vm0, %v2202_v30  ;;  %v3702_v30 = vld [vmem:[%s11847_s12 + $0x18] sm:$0xff] }
 0x5db   :  { %v8801_v32 = vpop.f32.mrf.mxu1  ;;  %8883 = vmatprep.mubr.msk.f32.mxu0 %vm131_vm0, %v2275_v23  ;;  %v3704_v23 = vld [vmem:[%s11847_s12 + $0x28] sm:$0xff] }
 0x5dc   :  { %v8816_v25 = vpop.f32.mrf.mxu0  ;;  %v3701_v32 = vld [vmem:[%s11847_s12 + $0x10] sm:$0xff] }
 0x5dd   :  { %v2348_v17 = vpop.f32.mrf.mxu1 }
 0x5de   :  { %8884 = vmatmul.mubr.msk.f32.gmra.mxu0 %vm131_vm0, %v2348_v17  ;;  %v3700_v17 = vld [vmem:[%s11847_s12 + $0x8] sm:$0xff] }
 0x5df   :  { %v8811_v41 = vpop.f32.mrf.mxu1  ;;  %8886 = vmatprep.mubr.msk.f32.mxu0 %vm131_vm0, %v2421_v31 }
 0x5e1   :  { %v2494_v28 = vpop.f32.mrf.mxu1 }
 0x5e2   :  { %v2567_v37 = vpop.f32.mrf.mxu0  ;;  %8887 = vmatmul.mubr.msk.f32.gmra.mxu0 %vm131_vm0, %v2494_v28 }
 0x5e3   :  { %v8821_v40 = vpop.f32.mrf.mxu1  ;;  %8889 = vmatprep.mubr.msk.f32.mxu0 %vm131_vm0, %v2567_v37 }
 0x5e4   :  { %v8826_v16 = vpop.f32.mrf.mxu0 }
 0x5e5   :  { %v2640_v50 = vpop.f32.mrf.mxu1 }
 0x5e6   :  { %8890 = vmatmul.mubr.msk.f32.gmra.mxu0 %vm131_vm0, %v2640_v50  ;;  %v3699_v50 = vld [vmem:[%s11847_s12] sm:$0xff] }
 0x5e7   :  { %v8831_v34 = vpop.f32.mrf.mxu1 }
 0x620   :  { %v2713_v18 = vpop.f32.mrf.mxu0 }
 0x621   :  { %8900 = vmatprep.mubr.msk.f32.mxu1 %vm131_vm0, %v2713_v18 }
 0x622   :  { %v8836_v39 = vpop.f32.mrf.mxu0 }
 0x624   :  { %v2786_v19 = vpop.f32.mrf.mxu1 }
 0x625   :  { %8901 = vmatmul.mubr.msk.f32.vlgmr.msra.gmra.mxu1 %vm131_vm0, %v2786_v19 }
 0x626   :  { %v8841_v47 = vpop.f32.mrf.mxu1 }
 0x628   :  { %v2859_v48 = vpop.f32.mrf.mxu0 }
 0x629   :  { %8903 = vmatprep.mubr.msk.f32.mxu1 %vm131_vm0, %v2859_v48 }
 0x62a   :  { %v8846_v52 = vpop.f32.mrf.mxu0 }
 0x659   :  { %v2932_v38 = vpop.f32.mrf.mxu1 }
 0x65a   :  { %8904 = vmatmul.mubr.msk.f32.gmra.mxu1 %vm131_vm0, %v2932_v38 }
 0x65b   :  { %v8851_v44 = vpop.f32.mrf.mxu1 }
 0x65d   :  { %v3078_v5 = vpop.f32.mrf.mxu1 }
 0x65e   :  { %v3005_v13 = vpop.f32.mrf.mxu0 }
 0x65f   :  { %8906 = vmatprep.mubr.msk.f32.mxu1 %vm131_vm0, %v3005_v13  ;;  %v8861_v8 = vpop.f32.mrf.mxu1 }
 0x660   :  { %v8856_v27 = vpop.f32.mrf.mxu0  ;;  %8907 = vmatmul.mubr.msk.f32.gmra.mxu1 %vm131_vm0, %v3078_v5 }
 0x662   :  { %v3151_v35 = vpop.f32.mrf.mxu0 }
 0x663   :  { %8909 = vmatprep.mubr.msk.f32.mxu1 %vm131_vm0, %v3151_v35 }
 0x664   :  { %v8866_v42 = vpop.f32.mrf.mxu0 }
 0x671   :  { %v3224_v56 = vpop.f32.mrf.mxu1 }
 0x672   :  { %8910 = vmatmul.mubr.msk.f32.gmra.mxu1 %vm131_vm0, %v3224_v56 }
 0x673   :  { %v8871_v0 = vpop.f32.mrf.mxu1 }
 0x69a   :  { %v8882_v57 = vpop.f32.mrf.mxu0 }
 0x69b   :  { %v3497_v61 = vsel %vm272_vm1, %v8882_v57, 0.0 }
 0x69c   :  { %v3326_v59 = vpop.f32.mrf.mxu0 }
 0x69d   :  { %v3494_v55 = vsel %vm272_vm1, %v3326_v59, 0.0 }
 0x69e   :  { %v8885_v29 = vpop.f32.mrf.mxu0 }
 0x69f   :  { %v3503_v41 = vsel %vm272_vm1, %v8885_v29, 0.0 }
 0x6a0   :  { %v3336_v31 = vpop.f32.mrf.mxu0 }
 0x6a1   :  { %v3500_v34 = vsel %vm272_vm1, %v3336_v31, 0.0 }
 0x6a2   :  { %v8888_v37 = vpop.f32.mrf.mxu0 }
 0x6a3   :  { %v3509_v44 = vsel %vm272_vm1, %v8888_v37, 0.0 }
 0x6a4   :  { %v3346_v47 = vpop.f32.mrf.mxu0 }
 0x6a5   :  { %v3506_v56 = vsel %vm272_vm1, %v3346_v47, 0.0 }
 0x6e5   :  { %v8902_v43 = vpop.f32.mrf.mxu1 }
 0x6e6   :  { %v3498_v63 = vsel %vm272_vm1, %v8902_v43, 0.0 }
 0x6e7   :  { %v3499_v1 = vadd.f32 %v3498_v63, %v3497_v61  ;;  %v3455_v2 = vpop.f32.mrf.mxu1 }
 0x6e8   :  { %v3495_v51 = vsel %vm272_vm1, %v3455_v2, 0.0 }
 0x6e9   :  { %v3526_v7 = vadd.f32 %v10474_v46, %v3499_v1  ;;  %v3496_v12 = vadd.f32 %v3495_v51, %v3494_v55 }
 0x6eb   :  { %v3525_v60 = vadd.f32 %v10474_v46, %v3496_v12  ;;  %v10481_v9 = vadd.f32 %v3526_v7, %v9926_v36  ;;  %v8891_v12 = vpop.f32.mrf.mxu0 }
 0x6ed   :  { %v3546_v10 = vsel %vm272_vm1, %v10481_v9, 0.0  ;;  %v10486_v6 = vadd.f32 %v3525_v60, %v9919_v33  ;;  %v3576_v26 = vmul.f32 %v10481_v9, %v10481_v9  ;;  %v3706_v33 = vld [vmem:[%s11847_s12 + $0x38] sm:$0xff] }
 0x6ee   :  { %3547 = vadd.xlane.f32.xlu1 %v3546_v10  ;;  %8912 = vmatprep.subr.mxu0 %v3706_v33  ;;  %v3356_v10 = vpop.f32.mrf.mxu0 }
 0x6ef   :  { %v3543_v22 = vsel %vm272_vm1, %v10486_v6, 0.0  ;;  %v3586_v15 = vsel %vm272_vm1, %v3576_v26, 0.0  ;;  %v3575_v36 = vmul.f32 %v10486_v6, %v10486_v6  ;;  %8913 = vmatpush3.msra.mxu0 %v3706_v33  ;;  %v3515_v26 = vsel %vm272_vm1, %v8891_v12, 0.0 }
 0x6f0   :  { %3544 = vadd.xlane.f32.xlu0 %v3543_v22  ;;  %8914 = vmatprep.subr.mxu0 %v3705_v24  ;;  %v3512_v33 = vsel %vm272_vm1, %v3356_v10, 0.0 }
 0x6f1   :  { %v3583_v21 = vsel %vm272_vm1, %v3575_v36, 0.0  ;;  %8915 = vmatpush3.msra.mxu0 %v3705_v24 }
 0x6f2   :  { %8916 = vmatprep.subr.mxu0 %v3704_v23 }
 0x6f3   :  { %8917 = vmatpush3.msra.mxu0 %v3704_v23 }
 0x6f4   :  { %3587 = vadd.xlane.f32.xlu0 %v3586_v15  ;;  %8918 = vmatprep.subr.mxu0 %v3703_v20 }
 0x6f5   :  { %8919 = vmatpush3.msra.mxu0 %v3703_v20 }
 0x6f6   :  { %8920 = vmatprep.subr.mxu0 %v3702_v30 }
 0x6f7   :  { %8921 = vmatpush3.msra.mxu0 %v3702_v30 }
 0x6f8   :  { %3584 = vadd.xlane.f32.xlu0 %v3583_v21  ;;  %8922 = vmatprep.subr.mxu0 %v3701_v32 }
 0x6f9   :  { %8923 = vmatpush3.msra.mxu0 %v3701_v32 }
 0x6fa   :  { %8924 = vmatprep.subr.mxu0 %v3700_v17 }
 0x6fb   :  { %8925 = vmatpush3.msra.mxu0 %v3700_v17 }
 0x6fc   :  { %8926 = vmatprep.subr.mxu0 %v3699_v50 }
 0x6fd   :  { %8927 = vmatpush3.msra.mxu0 %v3699_v50 }
 0x71a   :  { %v8905_v25 = vpop.f32.mrf.mxu1 }
 0x71b   :  { %v3504_v28 = vsel %vm272_vm1, %v8905_v25, 0.0 }
 0x71c   :  { %v3505_v40 = vadd.f32 %v3504_v28, %v3503_v41  ;;  %v3465_v16 = vpop.f32.mrf.mxu1 }
 0x71d   :  { %v3501_v18 = vsel %vm272_vm1, %v3465_v16, 0.0 }
 0x71e   :  { %v3528_v39 = vadd.f32 %v10474_v46, %v3505_v40  ;;  %v3502_v19 = vadd.f32 %v3501_v18, %v3500_v34 }
 0x720   :  { %v3527_v48 = vadd.f32 %v10474_v46, %v3502_v19  ;;  %v8908_v52 = vpop.f32.mrf.mxu1  ;;  %v10527_v38 = vadd.f32 %v3528_v39, %v9940_v54 }
 0x721   :  { %v3510_v5 = vsel %vm272_vm1, %v8908_v52, 0.0 }
 0x722   :  { %v3511_v13 = vadd.f32 %v3510_v5, %v3509_v44  ;;  %v3475_v8 = vpop.f32.mrf.mxu1  ;;  %v3552_v27 = vsel %vm272_vm1, %v10527_v38, 0.0  ;;  %v10534_v35 = vadd.f32 %v3527_v48, %v9933_v45  ;;  %v3578_v42 = vmul.f32 %v10527_v38, %v10527_v38 }
 0x723   :  { %v3507_v54 = vsel %vm272_vm1, %v3475_v8, 0.0  ;;  %3553 = vadd.xlane.f32.xlu1 %v3552_v27 }
 0x724   :  { %v3530_v0 = vadd.f32 %v10474_v46, %v3511_v13  ;;  %v3508_v57 = vadd.f32 %v3507_v54, %v3506_v56  ;;  %v3549_v59 = vsel %vm272_vm1, %v10534_v35, 0.0  ;;  %v3577_v43 = vmul.f32 %v10534_v35, %v10534_v35  ;;  %v10591_v54 = vld [vmem:[%s11845_s10] ss:$0 sm:$0xff] }
 0x725   :  { %3550 = vadd.xlane.f32.xlu0 %v3549_v59  ;;  %v3592_v61 = vsel %vm272_vm1, %v3578_v42, 0.0 }
 0x726   :  { %v3529_v45 = vadd.f32 %v10474_v46, %v3508_v57  ;;  %v10548_v63 = vadd.f32 %v3530_v0, %v9952_v62  ;;  %v3589_v1 = vsel %vm272_vm1, %v3577_v43, 0.0  ;;  %v10597_v43 = vld [vmem:[%s11846_s11] ss:$0 sm:$0xff] }
 0x727   :  { %3593 = vadd.xlane.f32.xlu1 %v3592_v61 }
 0x728   :  { %v10552_v2 = vadd.f32 %v3529_v45, %v9946_v58  ;;  %v3558_v55 = vsel %vm272_vm1, %v10548_v63, 0.0  ;;  %v3580_v51 = vmul.f32 %v10548_v63, %v10548_v63 }
 0x729   :  { %3590 = vadd.xlane.f32.xlu0 %v3589_v1 }
 0x72a   :  { %v3555_v7 = vsel %vm272_vm1, %v10552_v2, 0.0  ;;  %v3579_v62 = vmul.f32 %v10552_v2, %v10552_v2  ;;  %v3598_v60 = vsel %vm272_vm1, %v3580_v51, 0.0 }
 0x72b   :  { %3559 = vadd.xlane.f32.xlu1 %v3558_v55 }
 0x72c   :  { %v3595_v58 = vsel %vm272_vm1, %v3579_v62, 0.0 }
 0x72d   :  { %3556 = vadd.xlane.f32.xlu0 %v3555_v7 }
 0x72f   :  { %3599 = vadd.xlane.f32.xlu1 %v3598_v60 }
 0x731   :  { %3596 = vadd.xlane.f32.xlu0 %v3595_v58 }
 0x732   :  { %v8911_v22 = vpop.f32.mrf.mxu1 }
 0x733   :  { %v3516_v15 = vsel %vm272_vm1, %v8911_v22, 0.0 }
 0x734   :  { %v3517_v36 = vadd.f32 %v3516_v15, %v3515_v26  ;;  %v3485_v21 = vpop.f32.mrf.mxu1 }
 0x735   :  { %v3513_v24 = vsel %vm272_vm1, %v3485_v21, 0.0 }
 0x736   :  { %v3532_v29 = vadd.f32 %v10474_v46, %v3517_v36  ;;  %v3514_v23 = vadd.f32 %v3513_v24, %v3512_v33 }
 0x738   :  { %v3531_v20 = vadd.f32 %v10474_v46, %v3514_v23  ;;  %v10571_v30 = vadd.f32 %v3532_v29, %v9962_v53 }
 0x73a   :  { %v3564_v31 = vsel %vm272_vm1, %v10571_v30, 0.0  ;;  %v10576_v32 = vadd.f32 %v3531_v20, %v9957_v49  ;;  %v3582_v25 = vmul.f32 %v10571_v30, %v10571_v30 }
 0x73b   :  { %3565 = vadd.xlane.f32.xlu1 %v3564_v31 }
 0x73c   :  { %v3561_v17 = vsel %vm272_vm1, %v10576_v32, 0.0  ;;  %v3581_v41 = vmul.f32 %v10576_v32, %v10576_v32  ;;  %v3604_v53 = vsel %vm272_vm1, %v3582_v25, 0.0 }
 0x73d   :  { %3562 = vadd.xlane.f32.xlu0 %v3561_v17 }
 0x73e   :  { %v3601_v46 = vsel %vm272_vm1, %v3581_v41, 0.0 }
 0x73f   :  { %3605 = vadd.xlane.f32.xlu1 %v3604_v53 }
 0x741   :  { %3602 = vadd.xlane.f32.xlu0 %v3601_v46 }
 0x777   :  { %v3548_v28 = vpop.xlane.xlu1 %3547 }
 0x778   :  { %v3568_v37 = vmul.f32 0.015625, %v3548_v28 }
 0x779   :  { %v3545_v49 = vpop.xlane.xlu0 %3544 }
 0x77a   :  { %v3616_v16 = vmul.f32 %v3568_v37, %v3568_v37  ;;  %v3567_v50 = vmul.f32 0.015625, %v3545_v49  ;;  %v3640_v27 = vsub.f32 %v10481_v9, %v3568_v37 }
 0x77c   :  { %v3615_v19 = vmul.f32 %v3567_v50, %v3567_v50  ;;  %v3639_v56 = vsub.f32 %v10486_v6, %v3567_v50 }
 0x77d   :  { %v3588_v40 = vpop.xlane.xlu0 %3587 }
 0x77e   :  { %v3608_v34 = vmul.f32 0.015625, %v3588_v40 }
 0x780   :  { %v3624_v18 = vsub.f32 %v3608_v34, %v3616_v16 }
 0x781   :  { %v3585_v39 = vpop.xlane.xlu0 %3584 }
 0x782   :  { %v3632_v47 = vmax.f32 %v3624_v18, 0.0  ;;  %v3607_v48 = vmul.f32 0.015625, %v3585_v39 }
 0x784   :  { %v3648_v52 = vadd.f32 1e-12, %v3632_v47  ;;  %v3623_v44 = vsub.f32 %v3607_v48, %v3615_v19 }
 0x786   :  { %9372 = vrsqrt.f32 %v3648_v52  ;;  %v3631_v5 = vmax.f32 %v3623_v44, 0.0 }
 0x788   :  { %v3647_v13 = vadd.f32 1e-12, %v3631_v5 }
 0x78a   :  { %9374 = vrsqrt.f32 %v3647_v13 }
 0x793   :  { %v9373_v8 = vpop.eup %9372 }
 0x794   :  { %v3664_v42 = vmul.f32 %v9373_v8, %v3640_v27 }
 0x796   :  { %v3678_v59 = vmul.f32 %v10591_v54, %v3664_v42 }
 0x797   :  { %v9375_v0 = vpop.eup %9374 }
 0x798   :  { %v3663_v57 = vmul.f32 %v9375_v0, %v3639_v56  ;;  %v10604_v6 = vadd.f32 %v10597_v43, %v3678_v59 }
 0x79a   :  { %v3677_v45 = vmul.f32 %v10591_v54, %v3663_v57 }
 0x79c   :  { %v10601_v9 = vadd.f32 %v10597_v43, %v3677_v45 }
 0x79e   :  { %8928 = vmatprep.mubr.msk.f32.mxu0 %vm272_vm1, %v10601_v9 }
 0x79f   :  { %8929 = vmatmul.mubr.msk.f32.vlgmr.msra.gmra.mxu0 %vm272_vm1, %v10604_v6 }
 0x7ac   :  { %v3554_v61 = vpop.xlane.xlu1 %3553 }
 0x7ad   :  { %v3570_v1 = vmul.f32 0.015625, %v3554_v61 }
 0x7ae   :  { %v3551_v55 = vpop.xlane.xlu0 %3550 }
 0x7af   :  { %v3569_v51 = vmul.f32 0.015625, %v3551_v55  ;;  %v3618_v62 = vmul.f32 %v3570_v1, %v3570_v1  ;;  %v3642_v18 = vsub.f32 %v10527_v38, %v3570_v1 }
 0x7b0   :  { %v3594_v7 = vpop.xlane.xlu1 %3593 }
 0x7b1   :  { %v3610_v12 = vmul.f32 0.015625, %v3594_v7  ;;  %v3617_v58 = vmul.f32 %v3569_v51, %v3569_v51  ;;  %v3641_v48 = vsub.f32 %v10534_v35, %v3569_v51 }
 0x7b2   :  { %v3591_v60 = vpop.xlane.xlu0 %3590 }
 0x7b3   :  { %v3626_v10 = vsub.f32 %v3610_v12, %v3618_v62  ;;  %v3609_v22 = vmul.f32 0.015625, %v3591_v60 }
 0x7b4   :  { %v3560_v26 = vpop.xlane.xlu1 %3559 }
 0x7b5   :  { %v3634_v15 = vmax.f32 %v3626_v10, 0.0  ;;  %v3625_v36 = vsub.f32 %v3609_v22, %v3617_v58  ;;  %v3572_v21 = vmul.f32 0.015625, %v3560_v26 }
 0x7b6   :  { %v3557_v33 = vpop.xlane.xlu0 %3556 }
 0x7b7   :  { %v3650_v24 = vadd.f32 1e-12, %v3634_v15  ;;  %v3633_v29 = vmax.f32 %v3625_v36, 0.0  ;;  %v3571_v23 = vmul.f32 0.015625, %v3557_v33  ;;  %v3620_v25 = vmul.f32 %v3572_v21, %v3572_v21 }
 0x7b8   :  { %v3600_v20 = vpop.xlane.xlu1 %3599  ;;  %v3644_v61 = vsub.f32 %v10548_v63, %v3572_v21 }
 0x7b9   :  { %9376 = vrsqrt.f32 %v3650_v24  ;;  %v3649_v31 = vadd.f32 1e-12, %v3633_v29  ;;  %v3612_v17 = vmul.f32 0.015625, %v3600_v20  ;;  %v3619_v53 = vmul.f32 %v3571_v23, %v3571_v23 }
 0x7ba   :  { %v3597_v41 = vpop.xlane.xlu0 %3596  ;;  %v3643_v62 = vsub.f32 %v10552_v2, %v3571_v23 }
 0x7bb   :  { %9378 = vrsqrt.f32 %v3649_v31  ;;  %v3628_v46 = vsub.f32 %v3612_v17, %v3620_v25  ;;  %v3611_v28 = vmul.f32 0.015625, %v3597_v41  ;;  %v3930_v17 = vld [vmem:[%s11849_s14 + $0x78] sm:$0xff] }
 0x7bc   :  { %8940 = vmatprep.subr.mxu1 %v3930_v17 }
 0x7bd   :  { %v3636_v49 = vmax.f32 %v3628_v46, 0.0  ;;  %v3627_v37 = vsub.f32 %v3611_v28, %v3619_v53  ;;  %8941 = vmatpush3.msra.mxu1 %v3930_v17  ;;  %v3926_v53 = vld [vmem:[%s11849_s14 + $0x58] sm:$0xff]  ;;  %v3925_v46 = vld [vmem:[%s11849_s14 + $0x50] sm:$0xff]  ;;  %v3924_v28 = vld [vmem:[%s11849_s14 + $0x48] sm:$0xff] }
 0x7bf   :  { %v3652_v40 = vadd.f32 1e-12, %v3636_v49  ;;  %v3635_v16 = vmax.f32 %v3627_v37, 0.0  ;;  %v3923_v49 = vld [vmem:[%s11849_s14 + $0x40] sm:$0xff]  ;;  %v3922_v37 = vld [vmem:[%s11849_s14 + $0x38] sm:$0xff] }
 0x7c1   :  { %9380 = vrsqrt.f32 %v3652_v40  ;;  %v3651_v50 = vadd.f32 1e-12, %v3635_v16  ;;  %v3921_v40 = vld [vmem:[%s11849_s14 + $0x30] sm:$0xff]  ;;  %v3920_v16 = vld [vmem:[%s11849_s14 + $0x28] sm:$0xff] }
 0x7c3   :  { %9382 = vrsqrt.f32 %v3651_v50  ;;  %v3919_v50 = vld [vmem:[%s11849_s14 + $0x20] sm:$0xff] }
 0x7c4   :  { %v3566_v34 = vpop.xlane.xlu1 %3565 }
 0x7c5   :  { %v3574_v39 = vmul.f32 0.015625, %v3566_v34  ;;  %v3918_v34 = vld [vmem:[%s11849_s14 + $0x18] sm:$0xff] }
 0x7c6   :  { %v9377_v19 = vpop.eup %9376  ;;  %v3563_v47 = vpop.xlane.xlu0 %3562 }
 0x7c7   :  { %v3573_v52 = vmul.f32 0.015625, %v3563_v47  ;;  %v3666_v44 = vmul.f32 %v9377_v19, %v3642_v18  ;;  %v3622_v8 = vmul.f32 %v3574_v39, %v3574_v39  ;;  %v3646_v21 = vsub.f32 %v10571_v30, %v3574_v39  ;;  %v3917_v18 = vld [vmem:[%s11849_s14 + $0x10] sm:$0xff]  ;;  %v3916_v39 = vld [vmem:[%s11849_s14 + $0x8] sm:$0xff]  ;;  %v3915_v19 = vld [vmem:[%s11849_s14] sm:$0xff] }
 0x7c8   :  { %v9379_v5 = vpop.eup %9378  ;;  %v3606_v13 = vpop.xlane.xlu1 %3605  ;;  %v10705_v47 = vld [vmem:[%s11848_s13] ss:$0 sm:$0xff] }
 0x7c9   :  { %v3614_v27 = vmul.f32 0.015625, %v3606_v13  ;;  %v3665_v42 = vmul.f32 %v9379_v5, %v3641_v48  ;;  %v3680_v0 = vmul.f32 %v10591_v54, %v3666_v44  ;;  %v3621_v57 = vmul.f32 %v3573_v52, %v3573_v52 }
 0x7ca   :  { %v3603_v56 = vpop.xlane.xlu0 %3602  ;;  %v3645_v24 = vsub.f32 %v10576_v32, %v3573_v52  ;;  %v3929_v32 = vld [vmem:[%s11849_s14 + $0x70] sm:$0xff] }
 0x7cb   :  { %v3630_v59 = vsub.f32 %v3614_v27, %v3622_v8  ;;  %v3613_v45 = vmul.f32 0.015625, %v3603_v56  ;;  %v3679_v38 = vmul.f32 %v10591_v54, %v3665_v42  ;;  %v10619_v7 = vadd.f32 %v10597_v43, %v3680_v0  ;;  %8942 = vmatprep.subr.mxu1 %v3929_v32 }
 0x7cc   :  { %8943 = vmatpush3.msra.mxu1 %v3929_v32 }
 0x7cd   :  { %v3638_v1 = vmax.f32 %v3630_v59, 0.0  ;;  %v3629_v55 = vsub.f32 %v3613_v45, %v3621_v57  ;;  %v10616_v35 = vadd.f32 %v10597_v43, %v3679_v38 }
 0x7ce   :  { %v9381_v51 = vpop.eup %9380 }
 0x7cf   :  { %v3654_v12 = vadd.f32 1e-12, %v3638_v1  ;;  %v3637_v60 = vmax.f32 %v3629_v55, 0.0  ;;  %8931 = vmatprep.mubr.msk.f32.mxu0 %vm272_vm1, %v10616_v35  ;;  %v3668_v58 = vmul.f32 %v9381_v51, %v3644_v61 }
 0x7d0   :  { %v9383_v10 = vpop.eup %9382  ;;  %8932 = vmatmul.mubr.msk.f32.gmra.mxu0 %vm272_vm1, %v10619_v7 }
 0x7d1   :  { %9384 = vrsqrt.f32 %v3654_v12  ;;  %v3653_v63 = vadd.f32 1e-12, %v3637_v60  ;;  %v3667_v22 = vmul.f32 %v9383_v10, %v3643_v62  ;;  %v3682_v26 = vmul.f32 %v10591_v54, %v3668_v58 }
 0x7d3   :  { %9386 = vrsqrt.f32 %v3653_v63  ;;  %v3681_v15 = vmul.f32 %v10591_v54, %v3667_v22  ;;  %v10632_v36 = vadd.f32 %v10597_v43, %v3682_v26 }
 0x7d5   :  { %v10629_v2 = vadd.f32 %v10597_v43, %v3681_v15 }
 0x7d7   :  { %8934 = vmatprep.mubr.msk.f32.mxu0 %vm272_vm1, %v10629_v2 }
 0x7d8   :  { %8935 = vmatmul.mubr.msk.f32.gmra.mxu0 %vm272_vm1, %v10632_v36 }
 0x7de   :  { %v9385_v33 = vpop.eup %9384 }
 0x7df   :  { %v3670_v29 = vmul.f32 %v9385_v33, %v3646_v21 }
 0x7e0   :  { %v9387_v23 = vpop.eup %9386 }
 0x7e1   :  { %v3669_v20 = vmul.f32 %v9387_v23, %v3645_v24  ;;  %v3684_v31 = vmul.f32 %v10591_v54, %v3670_v29 }
 0x7e3   :  { %v3683_v25 = vmul.f32 %v10591_v54, %v3669_v20  ;;  %v10649_v30 = vadd.f32 %v10597_v43, %v3684_v31  ;;  %v3928_v54 = vld [vmem:[%s11849_s14 + $0x68] sm:$0xff] }
 0x7e4   :  { %8944 = vmatprep.subr.mxu1 %v3928_v54 }
 0x7e5   :  { %v10646_v41 = vadd.f32 %v10597_v43, %v3683_v25  ;;  %8945 = vmatpush3.msra.mxu1 %v3928_v54  ;;  %v3927_v43 = vld [vmem:[%s11849_s14 + $0x60] sm:$0xff] }
 0x7e6   :  { %8946 = vmatprep.subr.mxu1 %v3927_v43 }
 0x7e7   :  { %8937 = vmatprep.mubr.msk.f32.mxu0 %vm272_vm1, %v10646_v41  ;;  %8947 = vmatpush3.msra.mxu1 %v3927_v43 }
 0x7e8   :  { %8938 = vmatmul.mubr.msk.f32.gmra.mxu0 %vm272_vm1, %v10649_v30  ;;  %8948 = vmatprep.subr.mxu1 %v3926_v53 }
 0x7e9   :  { %4327 = vmatprep.mubr.f32.mxu0 %v9622_v14  ;;  %8949 = vmatpush3.msra.mxu1 %v3926_v53 }
 0x7ea   :  { %8950 = vmatprep.subr.mxu1 %v3925_v46 }
 0x7eb   :  { %8951 = vmatpush3.msra.mxu1 %v3925_v46 }
 0x7ec   :  { %8952 = vmatprep.subr.mxu1 %v3924_v28 }
 0x7ed   :  { %8953 = vmatpush3.msra.mxu1 %v3924_v28 }
 0x7ee   :  { %8954 = vmatprep.subr.mxu1 %v3923_v49 }
 0x7ef   :  { %8955 = vmatpush3.msra.mxu1 %v3923_v49 }
 0x7f0   :  { %8956 = vmatprep.subr.mxu1 %v3922_v37 }
 0x7f1   :  { %8957 = vmatpush3.msra.mxu1 %v3922_v37 }
 0x7f2   :  { %8958 = vmatprep.subr.mxu1 %v3921_v40 }
 0x7f3   :  { %8959 = vmatpush3.msra.mxu1 %v3921_v40 }
 0x7f4   :  { %8960 = vmatprep.subr.mxu1 %v3920_v16 }
 0x7f5   :  { %8961 = vmatpush3.msra.mxu1 %v3920_v16 }
 0x7f6   :  { %8962 = vmatprep.subr.mxu1 %v3919_v50 }
 0x7f7   :  { %8963 = vmatpush3.msra.mxu1 %v3919_v50 }
 0x7f8   :  { %8964 = vmatprep.subr.mxu1 %v3918_v34 }
 0x7f9   :  { %8965 = vmatpush3.msra.mxu1 %v3918_v34 }
 0x7fa   :  { %8966 = vmatprep.subr.mxu1 %v3917_v18 }
 0x7fb   :  { %8967 = vmatpush3.msra.mxu1 %v3917_v18 }
 0x7fc   :  { %8968 = vmatprep.subr.mxu1 %v3916_v39 }
 0x7fd   :  { %8969 = vmatpush3.msra.mxu1 %v3916_v39 }
 0x7fe   :  { %8970 = vmatprep.subr.mxu1 %v3915_v19 }
 0x7ff   :  { %8971 = vmatpush3.msra.mxu1 %v3915_v19 }
 0x800   :  { %8984 = vmatprep.subr.mxu1 %v9622_v14 }
 0x85f   :  { %v8930_v48 = vpop.f32.mrf.mxu0 }
 0x860   :  { %v3810_v52 = vadd.f32 %v8930_v48, %v10705_v47 }
 0x861   :  { %v3804_v44 = vpop.f32.mrf.mxu0 }
 0x862   :  { %v3844_v5 = vmul.f32 %v3810_v52, %v3810_v52  ;;  %v3805_v13 = vadd.f32 %v10705_v47, %v3804_v44 }
 0x864   :  { %v3852_v8 = vmul.f32 %v3844_v5, %v3810_v52  ;;  %v3843_v27 = vmul.f32 %v3805_v13, %v3805_v13 }
 0x866   :  { %v3860_v42 = vmul.f32 0.044715, %v3852_v8  ;;  %v3851_v56 = vmul.f32 %v3843_v27, %v3805_v13 }
 0x868   :  { %v3868_v0 = vadd.f32 %v3860_v42, %v3810_v52  ;;  %v3859_v57 = vmul.f32 0.044715, %v3851_v56 }
 0x86a   :  { %v3876_v59 = vmul.f32 0.7978846, %v3868_v0  ;;  %v3867_v45 = vadd.f32 %v3859_v57, %v3805_v13 }
 0x86c   :  { %9388 = vtanh.f32 %v3876_v59  ;;  %v3875_v38 = vmul.f32 0.7978846, %v3867_v45 }
 0x86e   :  { %9390 = vtanh.f32 %v3875_v38 }
 0x879   :  { %v9389_v61 = vpop.eup %9388 }
 0x87a   :  { %v3892_v1 = vadd.f32 1.0, %v9389_v61 }
 0x87b   :  { %v9391_v55 = vpop.eup %9390 }
 0x87c   :  { %v3891_v51 = vadd.f32 1.0, %v9391_v55  ;;  %v3900_v62 = vmul.f32 0.5, %v3892_v1 }
 0x87e   :  { %v3899_v12 = vmul.f32 0.5, %v3891_v51  ;;  %v3908_v58 = vmul.f32 %v3900_v62, %v3810_v52 }
 0x880   :  { %v3907_v60 = vmul.f32 %v3899_v12, %v3805_v13 }
 0x882   :  { %8972 = vmatprep.mubr.f32.mxu1 %v3907_v60 }
 0x883   :  { %8973 = vmatmul.mubr.f32.vlgmr.msra.gmra.mxu1 %v3908_v58 }
 0x890   :  { %v8933_v10 = vpop.f32.mrf.mxu0 }
 0x891   :  { %v3820_v63 = vadd.f32 %v8933_v10, %v10705_v47 }
 0x892   :  { %v3814_v22 = vpop.f32.mrf.mxu0 }
 0x893   :  { %v3846_v26 = vmul.f32 %v3820_v63, %v3820_v63  ;;  %v3815_v15 = vadd.f32 %v10705_v47, %v3814_v22 }
 0x895   :  { %v3854_v21 = vmul.f32 %v3846_v26, %v3820_v63  ;;  %v3845_v33 = vmul.f32 %v3815_v15, %v3815_v15 }
 0x897   :  { %v3862_v24 = vmul.f32 0.044715, %v3854_v21  ;;  %v3853_v29 = vmul.f32 %v3845_v33, %v3815_v15 }
 0x898   :  { %v8936_v23 = vpop.f32.mrf.mxu0 }
 0x899   :  { %v3870_v20 = vadd.f32 %v3862_v24, %v3820_v63  ;;  %v3861_v31 = vmul.f32 0.044715, %v3853_v29  ;;  %v3830_v25 = vadd.f32 %v8936_v23, %v10705_v47 }
 0x89a   :  { %v3824_v17 = vpop.f32.mrf.mxu0 }
 0x89b   :  { %v3878_v32 = vmul.f32 0.7978846, %v3870_v20  ;;  %v3869_v54 = vadd.f32 %v3861_v31, %v3815_v15  ;;  %v3848_v43 = vmul.f32 %v3830_v25, %v3830_v25  ;;  %v3825_v53 = vadd.f32 %v10705_v47, %v3824_v17 }
 0x89d   :  { %9392 = vtanh.f32 %v3878_v32  ;;  %v3877_v46 = vmul.f32 0.7978846, %v3869_v54  ;;  %v3856_v28 = vmul.f32 %v3848_v43, %v3830_v25  ;;  %v3847_v49 = vmul.f32 %v3825_v53, %v3825_v53  ;;  %v10720_v54 = vld [vmem:[%s11850_s15] ss:$0 sm:$0xff] }
 0x89f   :  { %9394 = vtanh.f32 %v3877_v46  ;;  %v3864_v37 = vmul.f32 0.044715, %v3856_v28  ;;  %v3855_v40 = vmul.f32 %v3847_v49, %v3825_v53 }
 0x8a1   :  { %v3872_v16 = vadd.f32 %v3864_v37, %v3830_v25  ;;  %v3863_v50 = vmul.f32 0.044715, %v3855_v40 }
 0x8a3   :  { %v3880_v34 = vmul.f32 0.7978846, %v3872_v16  ;;  %v3871_v18 = vadd.f32 %v3863_v50, %v3825_v53 }
 0x8a5   :  { %9396 = vtanh.f32 %v3880_v34  ;;  %v3879_v39 = vmul.f32 0.7978846, %v3871_v18  ;;  %v8271_v34 = vld [vmem:[%s11841_s6 + $0xf8] sm:$0xff]  ;;  %v8270_v18 = vld [vmem:[%s11841_s6 + $0xf0] sm:$0xff] }
 0x8a6   :  { %4279 = vmatprep.subr.mxu0 %v8271_v34 }
 0x8a7   :  { %9398 = vtanh.f32 %v3879_v39  ;;  %4280 = vmatpush1.msra.mxu0 %v8270_v18  ;;  %v8269_v39 = vld [vmem:[%s11841_s6 + $0xe8] sm:$0xff] }
 0x8a8   :  { %v8939_v19 = vpop.f32.mrf.mxu0  ;;  %4281 = vmatprep.subr.mxu0 %v8269_v39 }
 0x8a9   :  { %v3840_v48 = vadd.f32 %v8939_v19, %v10705_v47  ;;  %v8268_v19 = vld [vmem:[%s11841_s6 + $0xe0] sm:$0xff] }
 0x8aa   :  { %v9393_v52 = vpop.eup %9392  ;;  %v3834_v44 = vpop.f32.mrf.mxu0  ;;  %4282 = vmatpush1.msra.mxu0 %v8268_v19 }
 0x8ab   :  { %v3850_v5 = vmul.f32 %v3840_v48, %v3840_v48  ;;  %v3835_v13 = vadd.f32 %v10705_v47, %v3834_v44  ;;  %v3894_v8 = vadd.f32 1.0, %v9393_v52  ;;  %v8266_v52 = vld [vmem:[%s11841_s6 + $0xd0] sm:$0xff]  ;;  %v8265_v44 = vld [vmem:[%s11841_s6 + $0xc8] sm:$0xff] }
 0x8ac   :  { %v9395_v27 = vpop.eup %9394 }
 0x8ad   :  { %v3858_v42 = vmul.f32 %v3850_v5, %v3840_v48  ;;  %v3849_v56 = vmul.f32 %v3835_v13, %v3835_v13  ;;  %v3893_v0 = vadd.f32 1.0, %v9395_v27  ;;  %v3902_v57 = vmul.f32 0.5, %v3894_v8  ;;  %v8264_v5 = vld [vmem:[%s11841_s6 + $0xc0] sm:$0xff]  ;;  %v8262_v8 = vld [vmem:[%s11841_s6 + $0xb0] sm:$0xff]  ;;  %v8261_v27 = vld [vmem:[%s11841_s6 + $0xa8] sm:$0xff] }
 0x8af   :  { %v3866_v59 = vmul.f32 0.044715, %v3858_v42  ;;  %v3857_v45 = vmul.f32 %v3849_v56, %v3835_v13  ;;  %v3901_v38 = vmul.f32 0.5, %v3893_v0  ;;  %v3910_v62 = vmul.f32 %v3902_v57, %v3820_v63  ;;  %v8260_v42 = vld [vmem:[%s11841_s6 + $0xa0] sm:$0xff]  ;;  %v8259_v56 = vld [vmem:[%s11841_s6 + $0x98] sm:$0xff]  ;;  %v8258_v0 = vld [vmem:[%s11841_s6 + $0x90] sm:$0xff] }
 0x8b0   :  { %v8257_v57 = vld [vmem:[%s11841_s6 + $0x88] sm:$0xff] }
 0x8b1   :  { %v3874_v61 = vadd.f32 %v3866_v59, %v3840_v48  ;;  %v3865_v1 = vmul.f32 0.044715, %v3857_v45  ;;  %v3909_v55 = vmul.f32 %v3901_v38, %v3815_v15  ;;  %v8256_v59 = vld [vmem:[%s11841_s6 + $0x80] sm:$0xff] }
 0x8b2   :  { %v9397_v51 = vpop.eup %9396 }
 0x8b3   :  { %v3882_v12 = vmul.f32 0.7978846, %v3874_v61  ;;  %v3873_v60 = vadd.f32 %v3865_v1, %v3835_v13  ;;  %8975 = vmatprep.mubr.f32.mxu1 %v3909_v55  ;;  %v3896_v58 = vadd.f32 1.0, %v9397_v51 }
 0x8b4   :  { %v9399_v10 = vpop.eup %9398  ;;  %8976 = vmatmul.mubr.f32.gmra.mxu1 %v3910_v62 }
 0x8b5   :  { %9400 = vtanh.f32 %v3882_v12  ;;  %v3881_v47 = vmul.f32 0.7978846, %v3873_v60  ;;  %v3895_v22 = vadd.f32 1.0, %v9399_v10  ;;  %v3904_v26 = vmul.f32 0.5, %v3896_v58 }
 0x8b7   :  { %9402 = vtanh.f32 %v3881_v47  ;;  %v3903_v21 = vmul.f32 0.5, %v3895_v22  ;;  %v3912_v24 = vmul.f32 %v3904_v26, %v3830_v25 }
 0x8b9   :  { %v3911_v33 = vmul.f32 %v3903_v21, %v3825_v53 }
 0x8bb   :  { %8978 = vmatprep.mubr.f32.mxu1 %v3911_v33 }
 0x8bc   :  { %8979 = vmatmul.mubr.f32.gmra.mxu1 %v3912_v24 }
 0x8c2   :  { %v9401_v29 = vpop.eup %9400 }
 0x8c3   :  { %v3898_v15 = vadd.f32 1.0, %v9401_v29 }
 0x8c4   :  { %v9403_v23 = vpop.eup %9402 }
 0x8c5   :  { %v3897_v63 = vadd.f32 1.0, %v9403_v23  ;;  %v3906_v20 = vmul.f32 0.5, %v3898_v15 }
 0x8c7   :  { %v3905_v31 = vmul.f32 0.5, %v3897_v63  ;;  %v3914_v32 = vmul.f32 %v3906_v20, %v3840_v48  ;;  %v8267_v48 = vld [vmem:[%s11841_s6 + $0xd8] sm:$0xff] }
 0x8c8   :  { %4283 = vmatprep.subr.mxu0 %v8267_v48 }
 0x8c9   :  { %v3913_v17 = vmul.f32 %v3905_v31, %v3835_v13  ;;  %4284 = vmatpush1.msra.mxu0 %v8266_v52  ;;  %v8263_v13 = vld [vmem:[%s11841_s6 + $0xb8] sm:$0xff] }
 0x8ca   :  { %4285 = vmatprep.subr.mxu0 %v8265_v44 }
 0x8cb   :  { %8981 = vmatprep.mubr.f32.mxu1 %v3913_v17  ;;  %4286 = vmatpush1.msra.mxu0 %v8264_v5 }
 0x8cc   :  { %8982 = vmatmul.mubr.f32.gmra.mxu1 %v3914_v32  ;;  %4287 = vmatprep.subr.mxu0 %v8263_v13 }
 0x8cd   :  { %8986 = vmatprep.mubr.msk.f32.mxu1 %vm9624_vm2, %v9622_v14  ;;  %4288 = vmatpush1.msra.mxu0 %v8262_v8 }
 0x8ce   :  { %4289 = vmatprep.subr.mxu0 %v8261_v27 }
 0x8cf   :  { %4290 = vmatpush1.msra.mxu0 %v8260_v42 }
 0x8d0   :  { %4291 = vmatprep.subr.mxu0 %v8259_v56  ;;  %v10847_v56 = vld [vmem:[%s11851_s16] ss:$0 sm:$0xff] }
 0x8d1   :  { %4292 = vmatpush1.msra.mxu0 %v8258_v0 }
 0x8d2   :  { %4293 = vmatprep.subr.mxu0 %v8257_v57  ;;  %v10852_v57 = vld [vmem:[%s11852_s17] ss:$0 sm:$0xff] }
 0x8d3   :  { %4294 = vmatpush1.msra.mxu0 %v8256_v59 }
 0x8d4   :  { %9004 = vmatprep.subr.mxu0 %v9622_v14 }
 0x943   :  { %v8974_v25 = vpop.f32.mrf.mxu1 }
 0x944   :  { %v4010_v43 = vadd.f32 %v8974_v25, %v10720_v54 }
 0x945   :  { %v4004_v53 = vpop.f32.mrf.mxu1 }
 0x946   :  { %v4005_v46 = vadd.f32 %v10720_v54, %v4004_v53  ;;  %v10725_v28 = vadd.f32 %v4010_v43, %v10604_v6 }
 0x948   :  { %v10728_v49 = vadd.f32 %v4005_v46, %v10601_v9  ;;  %v4086_v50 = vmul.f32 %v10725_v28, %v10725_v28  ;;  %v4056_v6 = vsel %vm272_vm1, %v10725_v28, 0.0 }
 0x94a   :  { %v4053_v37 = vsel %vm272_vm1, %v10728_v49, 0.0  ;;  %v4085_v40 = vmul.f32 %v10728_v49, %v10728_v49  ;;  %v4096_v9 = vsel %vm272_vm1, %v4086_v50, 0.0 }
 0x94b   :  { %4054 = vadd.xlane.f32.xlu0 %v4053_v37 }
 0x94c   :  { %v4093_v16 = vsel %vm272_vm1, %v4085_v40, 0.0 }
 0x94d   :  { %4094 = vadd.xlane.f32.xlu1 %v4093_v16 }
 0x94f   :  { %4057 = vadd.xlane.f32.xlu0 %v4056_v6 }
 0x951   :  { %4097 = vadd.xlane.f32.xlu1 %v4096_v9 }
 0x974   :  { %v8977_v45 = vpop.f32.mrf.mxu1 }
 0x975   :  { %v4020_v38 = vadd.f32 %v8977_v45, %v10720_v54 }
 0x976   :  { %v4014_v61 = vpop.f32.mrf.mxu1 }
 0x977   :  { %v4015_v1 = vadd.f32 %v10720_v54, %v4014_v61  ;;  %v10792_v55 = vadd.f32 %v4020_v38, %v10619_v7 }
 0x979   :  { %v10795_v51 = vadd.f32 %v4015_v1, %v10616_v35  ;;  %v4088_v47 = vmul.f32 %v10792_v55, %v10792_v55  ;;  %v4062_v22 = vsel %vm272_vm1, %v10792_v55, 0.0 }
 0x97b   :  { %v4059_v62 = vsel %vm272_vm1, %v10795_v51, 0.0  ;;  %v4087_v12 = vmul.f32 %v10795_v51, %v10795_v51  ;;  %v4102_v33 = vsel %vm272_vm1, %v4088_v47, 0.0 }
 0x97c   :  { %v8980_v60 = vpop.f32.mrf.mxu1  ;;  %4060 = vadd.xlane.f32.xlu0 %v4059_v62 }
 0x97d   :  { %v4030_v58 = vadd.f32 %v8980_v60, %v10720_v54  ;;  %v4099_v10 = vsel %vm272_vm1, %v4087_v12, 0.0 }
 0x97e   :  { %v4024_v7 = vpop.f32.mrf.mxu1  ;;  %4100 = vadd.xlane.f32.xlu1 %v4099_v10 }
 0x97f   :  { %v4025_v35 = vadd.f32 %v10720_v54, %v4024_v7  ;;  %v10809_v26 = vadd.f32 %v4030_v58, %v10632_v36 }
 0x980   :  { %4063 = vadd.xlane.f32.xlu0 %v4062_v22 }
 0x981   :  { %v10812_v21 = vadd.f32 %v4025_v35, %v10629_v2  ;;  %v4090_v23 = vmul.f32 %v10809_v26, %v10809_v26  ;;  %v4068_v2 = vsel %vm272_vm1, %v10809_v26, 0.0 }
 0x982   :  { %4103 = vadd.xlane.f32.xlu1 %v4102_v33 }
 0x983   :  { %v4065_v24 = vsel %vm272_vm1, %v10812_v21, 0.0  ;;  %v4089_v29 = vmul.f32 %v10812_v21, %v10812_v21  ;;  %v4108_v36 = vsel %vm272_vm1, %v4090_v23, 0.0 }
 0x984   :  { %4066 = vadd.xlane.f32.xlu0 %v4065_v24 }
 0x985   :  { %v4105_v15 = vsel %vm272_vm1, %v4089_v29, 0.0 }
 0x986   :  { %4106 = vadd.xlane.f32.xlu1 %v4105_v15 }
 0x988   :  { %4069 = vadd.xlane.f32.xlu0 %v4068_v2 }
 0x98a   :  { %4109 = vadd.xlane.f32.xlu1 %v4108_v36 }
 0x98c   :  { %v8983_v63 = vpop.f32.mrf.mxu1 }
 0x98d   :  { %v4040_v20 = vadd.f32 %v8983_v63, %v10720_v54 }
 0x98e   :  { %v4034_v31 = vpop.f32.mrf.mxu1 }
 0x98f   :  { %v4035_v17 = vadd.f32 %v10720_v54, %v4034_v31  ;;  %v10828_v32 = vadd.f32 %v4040_v20, %v10649_v30 }
 0x991   :  { %v10831_v25 = vadd.f32 %v4035_v17, %v10646_v41  ;;  %v4092_v37 = vmul.f32 %v10828_v32, %v10828_v32  ;;  %v4074_v30 = vsel %vm272_vm1, %v10828_v32, 0.0 }
 0x993   :  { %v4071_v43 = vsel %vm272_vm1, %v10831_v25, 0.0  ;;  %v4091_v53 = vmul.f32 %v10831_v25, %v10831_v25  ;;  %v4114_v41 = vsel %vm272_vm1, %v4092_v37, 0.0 }
 0x994   :  { %4072 = vadd.xlane.f32.xlu0 %v4071_v43 }
 0x995   :  { %v4111_v46 = vsel %vm272_vm1, %v4091_v53, 0.0 }
 0x996   :  { %4112 = vadd.xlane.f32.xlu1 %v4111_v46 }
 0x998   :  { %4075 = vadd.xlane.f32.xlu0 %v4074_v30 }
 0x99a   :  { %4115 = vadd.xlane.f32.xlu1 %v4114_v41 }
 0x9d4   :  { %v4055_v54 = vpop.xlane.xlu0 %4054 }
 0x9d5   :  { %v4077_v40 = vmul.f32 0.015625, %v4055_v54 }
 0x9d6   :  { %v4095_v16 = vpop.xlane.xlu1 %4094 }
 0x9d7   :  { %v4125_v50 = vmul.f32 %v4077_v40, %v4077_v40  ;;  %v4117_v6 = vmul.f32 0.015625, %v4095_v16  ;;  %v4149_v27 = vsub.f32 %v10728_v49, %v4077_v40 }
 0x9d8   :  { %v4058_v9 = vpop.xlane.xlu0 %4057 }
 0x9d9   :  { %v4133_v34 = vsub.f32 %v4117_v6, %v4125_v50  ;;  %v4078_v18 = vmul.f32 0.015625, %v4058_v9 }
 0x9da   :  { %v4098_v39 = vpop.xlane.xlu1 %4097 }
 0x9db   :  { %v4141_v19 = vmax.f32 %v4133_v34, 0.0  ;;  %v4126_v48 = vmul.f32 %v4078_v18, %v4078_v18  ;;  %v4118_v52 = vmul.f32 0.015625, %v4098_v39  ;;  %v4150_v59 = vsub.f32 %v10725_v28, %v4078_v18 }
 0x9dd   :  { %v4157_v44 = vadd.f32 1e-12, %v4141_v19  ;;  %v4134_v5 = vsub.f32 %v4118_v52, %v4126_v48 }
 0x9df   :  { %9404 = vrsqrt.f32 %v4157_v44  ;;  %v4142_v13 = vmax.f32 %v4134_v5, 0.0 }
 0x9e1   :  { %v4158_v8 = vadd.f32 1e-12, %v4142_v13 }
 0x9e3   :  { %9406 = vrsqrt.f32 %v4158_v8 }
 0x9ec   :  { %v9405_v42 = vpop.eup %9404 }
 0x9ed   :  { %v4173_v0 = vmul.f32 %v9405_v42, %v4149_v27 }
 0x9ef   :  { %v4187_v45 = vmul.f32 %v10847_v56, %v4173_v0 }
 0x9f0   :  { %v9407_v38 = vpop.eup %9406 }
 0x9f1   :  { %v10857_v61 = vadd.f32 %v10852_v57, %v4187_v45  ;;  %v4174_v49 = vmul.f32 %v9407_v38, %v4150_v59 }
 0x9f3   :  { %8273 = vmatmul.mubr.msk.f32.vlgmr.msra.gmra.mxu0 %vm272_vm1, %v10857_v61  ;;  %v4188_v1 = vmul.f32 %v10847_v56, %v4174_v49 }
 0x9f4   :  { %4333 = vmatprep.mubr.f32.mxu0 %v9622_v14 }
 0x9f5   :  { %v10864_v62 = vadd.f32 %v10852_v57, %v4188_v1 }
 0x9f7   :  { %8274 = vmatmul.mubr.msk.f32.gmra.mxu0 %vm272_vm1, %v10864_v62 }
 0x9f8   :  { %4339 = vmatprep.mubr.f32.mxu0 %v9622_v14 }
 0xa05   :  { %v4061_v28 = vpop.xlane.xlu0 %4060 }
 0xa06   :  { %v4079_v12 = vmul.f32 0.015625, %v4061_v28 }
 0xa07   :  { %v4101_v60 = vpop.xlane.xlu1 %4100 }
 0xa08   :  { %v4127_v58 = vmul.f32 %v4079_v12, %v4079_v12  ;;  %v4119_v10 = vmul.f32 0.015625, %v4101_v60  ;;  %v4151_v34 = vsub.f32 %v10795_v51, %v4079_v12 }
 0xa09   :  { %v4064_v47 = vpop.xlane.xlu0 %4063 }
 0xa0a   :  { %v4135_v7 = vsub.f32 %v4119_v10, %v4127_v58  ;;  %v4080_v35 = vmul.f32 0.015625, %v4064_v47 }
 0xa0b   :  { %v4104_v22 = vpop.xlane.xlu1 %4103 }
 0xa0c   :  { %v4143_v33 = vmax.f32 %v4135_v7, 0.0  ;;  %v4128_v24 = vmul.f32 %v4080_v35, %v4080_v35  ;;  %v4120_v29 = vmul.f32 0.015625, %v4104_v22  ;;  %v4152_v44 = vsub.f32 %v10792_v55, %v4080_v35 }
 0xa0d   :  { %v4067_v15 = vpop.xlane.xlu0 %4066 }
 0xa0e   :  { %v4159_v23 = vadd.f32 1e-12, %v4143_v33  ;;  %v4136_v2 = vsub.f32 %v4120_v29, %v4128_v24  ;;  %v4081_v36 = vmul.f32 0.015625, %v4067_v15 }
 0xa0f   :  { %v4107_v63 = vpop.xlane.xlu1 %4106 }
 0xa10   :  { %9408 = vrsqrt.f32 %v4159_v23  ;;  %v4144_v20 = vmax.f32 %v4136_v2, 0.0  ;;  %v4129_v31 = vmul.f32 %v4081_v36, %v4081_v36  ;;  %v4121_v17 = vmul.f32 0.015625, %v4107_v63 }
 0xa11   :  { %v4070_v43 = vpop.xlane.xlu0 %4069  ;;  %v4153_v55 = vsub.f32 %v10812_v21, %v4081_v36 }
 0xa12   :  { %v4160_v53 = vadd.f32 1e-12, %v4144_v20  ;;  %v4082_v46 = vmul.f32 0.015625, %v4070_v43  ;;  %v4137_v37 = vsub.f32 %v4121_v17, %v4129_v31 }
 0xa13   :  { %v4110_v30 = vpop.xlane.xlu1 %4109 }
 0xa14   :  { %9410 = vrsqrt.f32 %v4160_v53  ;;  %v4130_v41 = vmul.f32 %v4082_v46, %v4082_v46  ;;  %v4122_v54 = vmul.f32 0.015625, %v4110_v30  ;;  %v4145_v40 = vmax.f32 %v4137_v37, 0.0 }
 0xa15   :  { %v4154_v35 = vsub.f32 %v10809_v26, %v4082_v46 }
 0xa16   :  { %v4138_v16 = vsub.f32 %v4122_v54, %v4130_v41  ;;  %v4161_v50 = vadd.f32 1e-12, %v4145_v40 }
 0xa18   :  { %v4146_v6 = vmax.f32 %v4138_v16, 0.0  ;;  %9412 = vrsqrt.f32 %v4161_v50 }
 0xa1a   :  { %v4162_v9 = vadd.f32 1e-12, %v4146_v6 }
 0xa1c   :  { %9414 = vrsqrt.f32 %v4162_v9 }
 0xa1d   :  { %v9409_v18 = vpop.eup %9408  ;;  %v4073_v39 = vpop.xlane.xlu0 %4072 }
 0xa1e   :  { %v4083_v19 = vmul.f32 0.015625, %v4073_v39  ;;  %v4175_v48 = vmul.f32 %v9409_v18, %v4151_v34 }
 0xa1f   :  { %v4113_v52 = vpop.xlane.xlu1 %4112 }
 0xa20   :  { %v4131_v5 = vmul.f32 %v4083_v19, %v4083_v19  ;;  %v4123_v13 = vmul.f32 0.015625, %v4113_v52  ;;  %v4189_v8 = vmul.f32 %v10847_v56, %v4175_v48  ;;  %v4155_v2 = vsub.f32 %v10831_v25, %v4083_v19 }
 0xa21   :  { %v9411_v27 = vpop.eup %9410  ;;  %v4076_v42 = vpop.xlane.xlu0 %4075 }
 0xa22   :  { %v4139_v0 = vsub.f32 %v4123_v13, %v4131_v5  ;;  %v4084_v59 = vmul.f32 0.015625, %v4076_v42  ;;  %v10873_v45 = vadd.f32 %v10852_v57, %v4189_v8  ;;  %v4176_v51 = vmul.f32 %v9411_v27, %v4152_v44 }
 0xa23   :  { %v4116_v38 = vpop.xlane.xlu1 %4115 }
 0xa24   :  { %v4147_v49 = vmax.f32 %v4139_v0, 0.0  ;;  %v4132_v1 = vmul.f32 %v4084_v59, %v4084_v59  ;;  %v4124_v28 = vmul.f32 0.015625, %v4116_v38  ;;  %8275 = vmatmul.mubr.msk.f32.gmra.mxu0 %vm272_vm1, %v10873_v45  ;;  %v4190_v12 = vmul.f32 %v10847_v56, %v4176_v51 }
 0xa25   :  { %4345 = vmatprep.mubr.f32.mxu0 %v9622_v14  ;;  %v9413_v60 = vpop.eup %9412  ;;  %v4156_v20 = vsub.f32 %v10828_v32, %v4084_v59  ;;  %v10921_v32 = vld [vmem:[%s11842_s7 + $0x2] sm:$0x3] }
 0xa26   :  { %v4163_v58 = vadd.f32 1e-12, %v4147_v49  ;;  %v4140_v10 = vsub.f32 %v4124_v28, %v4132_v1  ;;  %v10881_v47 = vadd.f32 %v10852_v57, %v4190_v12  ;;  %v4177_v7 = vmul.f32 %v9413_v60, %v4153_v55 }
 0xa28   :  { %9416 = vrsqrt.f32 %v4163_v58  ;;  %v4148_v22 = vmax.f32 %v4140_v10, 0.0  ;;  %8276 = vmatmul.mubr.msk.f32.gmra.mxu0 %vm272_vm1, %v10881_v47  ;;  %v4191_v21 = vmul.f32 %v10847_v56, %v4177_v7 }
 0xa29   :  { %v9415_v33 = vpop.eup %9414  ;;  %4351 = vmatprep.mubr.f32.mxu0 %v9622_v14 }
 0xa2a   :  { %v4164_v24 = vadd.f32 1e-12, %v4148_v22  ;;  %v4178_v29 = vmul.f32 %v9415_v33, %v4154_v35  ;;  %v10889_v15 = vadd.f32 %v10852_v57, %v4191_v21 }
 0xa2c   :  { %9418 = vrsqrt.f32 %v4164_v24  ;;  %v4192_v23 = vmul.f32 %v10847_v56, %v4178_v29  ;;  %8277 = vmatmul.mubr.msk.f32.gmra.mxu0 %vm272_vm1, %v10889_v15 }
 0xa2d   :  { %4357 = vmatprep.mubr.f32.mxu0 %v9622_v14 }
 0xa2e   :  { %v10896_v26 = vadd.f32 %v10852_v57, %v4192_v23 }
 0xa30   :  { %8278 = vmatmul.mubr.msk.f32.gmra.mxu0 %vm272_vm1, %v10896_v26 }
 0xa31   :  { %4363 = vmatprep.mubr.f32.mxu0 %v9622_v14 }
 0xa35   :  { %v9417_v36 = vpop.eup %9416 }
 0xa36   :  { %v4179_v63 = vmul.f32 %v9417_v36, %v4155_v2 }
 0xa38   :  { %v4193_v31 = vmul.f32 %v10847_v56, %v4179_v63  ;;  %v11079_v63 = vrot.slane %v10921_v32, %v454_v11 }
 0xa39   :  { %v9419_v17 = vpop.eup %9418 }
 0xa3a   :  { %v10905_v43 = vadd.f32 %v10852_v57, %v4193_v31  ;;  %v4180_v53 = vmul.f32 %v9419_v17, %v4156_v20 }
 0xa3c   :  { %8279 = vmatmul.mubr.msk.f32.gmra.mxu0 %vm272_vm1, %v10905_v43  ;;  %v4194_v46 = vmul.f32 %v10847_v56, %v4180_v53  ;;  %v4232_v56 = vrot.slane %v10921_v32, %v450_v4 }
 0xa3d   :  { %4369 = vmatprep.mubr.f32.mxu0 %v9622_v14 }
 0xa3e   :  { %v10912_v25 = vadd.f32 %v10852_v57, %v4194_v46 }
 0xa40   :  { %8280 = vmatmul.mubr.msk.f32.gmra.mxu0 %vm272_vm1, %v10912_v25 }
 0xa41   :  { %9006 = vmatprep.mubr.msk.f32.mxu0 %vm9624_vm2, %v9622_v14 }
 0xab3   :  { %v4329_v37 = vpop.f32.mrf.mxu0 }
 0xab4   :  { %v4330_v30 = vadd.f32 %v4329_v37, %v4232_v56 }
 0xab5   :  { %v10926_v41 = vpop.f32.mrf.mxu0 }
 0xab6   :  { %4384 = vrot.lane.b32.xlu0 %v4330_v30, %s9623_s27  ;;  %v11085_v31 = vadd.f32 %v10926_v41, %v11079_v63 }
 0xab7   :  { %v4335_v57 = vpop.f32.mrf.mxu0 }
 0xab8   :  { %v4336_v54 = vadd.f32 %v4335_v57, %v4232_v56 }
 0xab9   :  { %v10930_v40 = vpop.f32.mrf.mxu0 }
 0xaba   :  { %4386 = vrot.lane.b32.xlu1 %v4336_v54, %s9623_s27  ;;  %v11096_v3 = vadd.f32 %v10930_v40, %v11079_v63 }
 0xae4   :  { %v4341_v16 = vpop.f32.mrf.mxu0 }
 0xae5   :  { %v10932_v50 = vadd.f32 %v4341_v16, %v4232_v56 }
 0xae6   :  { %v10934_v6 = vpop.f32.mrf.mxu0 }
 0xae7   :  { %4388 = vrot.lane.b32.xlu1 %v10932_v50, %s9623_s27 }
 0xae8   :  { %v4347_v4 = vpop.f32.mrf.mxu0 }
 0xae9   :  { %v10938_v9 = vadd.f32 %v4347_v4, %v4232_v56 }
 0xaea   :  { %v10940_v34 = vpop.f32.mrf.mxu0 }
 0xaeb   :  { %4390 = vrot.lane.b32.xlu1 %v10938_v9, %s9623_s27 }
 0xaec   :  { %v4353_v18 = vpop.f32.mrf.mxu0 }
 0xaed   :  { %v4354_v39 = vadd.f32 %v4353_v18, %v4232_v56 }
 0xaee   :  { %v10944_v19 = vpop.f32.mrf.mxu0 }
 0xaef   :  { %4392 = vrot.lane.b32.xlu0 %v4354_v39, %s9623_s27 }
 0xaf0   :  { %v4359_v48 = vpop.f32.mrf.mxu0 }
 0xaf1   :  { %v10947_v52 = vadd.f32 %v4359_v48, %v4232_v56 }
 0xaf2   :  { %v10951_v44 = vpop.f32.mrf.mxu0 }
 0xaf3   :  { %4394 = vrot.lane.b32.xlu1 %v10947_v52, %s9623_s27 }
 0xafc   :  { %v4365_v5 = vpop.f32.mrf.mxu0 }
 0xafd   :  { %v4366_v13 = vadd.f32 %v4365_v5, %v4232_v56 }
 0xafe   :  { %v10953_v8 = vpop.f32.mrf.mxu0 }
 0xaff   :  { %4396 = vrot.lane.b32.xlu0 %v4366_v13, %s9623_s27 }
 0xb00   :  { %v4371_v27 = vpop.f32.mrf.mxu0 }
 0xb01   :  { %v10956_v42 = vadd.f32 %v4371_v27, %v4232_v56 }
 0xb03   :  { %4432 = vrot.lane.b32.xlu0 %v4330_v30, %s9625_s24  ;;  %4398 = vrot.lane.b32.xlu1 %v10956_v42, %s9623_s27 }
 0xb07   :  { %4584 = vrot.lane.b32.xlu0 %v10932_v50, %s9625_s24  ;;  %4508 = vrot.lane.b32.xlu1 %v4336_v54, %s9625_s24 }
 0xb0b   :  { %4736 = vrot.lane.b32.xlu0 %v4354_v39, %s9625_s24  ;;  %4660 = vrot.lane.b32.xlu1 %v10938_v9, %s9625_s24 }
 0xb0f   :  { %4888 = vrot.lane.b32.xlu0 %v4366_v13, %s9625_s24  ;;  %4812 = vrot.lane.b32.xlu1 %v10947_v52, %s9625_s24 }
 0xb13   :  { %4964 = vrot.lane.b32.xlu1 %v10956_v42, %s9625_s24 }
 0xb28   :  { %v4385_v0 = vpop.permute.xlu0 %4384 }
 0xb29   :  { %5040 = vrot.lane.b32.xlu0 %v4385_v0, %s9625_s24 }
 0xb2c   :  { %v4387_v59 = vpop.permute.xlu1 %4386 }
 0xb2d   :  { %5116 = vrot.lane.b32.xlu1 %v4387_v59, %s9625_s24 }
 0xb59   :  { %v10974_v51 = vpop.permute.xlu1 %4388 }
 0xb5a   :  { %5192 = vrot.lane.b32.xlu0 %v10974_v51, %s9625_s24 }
 0xb5d   :  { %v10978_v38 = vpop.permute.xlu1 %4390 }
 0xb5e   :  { %5268 = vrot.lane.b32.xlu1 %v10978_v38, %s9625_s24 }
 0xb61   :  { %v10982_v49 = vpop.permute.xlu0 %4392 }
 0xb62   :  { %5344 = vrot.lane.b32.xlu0 %v10982_v49, %s9625_s24 }
 0xb65   :  { %v10986_v1 = vpop.permute.xlu1 %4394 }
 0xb66   :  { %5420 = vrot.lane.b32.xlu1 %v10986_v1, %s9625_s24 }
 0xb71   :  { %v10990_v28 = vpop.permute.xlu0 %4396 }
 0xb72   :  { %5496 = vrot.lane.b32.xlu0 %v10990_v28, %s9625_s24 }
 0xb75   :  { %v10994_v55 = vpop.permute.xlu1 %4398  ;;  %v4433_v12 = vpop.permute.xlu0 %4432 }
 0xb76   :  { %5572 = vrot.lane.b32.xlu1 %v10994_v55, %s9625_s24  ;;  %8985 = vmatpush3.xpose.msk.msra.mxu1 %vm131_vm0, %v4433_v12 }
 0xb77   :  { %8989 = vmatprep.subr.mxu1 %v9622_v14 }
 0xb79   :  { %v4509_v60 = vpop.permute.xlu1 %4508  ;;  %8987 = vmatmul.mubr.msk.f32.vlgmr.msra.gmra.mxu1 %vm131_vm0, %v4330_v30  ;;  %v4585_v58 = vpop.permute.xlu0 %4584 }
 0xb7a   :  { %8990 = vmatpush3.xpose.msk.msra.mxu1 %vm131_vm0, %v4509_v60  ;;  %8991 = vmatprep.mubr.msk.f32.mxu1 %vm9624_vm2, %v9622_v14  ;;  %v11111_v30 = vpop.f32.mrf.mxu0 }
 0xb7b   :  { %8994 = vmatprep.subr.mxu1 %v9622_v14 }
 0xb7d   :  { %v4661_v10 = vpop.permute.xlu1 %4660  ;;  %8992 = vmatmul.mubr.msk.f32.vlgmr.msra.gmra.mxu1 %vm131_vm0, %v4336_v54  ;;  %v4737_v7 = vpop.permute.xlu0 %4736 }
 0xb7e   :  { %8995 = vmatpush3.xpose.msk.msra.mxu1 %vm131_vm0, %v4585_v58  ;;  %9005 = vmatpush3.xpose.msk.msra.mxu0 %vm131_vm0, %v4737_v7 }
 0xb7f   :  { %8996 = vmatprep.mubr.msk.f32.mxu1 %vm9624_vm2, %v9622_v14  ;;  %8999 = vmatprep.subr.mxu1 %v9622_v14 }
 0xb80   :  { %9014 = vmatprep.subr.mxu0 %v9622_v14 }
 0xb81   :  { %8997 = vmatmul.mubr.msk.f32.vlgmr.msra.gmra.mxu1 %vm131_vm0, %v10932_v50  ;;  %9007 = vmatmul.mubr.msk.f32.vlgmr.msra.gmra.mxu0 %vm131_vm0, %v4354_v39  ;;  %v4889_v35 = vpop.permute.xlu0 %4888  ;;  %v4813_v22 = vpop.permute.xlu1 %4812 }
 0xb82   :  { %9000 = vmatpush3.xpose.msk.msra.mxu1 %vm131_vm0, %v4661_v10  ;;  %9015 = vmatpush3.xpose.msk.msra.mxu0 %vm131_vm0, %v4889_v35 }
 0xb83   :  { %9001 = vmatprep.mubr.msk.f32.mxu1 %vm9624_vm2, %v9622_v14  ;;  %9016 = vmatprep.mubr.msk.f32.mxu0 %vm9624_vm2, %v9622_v14 }
 0xb84   :  { %9009 = vmatprep.subr.mxu1 %v9622_v14  ;;  %9024 = vmatprep.subr.mxu0 %v9622_v14 }
 0xb85   :  { %9002 = vmatmul.mubr.msk.f32.vlgmr.msra.gmra.mxu1 %vm131_vm0, %v10938_v9  ;;  %9017 = vmatmul.mubr.msk.f32.vlgmr.msra.gmra.mxu0 %vm131_vm0, %v4366_v13  ;;  %v4965_v33 = vpop.permute.xlu1 %4964 }
 0xb86   :  { %9010 = vmatpush3.xpose.msk.msra.mxu1 %vm131_vm0, %v4813_v22  ;;  %9011 = vmatprep.mubr.msk.f32.mxu1 %vm9624_vm2, %v9622_v14 }
 0xb87   :  { %9019 = vmatprep.subr.mxu1 %v9622_v14  ;;  %9026 = vmatprep.mubr.msk.f32.mxu0 %vm9624_vm2, %v9622_v14 }
 0xb89   :  { %9012 = vmatmul.mubr.msk.f32.vlgmr.msra.gmra.mxu1 %vm131_vm0, %v10947_v52 }
 0xb8a   :  { %9020 = vmatpush3.xpose.msk.msra.mxu1 %vm131_vm0, %v4965_v33  ;;  %9021 = vmatprep.mubr.msk.f32.mxu1 %vm9624_vm2, %v9622_v14 }
 0xb8b   :  { %9029 = vmatprep.subr.mxu1 %v9622_v14 }
 0xb8d   :  { %9022 = vmatmul.mubr.msk.f32.vlgmr.msra.gmra.mxu1 %vm131_vm0, %v10956_v42 }
 0xb8e   :  { %9031 = vmatprep.mubr.msk.f32.mxu1 %vm9624_vm2, %v9622_v14 }
 0xb9b   :  { %v5041_v21 = vpop.permute.xlu0 %5040 }
 0xb9c   :  { %9025 = vmatpush3.xpose.msk.msra.mxu0 %vm131_vm0, %v5041_v21 }
 0xb9d   :  { %9034 = vmatprep.subr.mxu0 %v9622_v14 }
 0xb9f   :  { %v5117_v24 = vpop.permute.xlu1 %5116  ;;  %9027 = vmatmul.mubr.msk.f32.vlgmr.msra.gmra.mxu0 %vm131_vm0, %v4385_v0 }
 0xba0   :  { %9030 = vmatpush3.xpose.msk.msra.mxu1 %vm131_vm0, %v5117_v24  ;;  %9036 = vmatprep.mubr.msk.f32.mxu0 %vm9624_vm2, %v9622_v14 }
 0xba1   :  { %9039 = vmatprep.subr.mxu1 %v9622_v14 }
 0xba3   :  { %9032 = vmatmul.mubr.msk.f32.vlgmr.msra.gmra.mxu1 %vm131_vm0, %v4387_v59 }
 0xba4   :  { %9041 = vmatprep.mubr.msk.f32.mxu1 %vm9624_vm2, %v9622_v14 }
 0xbcc   :  { %v5193_v29 = vpop.permute.xlu0 %5192 }
 0xbcd   :  { %9035 = vmatpush3.xpose.msk.msra.mxu0 %vm131_vm0, %v5193_v29 }
 0xbce   :  { %9044 = vmatprep.subr.mxu0 %v9622_v14 }
 0xbd0   :  { %9037 = vmatmul.mubr.msk.f32.vlgmr.msra.gmra.mxu0 %vm131_vm0, %v10974_v51  ;;  %v5269_v23 = vpop.permute.xlu1 %5268 }
 0xbd1   :  { %9046 = vmatprep.mubr.msk.f32.mxu0 %vm9624_vm2, %v9622_v14  ;;  %9040 = vmatpush3.xpose.msk.msra.mxu1 %vm131_vm0, %v5269_v23 }
 0xbd2   :  { %9049 = vmatprep.subr.mxu1 %v9622_v14 }
 0xbd4   :  { %9042 = vmatmul.mubr.msk.f32.vlgmr.msra.gmra.mxu1 %vm131_vm0, %v10978_v38  ;;  %v5345_v2 = vpop.permute.xlu0 %5344 }
 0xbd5   :  { %9045 = vmatpush3.xpose.msk.msra.mxu0 %vm131_vm0, %v5345_v2  ;;  %9051 = vmatprep.mubr.msk.f32.mxu1 %vm9624_vm2, %v9622_v14 }
 0xbd6   :  { %9054 = vmatprep.subr.mxu0 %v9622_v14 }
 0xbd8   :  { %v5421_v36 = vpop.permute.xlu1 %5420  ;;  %9047 = vmatmul.mubr.msk.f32.vlgmr.msra.gmra.mxu0 %vm131_vm0, %v10982_v49 }
 0xbd9   :  { %9050 = vmatpush3.xpose.msk.msra.mxu1 %vm131_vm0, %v5421_v36  ;;  %9056 = vmatprep.mubr.msk.f32.mxu0 %vm9624_vm2, %v9622_v14 }
 0xbda   :  { %9059 = vmatprep.subr.mxu1 %v9622_v14 }
 0xbdc   :  { %9052 = vmatmul.mubr.msk.f32.vlgmr.msra.gmra.mxu1 %vm131_vm0, %v10986_v1 }
 0xbdd   :  { %9061 = vmatprep.mubr.msk.f32.mxu1 %vm9624_vm2, %v9622_v14 }
 0xbe4   :  { %v5497_v20 = vpop.permute.xlu0 %5496 }
 0xbe5   :  { %9055 = vmatpush3.xpose.msk.msra.mxu0 %vm131_vm0, %v5497_v20 }
 0xbe6   :  { %9064 = vmatprep.subr.mxu0 %v9622_v14 }
 0xbe8   :  { %v5573_v17 = vpop.permute.xlu1 %5572  ;;  %9057 = vmatmul.mubr.msk.f32.vlgmr.msra.gmra.mxu0 %vm131_vm0, %v10990_v28 }
 0xbe9   :  { %9060 = vmatpush3.xpose.msk.msra.mxu1 %vm131_vm0, %v5573_v17  ;;  %9065 = vmatpush3.msra.mxu0 %v11085_v31 }
 0xbea   :  { %9069 = vmatprep.subr.mxu1 %v9622_v14  ;;  %9066 = vmatprep.mubr.msk.f32.mxu0 %vm9624_vm2, %v9622_v14 }
 0xbeb   :  { %9074 = vmatprep.subr.mxu0 %v9622_v14 }
 0xbec   :  { %9062 = vmatmul.mubr.msk.f32.vlgmr.msra.gmra.mxu1 %vm131_vm0, %v10994_v55 }
 0xbed   :  { %9070 = vmatpush3.msra.mxu1 %v11096_v3  ;;  %9071 = vmatprep.mubr.msk.f32.mxu1 %vm9624_vm2, %v9622_v14 }
 0xbee   :  { %9079 = vmatprep.subr.mxu1 %v9622_v14 }
 0xc39   :  { %v4504_v11 = vpop.f32.mrf.mxu1 }
 0xc3a   :  { %v11105_v53 = vmul.f32 0.17677669, %v4504_v11 }
 0xc3b   :  { %v8988_v46 = vpop.f32.mrf.mxu1 }
 0xc3c   :  { %v5664_v32 = vsel %vm1883_vm3, %v11105_v53, -inf }
 0xc3d   :  { %5665 = vmax.xlane.f32.xlu0 %v5664_v32  ;;  %v4580_v56 = vpop.f32.mrf.mxu1 }
 0xc3e   :  { %v11109_v37 = vmul.f32 0.17677669, %v4580_v56 }
 0xc3f   :  { %v8993_v41 = vpop.f32.mrf.mxu1 }
 0xc40   :  { %v5667_v57 = vsel %vm1883_vm3, %v11109_v37, -inf }
 0xc41   :  { %5668 = vmax.xlane.f32.xlu1 %v5667_v57  ;;  %v4656_v54 = vpop.f32.mrf.mxu1  ;;  %v4808_v40 = vpop.f32.mrf.mxu0 }
 0xc42   :  { %v11115_v16 = vmul.f32 0.17677669, %v4656_v54  ;;  %v11121_v13 = vmul.f32 0.17677669, %v4808_v40 }
 0xc43   :  { %v8998_v50 = vpop.f32.mrf.mxu1  ;;  %v9008_v4 = vpop.f32.mrf.mxu0 }
 0xc44   :  { %v5670_v9 = vsel %vm1883_vm3, %v11115_v16, -inf  ;;  %v5676_v49 = vsel %vm1883_vm3, %v11121_v13, -inf }
 0xc45   :  { %5671 = vmax.xlane.f32.xlu0 %v5670_v9  ;;  %v4732_v18 = vpop.f32.mrf.mxu1  ;;  %v4960_v39 = vpop.f32.mrf.mxu0 }
 0xc46   :  { %v11119_v48 = vmul.f32 0.17677669, %v4732_v18  ;;  %v11127_v51 = vmul.f32 0.17677669, %v4960_v39 }
 0xc47   :  { %v9003_v52 = vpop.f32.mrf.mxu1  ;;  %v9018_v5 = vpop.f32.mrf.mxu0 }
 0xc48   :  { %v5673_v27 = vsel %vm1883_vm3, %v11119_v48, -inf  ;;  %v5682_v60 = vsel %vm1883_vm3, %v11127_v51, -inf }
 0xc49   :  { %5674 = vmax.xlane.f32.xlu0 %v5673_v27  ;;  %v4884_v42 = vpop.f32.mrf.mxu1 }
 0xc4a   :  { %v11125_v0 = vmul.f32 0.17677669, %v4884_v42  ;;  %v11171_v42 = vadd.f32 %v10934_v6, %v11079_v63 }
 0xc4b   :  { %v9013_v59 = vpop.f32.mrf.mxu1 }
 0xc4c   :  { %v5679_v38 = vsel %vm1883_vm3, %v11125_v0, -inf  ;;  %v11177_v59 = vadd.f32 %v10940_v34, %v11079_v63 }
 0xc4d   :  { %5680 = vmax.xlane.f32.xlu1 %v5679_v38  ;;  %v5036_v1 = vpop.f32.mrf.mxu1  ;;  %5677 = vmax.xlane.f32.xlu0 %v5676_v49 }
 0xc4e   :  { %v11133_v28 = vmul.f32 0.17677669, %v5036_v1 }
 0xc4f   :  { %v9023_v55 = vpop.f32.mrf.mxu1 }
 0xc50   :  { %v5685_v12 = vsel %vm1883_vm3, %v11133_v28, -inf }
 0xc51   :  { %5686 = vmax.xlane.f32.xlu1 %v5685_v12  ;;  %5683 = vmax.xlane.f32.xlu0 %v5682_v60 }
 0xc5f   :  { %v5112_v58 = vpop.f32.mrf.mxu0 }
 0xc60   :  { %v11139_v10 = vmul.f32 0.17677669, %v5112_v58 }
 0xc61   :  { %v9028_v7 = vpop.f32.mrf.mxu0 }
 0xc62   :  { %v5688_v35 = vsel %vm1883_vm3, %v11139_v10, -inf }
 0xc63   :  { %v5188_v22 = vpop.f32.mrf.mxu1  ;;  %5689 = vmax.xlane.f32.xlu0 %v5688_v35 }
 0xc64   :  { %v11143_v33 = vmul.f32 0.17677669, %v5188_v22 }
 0xc65   :  { %v9033_v21 = vpop.f32.mrf.mxu1 }
 0xc66   :  { %v5691_v24 = vsel %vm1883_vm3, %v11143_v33, -inf }
 0xc67   :  { %5692 = vmax.xlane.f32.xlu1 %v5691_v24 }
 0xc90   :  { %v5264_v29 = vpop.f32.mrf.mxu0 }
 0xc91   :  { %v11147_v23 = vmul.f32 0.17677669, %v5264_v29 }
 0xc92   :  { %v9038_v2 = vpop.f32.mrf.mxu0 }
 0xc93   :  { %v5694_v36 = vsel %vm1883_vm3, %v11147_v23, -inf }
 0xc94   :  { %5695 = vmax.xlane.f32.xlu0 %v5694_v36  ;;  %v5340_v20 = vpop.f32.mrf.mxu1 }
 0xc95   :  { %v11151_v17 = vmul.f32 0.17677669, %v5340_v20  ;;  %v11213_v20 = vadd.f32 %v10951_v44, %v11079_v63 }
 0xc96   :  { %v9043_v11 = vpop.f32.mrf.mxu1 }
 0xc97   :  { %v5697_v46 = vsel %vm1883_vm3, %v11151_v17, -inf }
 0xc98   :  { %5698 = vmax.xlane.f32.xlu1 %v5697_v46  ;;  %v5416_v32 = vpop.f32.mrf.mxu0 }
 0xc99   :  { %v11155_v56 = vmul.f32 0.17677669, %v5416_v32 }
 0xc9a   :  { %v9048_v41 = vpop.f32.mrf.mxu0 }
 0xc9b   :  { %v5700_v57 = vsel %vm1883_vm3, %v11155_v56, -inf }
 0xc9c   :  { %v5492_v54 = vpop.f32.mrf.mxu1  ;;  %5701 = vmax.xlane.f32.xlu0 %v5700_v57 }
 0xc9d   :  { %v11159_v40 = vmul.f32 0.17677669, %v5492_v54 }
 0xc9e   :  { %v9053_v50 = vpop.f32.mrf.mxu1 }
 0xc9f   :  { %v5703_v4 = vsel %vm1883_vm3, %v11159_v40, -inf }
 0xca0   :  { %5704 = vmax.xlane.f32.xlu1 %v5703_v4 }
 0xca8   :  { %v5568_v9 = vpop.f32.mrf.mxu0 }
 0xca9   :  { %v11163_v18 = vmul.f32 0.17677669, %v5568_v9 }
 0xcaa   :  { %v9058_v39 = vpop.f32.mrf.mxu0 }
 0xcab   :  { %v5706_v52 = vsel %vm1883_vm3, %v11163_v18, -inf }
 0xcac   :  { %v5644_v5 = vpop.f32.mrf.mxu1  ;;  %5707 = vmax.xlane.f32.xlu0 %v5706_v52 }
 0xcad   :  { %v11192_v58 = vmul.f32 0.17677669, %v5644_v5 }
 0xcae   :  { %v9063_v27 = vpop.f32.mrf.mxu1 }
 0xcb1   :  { %4410 = vrot.lane.b32.xlu1 %v11096_v3, %s9623_s27  ;;  %v11185_v3 = vadd.f32 %v10944_v19, %v11079_v63 }
 0xcb5   :  { %4412 = vrot.lane.b32.xlu1 %v11171_v42, %s9623_s27 }
 0xcb9   :  { %4414 = vrot.lane.b32.xlu1 %v11177_v59, %s9623_s27 }
 0xcc2   :  { %4408 = vrot.lane.b32.xlu0 %v11085_v31, %s9623_s27 }
 0xcc6   :  { %4416 = vrot.lane.b32.xlu0 %v11185_v3, %s9623_s27  ;;  %v5666_v6 = vpop.xlane.xlu0 %5665 }
 0xcc7   :  { %v5712_v38 = vsub.f32 %v11105_v53, %v5666_v6  ;;  %v5709_v53 = vsel %vm1883_vm3, %v11192_v58, -inf }
 0xcc9   :  { %v5728_v1 = vmul.f32 1.442695, %v5712_v38 }
 0xcca   :  { %v5669_v41 = vpop.xlane.xlu1 %5668 }
 0xccb   :  { %9420 = vpow2.f32 %v5728_v1  ;;  %v5713_v57 = vsub.f32 %v11109_v37, %v5669_v41 }
 0xccd   :  { %v5730_v44 = vmul.f32 1.442695, %v5713_v57 }
 0xcce   :  { %v5672_v49 = vpop.xlane.xlu0 %5671 }
 0xccf   :  { %v5714_v34 = vsub.f32 %v11115_v16, %v5672_v49 }
 0xcd1   :  { %v5732_v12 = vmul.f32 1.442695, %v5714_v34 }
 0xcd2   :  { %v5675_v55 = vpop.xlane.xlu0 %5674 }
 0xcd3   :  { %9422 = vpow2.f32 %v5732_v12  ;;  %v5715_v4 = vsub.f32 %v11119_v48, %v5675_v55 }
 0xcd5   :  { %v5734_v9 = vmul.f32 1.442695, %v5715_v4 }
 0xcd6   :  { %v5678_v60 = vpop.xlane.xlu0 %5677  ;;  %v5681_v54 = vpop.xlane.xlu1 %5680 }
 0xcd7   :  { %v5716_v31 = vsub.f32 %v11121_v13, %v5678_v60  ;;  %v5717_v39 = vsub.f32 %v11125_v0, %v5681_v54 }
 0xcd8   :  { %v11197_v16 = vpop.eup %9420 }
 0xcd9   :  { %v5736_v19 = vmul.f32 1.442695, %v5716_v31  ;;  %v5760_v21 = vsel %vm1883_vm3, %v11197_v16, 0.0  ;;  %v5738_v5 = vmul.f32 1.442695, %v5717_v39 }
 0xcda   :  { %v5684_v7 = vpop.xlane.xlu0 %5683  ;;  %v5687_v52 = vpop.xlane.xlu1 %5686 }
 0xcdb   :  { %v5718_v35 = vsub.f32 %v11127_v51, %v5684_v7  ;;  %9424 = vpow2.f32 %v5736_v19  ;;  %v5719_v27 = vsub.f32 %v11133_v28, %v5687_v52 }
 0xcdd   :  { %v5740_v22 = vmul.f32 1.442695, %v5718_v35  ;;  %5710 = vmax.xlane.f32.xlu1 %v5709_v53  ;;  %v5742_v6 = vmul.f32 1.442695, %v5719_v27 }
 0xcdf   :  { %9426 = vpow2.f32 %v5740_v22 }
 0xce0   :  { %v11201_v13 = vpop.eup %9422 }
 0xce1   :  { %v5766_v24 = vsel %vm1883_vm3, %v11201_v13, 0.0 }
 0xce5   :  { %5761 = vadd.xlane.f32.xlu0 %v5760_v21 }
 0xce8   :  { %v11205_v29 = vpop.eup %9424 }
 0xce9   :  { %5767 = vadd.xlane.f32.xlu0 %v5766_v24  ;;  %v5772_v2 = vsel %vm1883_vm3, %v11205_v29, 0.0 }
 0xcec   :  { %v5690_v51 = vpop.xlane.xlu0 %5689  ;;  %v11209_v36 = vpop.eup %9426 }
 0xced   :  { %v5720_v11 = vsub.f32 %v11139_v10, %v5690_v51  ;;  %5773 = vadd.xlane.f32.xlu0 %v5772_v2  ;;  %v5778_v32 = vsel %vm1883_vm3, %v11209_v36, 0.0 }
 0xcee   :  { %4418 = vrot.lane.b32.xlu1 %v11213_v20, %s9623_s27 }
 0xcef   :  { %v5744_v46 = vmul.f32 1.442695, %v5720_v11 }
 0xcf0   :  { %v5693_v37 = vpop.xlane.xlu1 %5692 }
 0xcf1   :  { %9428 = vpow2.f32 %v5744_v46  ;;  %5779 = vadd.xlane.f32.xlu0 %v5778_v32  ;;  %v5721_v38 = vsub.f32 %v11143_v33, %v5693_v37 }
 0xcf2   :  { %9430 = vpow2.f32 %v5730_v44 }
 0xcf3   :  { %9432 = vpow2.f32 %v5734_v9  ;;  %v5746_v48 = vmul.f32 1.442695, %v5721_v38 }
 0xcf4   :  { %9434 = vpow2.f32 %v5738_v5  ;;  %v4368_v5 = vadd.f32 %v10953_v8, %v11079_v63 }
 0xcf5   :  { %9436 = vpow2.f32 %v5742_v6 }
 0xcf6   :  { %9438 = vpow2.f32 %v5746_v48 }
 0xcfe   :  { %v11221_v50 = vpop.eup %9428 }
 0xcff   :  { %v5784_v10 = vsel %vm1883_vm3, %v11221_v50, 0.0  ;;  %v11229_v49 = vpop.eup %9430 }
 0xd00   :  { %5785 = vadd.xlane.f32.xlu0 %v5784_v10  ;;  %v5763_v1 = vsel %vm1883_vm3, %v11229_v49, 0.0  ;;  %v11233_v34 = vpop.eup %9432 }
 0xd01   :  { %v5769_v0 = vsel %vm1883_vm3, %v11233_v34, 0.0  ;;  %v11237_v28 = vpop.eup %9434 }
 0xd02   :  { %v5775_v33 = vsel %vm1883_vm3, %v11237_v28, 0.0  ;;  %v11241_v55 = vpop.eup %9436 }
 0xd03   :  { %v5781_v31 = vsel %vm1883_vm3, %v11241_v55, 0.0  ;;  %v11246_v19 = vpop.eup %9438 }
 0xd04   :  { %v5787_v22 = vsel %vm1883_vm3, %v11246_v19, 0.0 }
 0xd12   :  { %5764 = vadd.xlane.f32.xlu1 %v5763_v1 }
 0xd16   :  { %5770 = vadd.xlane.f32.xlu1 %v5769_v0 }
 0xd1a   :  { %5776 = vadd.xlane.f32.xlu1 %v5775_v33 }
 0xd1d   :  { %v5696_v12 = vpop.xlane.xlu0 %5695 }
 0xd1e   :  { %v5722_v60 = vsub.f32 %v11147_v23, %v5696_v12  ;;  %5782 = vadd.xlane.f32.xlu1 %v5781_v31 }
 0xd20   :  { %v5748_v7 = vmul.f32 1.442695, %v5722_v60 }
 0xd21   :  { %v5699_v35 = vpop.xlane.xlu1 %5698 }
 0xd22   :  { %9440 = vpow2.f32 %v5748_v7  ;;  %v5723_v53 = vsub.f32 %v11151_v17, %v5699_v35  ;;  %5788 = vadd.xlane.f32.xlu1 %v5787_v22 }
 0xd24   :  { %v5750_v21 = vmul.f32 1.442695, %v5723_v53 }
 0xd25   :  { %v5702_v24 = vpop.xlane.xlu0 %5701 }
 0xd26   :  { %9442 = vpow2.f32 %v5750_v21  ;;  %v5724_v23 = vsub.f32 %v11155_v56, %v5702_v24 }
 0xd28   :  { %v5752_v51 = vmul.f32 1.442695, %v5724_v23 }
 0xd29   :  { %v5705_v2 = vpop.xlane.xlu1 %5704 }
 0xd2a   :  { %9444 = vpow2.f32 %v5752_v51  ;;  %v5725_v11 = vsub.f32 %v11159_v40, %v5705_v2 }
 0xd2c   :  { %v5754_v46 = vmul.f32 1.442695, %v5725_v11 }
 0xd2e   :  { %9446 = vpow2.f32 %v5754_v46 }
 0xd2f   :  { %v11253_v32 = vpop.eup %9440 }
 0xd30   :  { %v5790_v41 = vsel %vm1883_vm3, %v11253_v32, 0.0 }
 0xd31   :  { %5791 = vadd.xlane.f32.xlu0 %v5790_v41 }
 0xd33   :  { %v11257_v17 = vpop.eup %9442 }
 0xd34   :  { %v5793_v57 = vsel %vm1883_vm3, %v11257_v17, 0.0 }
 0xd35   :  { %v5708_v54 = vpop.xlane.xlu0 %5707  ;;  %5794 = vadd.xlane.f32.xlu1 %v5793_v57 }
 0xd36   :  { %v5726_v56 = vsub.f32 %v11163_v18, %v5708_v54  ;;  %v11274_v18 = vpop.permute.xlu1 %4410 }
 0xd37   :  { %v11262_v44 = vpop.eup %9444 }
 0xd38   :  { %v5756_v40 = vmul.f32 1.442695, %v5726_v56  ;;  %v5796_v4 = vsel %vm1883_vm3, %v11262_v44, 0.0 }
 0xd39   :  { %5797 = vadd.xlane.f32.xlu0 %v5796_v4  ;;  %v4409_v6 = vpop.permute.xlu0 %4408 }
 0xd3a   :  { %9448 = vpow2.f32 %v5756_v40  ;;  %v4413_v27 = vpop.permute.xlu1 %4412 }
 0xd3b   :  { %v11266_v10 = vpop.eup %9446 }
 0xd3c   :  { %v5799_v9 = vsel %vm1883_vm3, %v11266_v10, 0.0 }
 0xd3d   :  { %5800 = vadd.xlane.f32.xlu1 %v5799_v9  ;;  %v11282_v1 = vpop.permute.xlu0 %4416 }
 0xd3e   :  { %v11279_v37 = vpop.permute.xlu1 %4414 }
 0xd47   :  { %v11270_v39 = vpop.eup %9448 }
 0xd48   :  { %v5802_v52 = vsel %vm1883_vm3, %v11270_v39, 0.0 }
 0xd49   :  { %5803 = vadd.xlane.f32.xlu0 %v5802_v52 }
 0xd5f   :  { %4420 = vrot.lane.b32.xlu0 %v4368_v5, %s9623_s27 }
 0xd66   :  { %v5711_v38 = vpop.xlane.xlu1 %5710 }
 0xd67   :  { %v5727_v48 = vsub.f32 %v11192_v58, %v5711_v38 }
 0xd69   :  { %v5758_v0 = vmul.f32 1.442695, %v5727_v48 }
 0xd6a   :  { %v11313_v23 = vpop.permute.xlu1 %4418 }
 0xd6b   :  { %9450 = vpow2.f32 %v5758_v0  ;;  %v8336_v0 = vld [vmem:[%s11843_s8 + $0x78] sm:$0xff] }
 0xd6e   :  { %v5762_v33 = vpop.xlane.xlu0 %5761 }
 0xd6f   :  { %9452 = vrcp.f32 %v5762_v33 }
 0xd72   :  { %v5768_v12 = vpop.xlane.xlu0 %5767 }
 0xd73   :  { %9454 = vrcp.f32 %v5768_v12 }
 0xd76   :  { %v5774_v60 = vpop.xlane.xlu0 %5773 }
 0xd77   :  { %9456 = vrcp.f32 %v5774_v60 }
 0xd78   :  { %v11284_v8 = vpop.eup %9450 }
 0xd79   :  { %v5805_v31 = vsel %vm1883_vm3, %v11284_v8, 0.0 }
 0xd7a   :  { %v5780_v7 = vpop.xlane.xlu0 %5779  ;;  %5806 = vadd.xlane.f32.xlu1 %v5805_v31  ;;  %v8335_v31 = vld [vmem:[%s11843_s8 + $0x70] sm:$0xff] }
 0xd7b   :  { %9458 = vrcp.f32 %v5780_v7  ;;  %v8334_v7 = vld [vmem:[%s11843_s8 + $0x68] sm:$0xff] }
 0xd7c   :  { %v9453_v35 = vpop.eup %9452 }
 0xd7d   :  { %v5824_v58 = vmul.f32 %v9453_v35, %v11197_v16  ;;  %v8333_v35 = vld [vmem:[%s11843_s8 + $0x60] sm:$0xff] }
 0xd7f   :  { %9067 = vmatmul.mubr.msk.f32.vlgmr.msra.gmra.mxu0 %vm1883_vm3, %v5824_v58 }
 0xd80   :  { %v9455_v22 = vpop.eup %9454  ;;  %9075 = vmatpush3.msra.mxu0 %v11171_v42  ;;  %9076 = vmatprep.mubr.msk.f32.mxu0 %vm9624_vm2, %v9622_v14 }
 0xd81   :  { %9084 = vmatprep.subr.mxu0 %v9622_v14  ;;  %v5826_v53 = vmul.f32 %v9455_v22, %v11201_v13 }
 0xd83   :  { %9077 = vmatmul.mubr.msk.f32.vlgmr.msra.gmra.mxu0 %vm1883_vm3, %v5826_v53 }
 0xd84   :  { %v9457_v21 = vpop.eup %9456  ;;  %9085 = vmatpush3.msra.mxu0 %v11185_v3  ;;  %9086 = vmatprep.mubr.msk.f32.mxu0 %vm9624_vm2, %v9622_v14  ;;  %v4374_v3 = vadd.f32 %v11111_v30, %v11079_v63 }
 0xd85   :  { %9094 = vmatprep.subr.mxu0 %v9622_v14  ;;  %v5828_v16 = vmul.f32 %v9457_v21, %v11205_v29 }
 0xd87   :  { %9087 = vmatmul.mubr.msk.f32.vlgmr.msra.gmra.mxu0 %vm1883_vm3, %v5828_v16 }
 0xd88   :  { %v9459_v42 = vpop.eup %9458  ;;  %9095 = vmatpush3.msra.mxu0 %v4368_v5  ;;  %9096 = vmatprep.mubr.msk.f32.mxu0 %vm9624_vm2, %v9622_v14 }
 0xd89   :  { %v5786_v13 = vpop.xlane.xlu0 %5785  ;;  %9104 = vmatprep.subr.mxu0 %v9622_v14  ;;  %v5830_v24 = vmul.f32 %v9459_v42, %v11209_v36 }
 0xd8a   :  { %9460 = vrcp.f32 %v5786_v13 }
 0xd8b   :  { %9097 = vmatmul.mubr.msk.f32.vlgmr.msra.gmra.mxu0 %vm1883_vm3, %v5830_v24  ;;  %4422 = vrot.lane.b32.xlu1 %v4374_v3, %s9623_s27 }
 0xd8c   :  { %9105 = vmatpush3.msra.mxu0 %v4409_v6  ;;  %9106 = vmatprep.mubr.msk.f32.mxu0 %vm9624_vm2, %v9622_v14 }
 0xd8d   :  { %9114 = vmatprep.subr.mxu0 %v9622_v14 }
 0xd97   :  { %v9461_v29 = vpop.eup %9460 }
 0xd98   :  { %v5832_v51 = vmul.f32 %v9461_v29, %v11221_v50 }
 0xd9a   :  { %9107 = vmatmul.mubr.msk.f32.vlgmr.msra.gmra.mxu0 %vm1883_vm3, %v5832_v51 }
 0xd9b   :  { %9115 = vmatpush3.msra.mxu0 %v4413_v27  ;;  %9116 = vmatprep.mubr.msk.f32.mxu0 %vm9624_vm2, %v9622_v14  ;;  %v5765_v63 = vpop.xlane.xlu1 %5764 }
 0xd9c   :  { %9124 = vmatprep.subr.mxu0 %v9622_v14  ;;  %9462 = vrcp.f32 %v5765_v63 }
 0xd9f   :  { %v5771_v30 = vpop.xlane.xlu1 %5770 }
 0xda0   :  { %9464 = vrcp.f32 %v5771_v30 }
 0xda3   :  { %v5777_v36 = vpop.xlane.xlu1 %5776 }
 0xda4   :  { %9466 = vrcp.f32 %v5777_v36 }
 0xda7   :  { %v5783_v2 = vpop.xlane.xlu1 %5782 }
 0xda8   :  { %9468 = vrcp.f32 %v5783_v2 }
 0xda9   :  { %v9463_v11 = vpop.eup %9462 }
 0xdaa   :  { %v5825_v46 = vmul.f32 %v9463_v11, %v11229_v49 }
 0xdab   :  { %v5789_v50 = vpop.xlane.xlu1 %5788 }
 0xdac   :  { %9470 = vrcp.f32 %v5789_v50  ;;  %9072 = vmatmul.mubr.msk.f32.vlgmr.msra.gmra.mxu1 %vm1883_vm3, %v5825_v46 }
 0xdad   :  { %v9465_v41 = vpop.eup %9464  ;;  %9080 = vmatpush3.msra.mxu1 %v11177_v59  ;;  %9081 = vmatprep.mubr.msk.f32.mxu1 %vm9624_vm2, %v9622_v14 }
 0xdae   :  { %9089 = vmatprep.subr.mxu1 %v9622_v14  ;;  %v5827_v57 = vmul.f32 %v9465_v41, %v11233_v34 }
 0xdb0   :  { %9082 = vmatmul.mubr.msk.f32.vlgmr.msra.gmra.mxu1 %vm1883_vm3, %v5827_v57 }
 0xdb1   :  { %v9467_v54 = vpop.eup %9466  ;;  %9090 = vmatpush3.msra.mxu1 %v11213_v20  ;;  %9091 = vmatprep.mubr.msk.f32.mxu1 %vm9624_vm2, %v9622_v14 }
 0xdb2   :  { %9099 = vmatprep.subr.mxu1 %v9622_v14  ;;  %v5829_v49 = vmul.f32 %v9467_v54, %v11237_v28 }
 0xdb4   :  { %9092 = vmatmul.mubr.msk.f32.vlgmr.msra.gmra.mxu1 %vm1883_vm3, %v5829_v49 }
 0xdb5   :  { %v9469_v59 = vpop.eup %9468  ;;  %9100 = vmatpush3.msra.mxu1 %v4374_v3  ;;  %9101 = vmatprep.mubr.msk.f32.mxu1 %vm9624_vm2, %v9622_v14 }
 0xdb6   :  { %9109 = vmatprep.subr.mxu1 %v9622_v14  ;;  %v5831_v34 = vmul.f32 %v9469_v59, %v11241_v55 }
 0xdb8   :  { %9102 = vmatmul.mubr.msk.f32.vlgmr.msra.gmra.mxu1 %vm1883_vm3, %v5831_v34 }
 0xdb9   :  { %v9471_v20 = vpop.eup %9470  ;;  %9110 = vmatpush3.msra.mxu1 %v11274_v18  ;;  %9111 = vmatprep.mubr.msk.f32.mxu1 %vm9624_vm2, %v9622_v14 }
 0xdba   :  { %v5792_v56 = vpop.xlane.xlu0 %5791  ;;  %9119 = vmatprep.subr.mxu1 %v9622_v14  ;;  %v5833_v28 = vmul.f32 %v9471_v20, %v11246_v19 }
 0xdbb   :  { %9472 = vrcp.f32 %v5792_v56 }
 0xdbc   :  { %9112 = vmatmul.mubr.msk.f32.vlgmr.msra.gmra.mxu1 %vm1883_vm3, %v5833_v28 }
 0xdbd   :  { %9120 = vmatpush3.msra.mxu1 %v11279_v37  ;;  %9121 = vmatprep.mubr.msk.f32.mxu1 %vm9624_vm2, %v9622_v14 }
 0xdbe   :  { %v5795_v55 = vpop.xlane.xlu1 %5794  ;;  %9129 = vmatprep.subr.mxu1 %v9622_v14 }
 0xdbf   :  { %9474 = vrcp.f32 %v5795_v55 }
 0xdc2   :  { %v5798_v40 = vpop.xlane.xlu0 %5797 }
 0xdc3   :  { %9476 = vrcp.f32 %v5798_v40 }
 0xdc6   :  { %v5801_v4 = vpop.xlane.xlu1 %5800 }
 0xdc7   :  { %9478 = vrcp.f32 %v5801_v4 }
 0xdc8   :  { %v9473_v9 = vpop.eup %9472 }
 0xdc9   :  { %v5834_v52 = vmul.f32 %v9473_v9, %v11253_v32 }
 0xdcb   :  { %9117 = vmatmul.mubr.msk.f32.vlgmr.msra.gmra.mxu0 %vm1883_vm3, %v5834_v52 }
 0xdcc   :  { %9125 = vmatpush3.msra.mxu0 %v11282_v1  ;;  %9126 = vmatprep.mubr.msk.f32.mxu0 %vm9624_vm2, %v9622_v14  ;;  %v9475_v19 = vpop.eup %9474  ;;  %v8331_v1 = vld [vmem:[%s11843_s8 + $0x50] sm:$0xff] }
 0xdcd   :  { %9134 = vmatprep.subr.mxu0 %v9622_v14  ;;  %v5835_v18 = vmul.f32 %v9475_v19, %v11257_v17 }
 0xdcf   :  { %9122 = vmatmul.mubr.msk.f32.vlgmr.msra.gmra.mxu1 %vm1883_vm3, %v5835_v18 }
 0xdd0   :  { %v9477_v5 = vpop.eup %9476  ;;  %9130 = vmatpush3.msra.mxu1 %v11313_v23  ;;  %9131 = vmatprep.mubr.msk.f32.mxu1 %vm9624_vm2, %v9622_v14 }
 0xdd1   :  { %v5836_v27 = vmul.f32 %v9477_v5, %v11262_v44  ;;  %9139 = vmatprep.subr.mxu1 %v9622_v14  ;;  %v8332_v44 = vld [vmem:[%s11843_s8 + $0x58] sm:$0xff] }
 0xdd2   :  { %v5804_v32 = vpop.xlane.xlu0 %5803 }
 0xdd3   :  { %9480 = vrcp.f32 %v5804_v32  ;;  %9127 = vmatmul.mubr.msk.f32.vlgmr.msra.gmra.mxu0 %vm1883_vm3, %v5836_v27  ;;  %v11418_v32 = vld [vmem:[%s11844_s9 + $0x1] ss:$0 sm:$0xff] }
 0xdd4   :  { %v9479_v37 = vpop.eup %9478  ;;  %9136 = vmatprep.mubr.msk.f32.mxu0 %vm9624_vm2, %v9622_v14 }
 0xdd5   :  { %v5837_v6 = vmul.f32 %v9479_v37, %v11266_v10  ;;  %v8330_v10 = vld [vmem:[%s11843_s8 + $0x48] sm:$0xff] }
 0xdd6   :  { %v4421_v17 = vpop.permute.xlu0 %4420 }
 0xdd7   :  { %9135 = vmatpush3.msra.mxu0 %v4421_v17  ;;  %9132 = vmatmul.mubr.msk.f32.vlgmr.msra.gmra.mxu1 %vm1883_vm3, %v5837_v6 }
 0xdd8   :  { %9141 = vmatprep.mubr.msk.f32.mxu1 %vm9624_vm2, %v9622_v14  ;;  %9144 = vmatprep.subr.mxu0 %v8332_v44  ;;  %v8329_v14 = vld [vmem:[%s11843_s8 + $0x40] sm:$0xff] }
 0xde0   :  { %v9481_v38 = vpop.eup %9480 }
 0xde1   :  { %v5838_v48 = vmul.f32 %v9481_v38, %v11270_v39 }
 0xde3   :  { %9137 = vmatmul.mubr.msk.f32.vlgmr.msra.gmra.mxu0 %vm1883_vm3, %v5838_v48 }
 0xde4   :  { %9145 = vmatpush3.msra.mxu0 %v8332_v44 }
 0xde5   :  { %9146 = vmatprep.subr.mxu0 %v8331_v1 }
 0xde6   :  { %9147 = vmatpush3.msra.mxu0 %v8331_v1 }
 0xde7   :  { %9148 = vmatprep.subr.mxu0 %v8330_v10 }
 0xde8   :  { %9149 = vmatpush3.msra.mxu0 %v8330_v10 }
 0xde9   :  { %9150 = vmatprep.subr.mxu0 %v8329_v14 }
 0xdea   :  { %9151 = vmatpush3.msra.mxu0 %v8329_v14 }
 0xe03   :  { %v5807_v39 = vpop.xlane.xlu1 %5806 }
 0xe04   :  { %9482 = vrcp.f32 %v5807_v39 }
 0xe07   :  { %v4423_v33 = vpop.permute.xlu1 %4422 }
 0xe08   :  { %9140 = vmatpush3.msra.mxu1 %v4423_v33 }
 0xe09   :  { %9164 = vmatprep.subr.mxu1 %v8336_v0 }
 0xe11   :  { %v9483_v12 = vpop.eup %9482 }
 0xe12   :  { %v5839_v60 = vmul.f32 %v9483_v12, %v11284_v8 }
 0xe14   :  { %9142 = vmatmul.mubr.msk.f32.vlgmr.msra.gmra.mxu1 %vm1883_vm3, %v5839_v60 }
 0xe15   :  { %9165 = vmatpush3.msra.mxu1 %v8336_v0 }
 0xe16   :  { %9166 = vmatprep.subr.mxu1 %v8335_v31 }
 0xe17   :  { %9167 = vmatpush3.msra.mxu1 %v8335_v31 }
 0xe18   :  { %9168 = vmatprep.subr.mxu1 %v8334_v7 }
 0xe19   :  { %9169 = vmatpush3.msra.mxu1 %v8334_v7 }
 0xe1a   :  { %9170 = vmatprep.subr.mxu1 %v8333_v35 }
 0xe1b   :  { %9171 = vmatpush3.msra.mxu1 %v8333_v35 }
 0xe3f   :  { %v5909_v8 = vpop.f32.mrf.mxu0 }
 0xe40   :  { %9152 = vmatprep.mubr.msk.f32.mxu0 %vm131_vm0, %v5909_v8 }
 0xe41   :  { %v9068_v58 = vpop.f32.mrf.mxu0 }
 0xe43   :  { %v6055_v22 = vpop.f32.mrf.mxu0 }
 0xe45   :  { %v9078_v53 = vpop.f32.mrf.mxu0 }
 0xe47   :  { %v6201_v21 = vpop.f32.mrf.mxu0 }
 0xe49   :  { %v9088_v16 = vpop.f32.mrf.mxu0 }
 0xe4b   :  { %v6347_v42 = vpop.f32.mrf.mxu0 }
 0xe4d   :  { %v9098_v13 = vpop.f32.mrf.mxu0 }
 0xe5a   :  { %v6493_v24 = vpop.f32.mrf.mxu0 }
 0xe5b   :  { %9172 = vmatprep.mubr.msk.f32.mxu1 %vm131_vm0, %v6493_v24 }
 0xe5c   :  { %v9108_v3 = vpop.f32.mrf.mxu0 }
 0xe6c   :  { %v5982_v29 = vpop.f32.mrf.mxu1 }
 0xe6d   :  { %9153 = vmatmul.mubr.msk.f32.vlgmr.msra.gmra.mxu0 %vm131_vm0, %v5982_v29 }
 0xe6e   :  { %v9073_v23 = vpop.f32.mrf.mxu1  ;;  %9155 = vmatprep.mubr.msk.f32.mxu0 %vm131_vm0, %v6055_v22 }
 0xe70   :  { %v6128_v51 = vpop.f32.mrf.mxu1 }
 0xe71   :  { %9156 = vmatmul.mubr.msk.f32.gmra.mxu0 %vm131_vm0, %v6128_v51 }
 0xe72   :  { %v9083_v63 = vpop.f32.mrf.mxu1  ;;  %9158 = vmatprep.mubr.msk.f32.mxu0 %vm131_vm0, %v6201_v21 }
 0xe74   :  { %v6274_v30 = vpop.f32.mrf.mxu1 }
 0xe75   :  { %9159 = vmatmul.mubr.msk.f32.gmra.mxu0 %vm131_vm0, %v6274_v30 }
 0xe76   :  { %v9093_v36 = vpop.f32.mrf.mxu1  ;;  %9161 = vmatprep.mubr.msk.f32.mxu0 %vm131_vm0, %v6347_v42 }
 0xe78   :  { %v6420_v2 = vpop.f32.mrf.mxu1 }
 0xe79   :  { %9162 = vmatmul.mubr.msk.f32.gmra.mxu0 %vm131_vm0, %v6420_v2 }
 0xe7a   :  { %v9103_v11 = vpop.f32.mrf.mxu1 }
 0xe7c   :  { %v6566_v46 = vpop.f32.mrf.mxu1 }
 0xe7d   :  { %9173 = vmatmul.mubr.msk.f32.vlgmr.msra.gmra.mxu1 %vm131_vm0, %v6566_v46 }
 0xe7e   :  { %v9113_v50 = vpop.f32.mrf.mxu1 }
 0xe8b   :  { %v6639_v41 = vpop.f32.mrf.mxu0 }
 0xe8c   :  { %9175 = vmatprep.mubr.msk.f32.mxu1 %vm131_vm0, %v6639_v41 }
 0xe8d   :  { %v9118_v57 = vpop.f32.mrf.mxu0 }
 0xe8f   :  { %v6712_v54 = vpop.f32.mrf.mxu1 }
 0xe90   :  { %9176 = vmatmul.mubr.msk.f32.gmra.mxu1 %vm131_vm0, %v6712_v54 }
 0xe91   :  { %v9123_v49 = vpop.f32.mrf.mxu1 }
 0xe93   :  { %v6785_v59 = vpop.f32.mrf.mxu0 }
 0xe94   :  { %9178 = vmatprep.mubr.msk.f32.mxu1 %vm131_vm0, %v6785_v59 }
 0xe95   :  { %v9128_v34 = vpop.f32.mrf.mxu0 }
 0xe97   :  { %v6858_v20 = vpop.f32.mrf.mxu1 }
 0xe98   :  { %9179 = vmatmul.mubr.msk.f32.gmra.mxu1 %vm131_vm0, %v6858_v20 }
 0xe99   :  { %v9133_v56 = vpop.f32.mrf.mxu1 }
 0xea3   :  { %v6931_v28 = vpop.f32.mrf.mxu0 }
 0xea4   :  { %9181 = vmatprep.mubr.msk.f32.mxu1 %vm131_vm0, %v6931_v28 }
 0xea5   :  { %v9138_v55 = vpop.f32.mrf.mxu0 }
 0xed4   :  { %v7004_v40 = vpop.f32.mrf.mxu1 }
 0xed5   :  { %9182 = vmatmul.mubr.msk.f32.gmra.mxu1 %vm131_vm0, %v7004_v40 }
 0xed6   :  { %v9143_v4 = vpop.f32.mrf.mxu1 }
 0xed7   :  { %v8366_v4 = vld [vmem:[%s11847_s12 + $0x78] sm:$0xff] }
 0xed8   :  { %9184 = vmatprep.subr.mxu0 %v8366_v4 }
 0xed9   :  { %9185 = vmatpush3.msra.mxu0 %v8366_v4 }
 0xf2d   :  { %v9154_v9 = vpop.f32.mrf.mxu0 }
 0xf2e   :  { %v7278_v18 = vsel %vm272_vm1, %v9154_v9, 0.0  ;;  %v8365_v9 = vld [vmem:[%s11847_s12 + $0x70] sm:$0xff] }
 0xf2f   :  { %v7107_v52 = vpop.f32.mrf.mxu0  ;;  %9186 = vmatprep.subr.mxu0 %v8365_v9 }
 0xf30   :  { %v7275_v17 = vsel %vm272_vm1, %v7107_v52, 0.0  ;;  %9187 = vmatpush3.msra.mxu0 %v8365_v9  ;;  %v8364_v52 = vld [vmem:[%s11847_s12 + $0x68] sm:$0xff] }
 0xf31   :  { %v9157_v12 = vpop.f32.mrf.mxu0  ;;  %9188 = vmatprep.subr.mxu0 %v8364_v52 }
 0xf32   :  { %v7284_v7 = vsel %vm272_vm1, %v9157_v12, 0.0  ;;  %9189 = vmatpush3.msra.mxu0 %v8364_v52 }
 0xf33   :  { %v7117_v60 = vpop.f32.mrf.mxu0 }
 0xf34   :  { %v7281_v22 = vsel %vm272_vm1, %v7117_v60, 0.0 }
 0xf35   :  { %v9160_v21 = vpop.f32.mrf.mxu0 }
 0xf36   :  { %v7290_v30 = vsel %vm272_vm1, %v9160_v21, 0.0 }
 0xf37   :  { %v7127_v3 = vpop.f32.mrf.mxu0 }
 0xf38   :  { %v7287_v46 = vsel %vm272_vm1, %v7127_v3, 0.0 }
 0xf3d   :  { %v9174_v19 = vpop.f32.mrf.mxu1 }
 0xf3e   :  { %v7279_v5 = vsel %vm272_vm1, %v9174_v19, 0.0  ;;  %v8363_v19 = vld [vmem:[%s11847_s12 + $0x60] sm:$0xff] }
 0xf3f   :  { %v7280_v27 = vadd.f32 %v7279_v5, %v7278_v18  ;;  %v7236_v37 = vpop.f32.mrf.mxu1  ;;  %9190 = vmatprep.subr.mxu0 %v8363_v19  ;;  %v8362_v18 = vld [vmem:[%s11847_s12 + $0x58] sm:$0xff]  ;;  %v8361_v5 = vld [vmem:[%s11847_s12 + $0x50] sm:$0xff] }
 0xf40   :  { %v7276_v6 = vsel %vm272_vm1, %v7236_v37, 0.0  ;;  %9191 = vmatpush3.msra.mxu0 %v8363_v19  ;;  %v8359_v37 = vld [vmem:[%s11847_s12 + $0x40] sm:$0xff] }
 0xf41   :  { %v7308_v44 = vadd.f32 %v11418_v32, %v7280_v27  ;;  %v7277_v38 = vadd.f32 %v7276_v6, %v7275_v17  ;;  %9192 = vmatprep.subr.mxu0 %v8362_v18  ;;  %v8360_v27 = vld [vmem:[%s11847_s12 + $0x48] sm:$0xff]  ;;  %v9163_v17 = vpop.f32.mrf.mxu0 }
 0xf42   :  { %9193 = vmatpush3.msra.mxu0 %v8362_v18 }
 0xf43   :  { %v11424_v48 = vadd.f32 %v7308_v44, %v10864_v62  ;;  %v7307_v1 = vadd.f32 %v11418_v32, %v7277_v38  ;;  %9194 = vmatprep.subr.mxu0 %v8361_v5  ;;  %v7137_v6 = vpop.f32.mrf.mxu0  ;;  %v7296_v38 = vsel %vm272_vm1, %v9163_v17, 0.0 }
 0xf44   :  { %9195 = vmatpush3.msra.mxu0 %v8361_v5  ;;  %v11534_v5 = vld [vmem:[%s11845_s10 + $0x1] ss:$0 sm:$0xff] }
 0xf45   :  { %v11428_v10 = vadd.f32 %v7307_v1, %v10857_v61  ;;  %v7330_v14 = vsel %vm272_vm1, %v11424_v48, 0.0  ;;  %v7360_v0 = vmul.f32 %v11424_v48, %v11424_v48  ;;  %9196 = vmatprep.subr.mxu0 %v8360_v27 }
 0xf46   :  { %7331 = vadd.xlane.f32.xlu1 %v7330_v14  ;;  %9197 = vmatpush3.msra.mxu0 %v8360_v27 }
 0xf47   :  { %v7327_v39 = vsel %vm272_vm1, %v11428_v10, 0.0  ;;  %v7370_v33 = vsel %vm272_vm1, %v7360_v0, 0.0  ;;  %v7359_v62 = vmul.f32 %v11428_v10, %v11428_v10  ;;  %9198 = vmatprep.subr.mxu0 %v8359_v37  ;;  %v7293_v0 = vsel %vm272_vm1, %v7137_v6, 0.0 }
 0xf48   :  { %7328 = vadd.xlane.f32.xlu0 %v7327_v39  ;;  %9199 = vmatpush3.msra.mxu0 %v8359_v37 }
 0xf49   :  { %v7367_v61 = vsel %vm272_vm1, %v7359_v62, 0.0 }
 0xf4c   :  { %7371 = vadd.xlane.f32.xlu0 %v7370_v33 }
 0xf50   :  { %v9177_v31 = vpop.f32.mrf.mxu1  ;;  %7368 = vadd.xlane.f32.xlu0 %v7367_v61 }
 0xf51   :  { %v7285_v35 = vsel %vm272_vm1, %v9177_v31, 0.0 }
 0xf52   :  { %v7286_v8 = vadd.f32 %v7285_v35, %v7284_v7  ;;  %v7246_v58 = vpop.f32.mrf.mxu1 }
 0xf53   :  { %v7282_v53 = vsel %vm272_vm1, %v7246_v58, 0.0 }
 0xf54   :  { %v7310_v16 = vadd.f32 %v11418_v32, %v7286_v8  ;;  %v7283_v42 = vadd.f32 %v7282_v53, %v7281_v22 }
 0xf56   :  { %v11446_v13 = vadd.f32 %v7310_v16, %v10881_v47  ;;  %v7309_v24 = vadd.f32 %v11418_v32, %v7283_v42 }
 0xf58   :  { %v11450_v29 = vadd.f32 %v7309_v24, %v10873_v45  ;;  %v9180_v23 = vpop.f32.mrf.mxu1  ;;  %v7336_v51 = vsel %vm272_vm1, %v11446_v13, 0.0  ;;  %v7362_v63 = vmul.f32 %v11446_v13, %v11446_v13 }
 0xf59   :  { %v7291_v36 = vsel %vm272_vm1, %v9180_v23, 0.0  ;;  %7337 = vadd.xlane.f32.xlu1 %v7336_v51 }
 0xf5a   :  { %v7292_v47 = vadd.f32 %v7291_v36, %v7290_v30  ;;  %v7256_v2 = vpop.f32.mrf.mxu1  ;;  %v7333_v11 = vsel %vm272_vm1, %v11450_v29, 0.0  ;;  %v7361_v45 = vmul.f32 %v11450_v29, %v11450_v29  ;;  %v7376_v54 = vsel %vm272_vm1, %v7362_v63, 0.0 }
 0xf5b   :  { %v7288_v50 = vsel %vm272_vm1, %v7256_v2, 0.0  ;;  %7334 = vadd.xlane.f32.xlu0 %v7333_v11 }
 0xf5c   :  { %v7312_v41 = vadd.f32 %v11418_v32, %v7292_v47  ;;  %v7289_v57 = vadd.f32 %v7288_v50, %v7287_v46  ;;  %v7373_v34 = vsel %vm272_vm1, %v7361_v45, 0.0 }
 0xf5d   :  { %7377 = vadd.xlane.f32.xlu1 %v7376_v54 }
 0xf5e   :  { %v11467_v49 = vadd.f32 %v7312_v41, %v10896_v26  ;;  %v7311_v59 = vadd.f32 %v11418_v32, %v7289_v57 }
 0xf5f   :  { %7374 = vadd.xlane.f32.xlu0 %v7373_v34 }
 0xf60   :  { %v11472_v20 = vadd.f32 %v7311_v59, %v10889_v15  ;;  %v7342_v56 = vsel %vm272_vm1, %v11467_v49, 0.0  ;;  %v7364_v28 = vmul.f32 %v11467_v49, %v11467_v49 }
 0xf61   :  { %7343 = vadd.xlane.f32.xlu1 %v7342_v56 }
 0xf62   :  { %v7339_v55 = vsel %vm272_vm1, %v11472_v20, 0.0  ;;  %v7363_v26 = vmul.f32 %v11472_v20, %v11472_v20  ;;  %v7382_v40 = vsel %vm272_vm1, %v7364_v28, 0.0 }
 0xf63   :  { %7340 = vadd.xlane.f32.xlu0 %v7339_v55 }
 0xf64   :  { %v7379_v15 = vsel %vm272_vm1, %v7363_v26, 0.0 }
 0xf65   :  { %7383 = vadd.xlane.f32.xlu1 %v7382_v40 }
 0xf67   :  { %7380 = vadd.xlane.f32.xlu0 %v7379_v15 }
 0xf95   :  { %v9183_v44 = vpop.f32.mrf.mxu1 }
 0xf96   :  { %v7297_v1 = vsel %vm272_vm1, %v9183_v44, 0.0 }
 0xf97   :  { %v7298_v14 = vadd.f32 %v7297_v1, %v7296_v38  ;;  %v7266_v39 = vpop.f32.mrf.mxu1 }
 0xf98   :  { %v7294_v33 = vsel %vm272_vm1, %v7266_v39, 0.0 }
 0xf99   :  { %v7314_v62 = vadd.f32 %v11418_v32, %v7298_v14  ;;  %v7295_v12 = vadd.f32 %v7294_v33, %v7293_v0 }
 0xf9b   :  { %v11514_v61 = vadd.f32 %v7314_v62, %v10912_v25  ;;  %v7313_v60 = vadd.f32 %v11418_v32, %v7295_v12 }
 0xf9d   :  { %v11518_v31 = vadd.f32 %v7313_v60, %v10905_v43  ;;  %v7348_v7 = vsel %vm272_vm1, %v11514_v61, 0.0  ;;  %v7366_v35 = vmul.f32 %v11514_v61, %v11514_v61 }
 0xf9e   :  { %7349 = vadd.xlane.f32.xlu1 %v7348_v7  ;;  %v11541_v7 = vld [vmem:[%s11846_s11 + $0x1] ss:$0 sm:$0xff] }
 0xf9f   :  { %v7345_v8 = vsel %vm272_vm1, %v11518_v31, 0.0  ;;  %v7365_v58 = vmul.f32 %v11518_v31, %v11518_v31  ;;  %v7388_v25 = vsel %vm272_vm1, %v7366_v35, 0.0 }
 0xfa0   :  { %7346 = vadd.xlane.f32.xlu0 %v7345_v8 }
 0xfa1   :  { %v7385_v43 = vsel %vm272_vm1, %v7365_v58, 0.0 }
 0xfa2   :  { %7389 = vadd.xlane.f32.xlu1 %v7388_v25 }
 0xfa4   :  { %7386 = vadd.xlane.f32.xlu0 %v7385_v43 }
 0xfcf   :  { %v7332_v32 = vpop.xlane.xlu1 %7331 }
 0xfd0   :  { %v7352_v53 = vmul.f32 0.015625, %v7332_v32 }
 0xfd1   :  { %v7329_v22 = vpop.xlane.xlu0 %7328 }
 0xfd2   :  { %v7400_v16 = vmul.f32 %v7352_v53, %v7352_v53  ;;  %v7351_v42 = vmul.f32 0.015625, %v7329_v22  ;;  %v7424_v26 = vsub.f32 %v11424_v48, %v7352_v53 }
 0xfd4   :  { %v7399_v51 = vmul.f32 %v7351_v42, %v7351_v42  ;;  %v7423_v17 = vsub.f32 %v11428_v10, %v7351_v42 }
 0xfd5   :  { %v7372_v21 = vpop.xlane.xlu0 %7371 }
 0xfd6   :  { %v7392_v24 = vmul.f32 0.015625, %v7372_v21 }
 0xfd8   :  { %v7408_v3 = vsub.f32 %v7392_v24, %v7400_v16 }
 0xfd9   :  { %v7369_v23 = vpop.xlane.xlu0 %7368 }
 0xfda   :  { %v7416_v63 = vmax.f32 %v7408_v3, 0.0  ;;  %v7391_v30 = vmul.f32 0.015625, %v7369_v23 }
 0xfdc   :  { %v7432_v36 = vadd.f32 1e-12, %v7416_v63  ;;  %v7407_v47 = vsub.f32 %v7391_v30, %v7399_v51 }
 0xfde   :  { %9484 = vrsqrt.f32 %v7432_v36  ;;  %v7415_v2 = vmax.f32 %v7407_v47, 0.0 }
 0xfe0   :  { %v7431_v11 = vadd.f32 1e-12, %v7415_v2 }
 0xfe2   :  { %9486 = vrsqrt.f32 %v7431_v11  ;;  %v7338_v45 = vpop.xlane.xlu1 %7337 }
 0xfe3   :  { %v7354_v46 = vmul.f32 0.015625, %v7338_v45 }
 0xfe4   :  { %v7335_v50 = vpop.xlane.xlu0 %7334 }
 0xfe5   :  { %v7353_v41 = vmul.f32 0.015625, %v7335_v50  ;;  %v7402_v54 = vmul.f32 %v7354_v46, %v7354_v46  ;;  %v7426_v53 = vsub.f32 %v11446_v13, %v7354_v46 }
 0xfe6   :  { %v7378_v57 = vpop.xlane.xlu1 %7377 }
 0xfe7   :  { %v7394_v59 = vmul.f32 0.015625, %v7378_v57  ;;  %v7401_v56 = vmul.f32 %v7353_v41, %v7353_v41  ;;  %v7425_v16 = vsub.f32 %v11450_v29, %v7353_v41 }
 0xfe8   :  { %v7375_v34 = vpop.xlane.xlu0 %7374 }
 0xfe9   :  { %v7410_v28 = vsub.f32 %v7394_v59, %v7402_v54  ;;  %v7393_v55 = vmul.f32 0.015625, %v7375_v34 }
 0xfea   :  { %v7344_v40 = vpop.xlane.xlu1 %7343 }
 0xfeb   :  { %v9485_v15 = vpop.eup %9484  ;;  %v7418_v4 = vmax.f32 %v7410_v28, 0.0  ;;  %v7409_v9 = vsub.f32 %v7393_v55, %v7401_v56  ;;  %v7356_v52 = vmul.f32 0.015625, %v7344_v40 }
 0xfec   :  { %v7448_v19 = vmul.f32 %v9485_v15, %v7424_v26  ;;  %v7341_v18 = vpop.xlane.xlu0 %7340 }
 0xfed   :  { %v7434_v27 = vadd.f32 1e-12, %v7418_v4  ;;  %v7417_v37 = vmax.f32 %v7409_v9, 0.0  ;;  %v7355_v6 = vmul.f32 0.015625, %v7341_v18  ;;  %v7404_v1 = vmul.f32 %v7356_v52, %v7356_v52  ;;  %v8392_v18 = vld [vmem:[%s11849_s14 + $0xf8] sm:$0xff] }
 0xfee   :  { %v7384_v44 = vpop.xlane.xlu1 %7383  ;;  %v7462_v39 = vmul.f32 %v11534_v5, %v7448_v19  ;;  %v7428_v63 = vsub.f32 %v11467_v49, %v7356_v52  ;;  %9212 = vmatprep.subr.mxu1 %v8392_v18 }
 0xfef   :  { %v9487_v38 = vpop.eup %9486  ;;  %9488 = vrsqrt.f32 %v7434_v27  ;;  %v7433_v48 = vadd.f32 1e-12, %v7417_v37  ;;  %v7396_v14 = vmul.f32 0.015625, %v7384_v44  ;;  %v7403_v62 = vmul.f32 %v7355_v6, %v7355_v6  ;;  %9213 = vmatpush3.msra.mxu1 %v8392_v18  ;;  %v8391_v27 = vld [vmem:[%s11849_s14 + $0xf0] sm:$0xff]  ;;  %v8390_v37 = vld [vmem:[%s11849_s14 + $0xe8] sm:$0xff]  ;;  %v8389_v44 = vld [vmem:[%s11849_s14 + $0xe0] sm:$0xff] }
 0xff0   :  { %v7381_v0 = vpop.xlane.xlu0 %7380  ;;  %v7447_v33 = vmul.f32 %v9487_v38, %v7423_v17  ;;  %v11548_v25 = vadd.f32 %v11541_v7, %v7462_v39  ;;  %v7427_v13 = vsub.f32 %v11472_v20, %v7355_v6  ;;  %9214 = vmatprep.subr.mxu1 %v8391_v27 }
 0xff1   :  { %9490 = vrsqrt.f32 %v7433_v48  ;;  %v7412_v12 = vsub.f32 %v7396_v14, %v7404_v1  ;;  %v7395_v60 = vmul.f32 0.015625, %v7381_v0  ;;  %9215 = vmatpush3.msra.mxu1 %v8391_v27  ;;  %v8388_v14 = vld [vmem:[%s11849_s14 + $0xd8] sm:$0xff]  ;;  %v8387_v0 = vld [vmem:[%s11849_s14 + $0xd0] sm:$0xff] }
 0xff2   :  { %v7461_v10 = vmul.f32 %v11534_v5, %v7447_v33  ;;  %9216 = vmatprep.subr.mxu1 %v8390_v37 }
 0xff3   :  { %v7420_v35 = vmax.f32 %v7412_v12, 0.0  ;;  %v7411_v8 = vsub.f32 %v7395_v60, %v7403_v62  ;;  %9217 = vmatpush3.msra.mxu1 %v8390_v37  ;;  %v8385_v60 = vld [vmem:[%s11849_s14 + $0xc0] sm:$0xff] }
 0xff4   :  { %v11545_v58 = vadd.f32 %v11541_v7, %v7461_v10  ;;  %9218 = vmatprep.subr.mxu1 %v8389_v44  ;;  %v8382_v10 = vld [vmem:[%s11849_s14 + $0xa8] sm:$0xff] }
 0xff5   :  { %v7436_v43 = vadd.f32 1e-12, %v7420_v35  ;;  %v7419_v32 = vmax.f32 %v7411_v8, 0.0  ;;  %9219 = vmatpush3.msra.mxu1 %v8389_v44  ;;  %v8381_v35 = vld [vmem:[%s11849_s14 + $0xa0] sm:$0xff]  ;;  %v8380_v8 = vld [vmem:[%s11849_s14 + $0x98] sm:$0xff] }
 0xff6   :  { %9200 = vmatprep.mubr.msk.f32.mxu0 %vm272_vm1, %v11545_v58  ;;  %9220 = vmatprep.subr.mxu1 %v8388_v14 }
 0xff7   :  { %9492 = vrsqrt.f32 %v7436_v43  ;;  %v7435_v22 = vadd.f32 1e-12, %v7419_v32  ;;  %9201 = vmatmul.mubr.msk.f32.vlgmr.msra.gmra.mxu0 %vm272_vm1, %v11548_v25  ;;  %9221 = vmatpush3.msra.mxu1 %v8388_v14  ;;  %v8379_v43 = vld [vmem:[%s11849_s14 + $0x90] sm:$0xff]  ;;  %v8378_v32 = vld [vmem:[%s11849_s14 + $0x88] sm:$0xff] }
 0xff8   :  { %9222 = vmatprep.subr.mxu1 %v8387_v0 }
 0xff9   :  { %9494 = vrsqrt.f32 %v7435_v22  ;;  %9223 = vmatpush3.msra.mxu1 %v8387_v0  ;;  %v8377_v22 = vld [vmem:[%s11849_s14 + $0x80] sm:$0xff] }
 0xffc   :  { %v9489_v21 = vpop.eup %9488 }
 0xffd   :  { %v7450_v42 = vmul.f32 %v9489_v21, %v7426_v53  ;;  %v11647_v53 = vld [vmem:[%s11848_s13 + $0x1] ss:$0 sm:$0xff] }
 0xffe   :  { %v9491_v24 = vpop.eup %9490 }
 0xfff   :  { %v7449_v3 = vmul.f32 %v9491_v24, %v7425_v16  ;;  %v7464_v23 = vmul.f32 %v11534_v5, %v7450_v42 }
0x1001   :  { %v7463_v51 = vmul.f32 %v11534_v5, %v7449_v3  ;;  %v11563_v47 = vadd.f32 %v11541_v7, %v7464_v23 }
0x1003   :  { %v11560_v30 = vadd.f32 %v11541_v7, %v7463_v51 }
0x1004   :  { %v9493_v36 = vpop.eup %9492 }
0x1005   :  { %9203 = vmatprep.mubr.msk.f32.mxu0 %vm272_vm1, %v11560_v30  ;;  %v7452_v29 = vmul.f32 %v9493_v36, %v7428_v63 }
0x1006   :  { %v9495_v2 = vpop.eup %9494  ;;  %9204 = vmatmul.mubr.msk.f32.gmra.mxu0 %vm272_vm1, %v11563_v47 }
0x1007   :  { %v7451_v11 = vmul.f32 %v9495_v2, %v7427_v13  ;;  %v7466_v49 = vmul.f32 %v11534_v5, %v7452_v29 }
0x1009   :  { %v7465_v45 = vmul.f32 %v11534_v5, %v7451_v11  ;;  %v11576_v50 = vadd.f32 %v11541_v7, %v7466_v49 }
0x100b   :  { %v11573_v46 = vadd.f32 %v11541_v7, %v7465_v45 }
0x100d   :  { %9206 = vmatprep.mubr.msk.f32.mxu0 %vm272_vm1, %v11573_v46 }
0x100e   :  { %9207 = vmatmul.mubr.msk.f32.gmra.mxu0 %vm272_vm1, %v11576_v50 }
0x1027   :  { %v7350_v20 = vpop.xlane.xlu1 %7349 }
0x1028   :  { %v7358_v41 = vmul.f32 0.015625, %v7350_v20 }
0x1029   :  { %v7347_v57 = vpop.xlane.xlu0 %7346 }
0x102a   :  { %v7357_v54 = vmul.f32 0.015625, %v7347_v57  ;;  %v7406_v34 = vmul.f32 %v7358_v41, %v7358_v41  ;;  %v7430_v17 = vsub.f32 %v11514_v61, %v7358_v41 }
0x102b   :  { %v7390_v59 = vpop.xlane.xlu1 %7389 }
0x102c   :  { %v7398_v56 = vmul.f32 0.015625, %v7390_v59  ;;  %v7405_v55 = vmul.f32 %v7357_v54, %v7357_v54  ;;  %v7429_v38 = vsub.f32 %v11518_v31, %v7357_v54  ;;  %v8386_v31 = vld [vmem:[%s11849_s14 + $0xc8] sm:$0xff] }
0x102d   :  { %v7387_v28 = vpop.xlane.xlu0 %7386  ;;  %9224 = vmatprep.subr.mxu1 %v8386_v31 }
0x102e   :  { %v7414_v26 = vsub.f32 %v7398_v56, %v7406_v34  ;;  %v7397_v40 = vmul.f32 0.015625, %v7387_v28  ;;  %9225 = vmatpush3.msra.mxu1 %v8386_v31 }
0x102f   :  { %9226 = vmatprep.subr.mxu1 %v8385_v60 }
0x1030   :  { %v7422_v15 = vmax.f32 %v7414_v26, 0.0  ;;  %v7413_v4 = vsub.f32 %v7397_v40, %v7405_v55  ;;  %9227 = vmatpush3.msra.mxu1 %v8385_v60 }
0x1032   :  { %v7438_v9 = vadd.f32 1e-12, %v7422_v15  ;;  %v7421_v52 = vmax.f32 %v7413_v4, 0.0 }
0x1034   :  { %9496 = vrsqrt.f32 %v7438_v9  ;;  %v7437_v19 = vadd.f32 1e-12, %v7421_v52 }
0x1036   :  { %9498 = vrsqrt.f32 %v7437_v19 }
0x1041   :  { %v9497_v6 = vpop.eup %9496 }
0x1042   :  { %v7454_v48 = vmul.f32 %v9497_v6, %v7430_v17 }
0x1043   :  { %v9499_v1 = vpop.eup %9498 }
0x1044   :  { %v7453_v39 = vmul.f32 %v9499_v1, %v7429_v38  ;;  %v7468_v61 = vmul.f32 %v11534_v5, %v7454_v48 }
0x1046   :  { %v7467_v33 = vmul.f32 %v11534_v5, %v7453_v39  ;;  %v11611_v12 = vadd.f32 %v11541_v7, %v7468_v61  ;;  %v8384_v5 = vld [vmem:[%s11849_s14 + $0xb8] sm:$0xff] }
0x1047   :  { %9228 = vmatprep.subr.mxu1 %v8384_v5 }
0x1048   :  { %v11608_v62 = vadd.f32 %v11541_v7, %v7467_v33  ;;  %9229 = vmatpush3.msra.mxu1 %v8384_v5  ;;  %v8383_v7 = vld [vmem:[%s11849_s14 + $0xb0] sm:$0xff] }
0x1049   :  { %9230 = vmatprep.subr.mxu1 %v8383_v7 }
0x104a   :  { %9209 = vmatprep.mubr.msk.f32.mxu0 %vm272_vm1, %v11608_v62  ;;  %9231 = vmatpush3.msra.mxu1 %v8383_v7 }
0x104b   :  { %9210 = vmatmul.mubr.msk.f32.gmra.mxu0 %vm272_vm1, %v11611_v12  ;;  %9232 = vmatprep.subr.mxu1 %v8382_v10 }
0x104c   :  { %9233 = vmatpush3.msra.mxu1 %v8382_v10 }
0x104d   :  { %9234 = vmatprep.subr.mxu1 %v8381_v35 }
0x104e   :  { %9235 = vmatpush3.msra.mxu1 %v8381_v35 }
0x104f   :  { %9236 = vmatprep.subr.mxu1 %v8380_v8 }
0x1050   :  { %9237 = vmatpush3.msra.mxu1 %v8380_v8 }
0x1051   :  { %9238 = vmatprep.subr.mxu1 %v8379_v43 }
0x1052   :  { %9239 = vmatpush3.msra.mxu1 %v8379_v43 }
0x1053   :  { %9240 = vmatprep.subr.mxu1 %v8378_v32 }
0x1054   :  { %9241 = vmatpush3.msra.mxu1 %v8378_v32 }
0x1055   :  { %9242 = vmatprep.subr.mxu1 %v8377_v22 }
0x1056   :  { %9243 = vmatpush3.msra.mxu1 %v8377_v22 }
0x10b7   :  { %v9202_v21 = vpop.f32.mrf.mxu0 }
0x10b8   :  { %v7596_v16 = vadd.f32 %v9202_v21, %v11647_v53 }
0x10b9   :  { %v7590_v42 = vpop.f32.mrf.mxu0 }
0x10ba   :  { %v7630_v24 = vmul.f32 %v7596_v16, %v7596_v16  ;;  %v7591_v3 = vadd.f32 %v11647_v53, %v7590_v42 }
0x10bc   :  { %v7638_v23 = vmul.f32 %v7630_v24, %v7596_v16  ;;  %v7629_v51 = vmul.f32 %v7591_v3, %v7591_v3 }
0x10be   :  { %v7646_v63 = vmul.f32 0.044715, %v7638_v23  ;;  %v7637_v36 = vmul.f32 %v7629_v51, %v7591_v3 }
0x10c0   :  { %v7654_v13 = vadd.f32 %v7646_v63, %v7596_v16  ;;  %v7645_v29 = vmul.f32 0.044715, %v7637_v36 }
0x10c2   :  { %v7662_v2 = vmul.f32 0.7978846, %v7654_v13  ;;  %v7653_v11 = vadd.f32 %v7645_v29, %v7591_v3 }
0x10c4   :  { %9500 = vtanh.f32 %v7662_v2  ;;  %v7661_v49 = vmul.f32 0.7978846, %v7653_v11 }
0x10c6   :  { %9502 = vtanh.f32 %v7661_v49  ;;  %v9205_v45 = vpop.f32.mrf.mxu0 }
0x10c7   :  { %v7606_v20 = vadd.f32 %v9205_v45, %v11647_v53 }
0x10c8   :  { %v7600_v41 = vpop.f32.mrf.mxu0 }
0x10c9   :  { %v7632_v57 = vmul.f32 %v7606_v20, %v7606_v20  ;;  %v7601_v54 = vadd.f32 %v11647_v53, %v7600_v41 }
0x10cb   :  { %v7640_v59 = vmul.f32 %v7632_v57, %v7606_v20  ;;  %v7631_v34 = vmul.f32 %v7601_v54, %v7601_v54 }
0x10cd   :  { %v7648_v56 = vmul.f32 0.044715, %v7640_v59  ;;  %v7639_v28 = vmul.f32 %v7631_v34, %v7601_v54 }
0x10ce   :  { %v9208_v55 = vpop.f32.mrf.mxu0 }
0x10cf   :  { %v7656_v26 = vadd.f32 %v7648_v56, %v7606_v20  ;;  %v7647_v40 = vmul.f32 0.044715, %v7639_v28  ;;  %v7616_v15 = vadd.f32 %v9208_v55, %v11647_v53 }
0x10d0   :  { %v7610_v4 = vpop.f32.mrf.mxu0 }
0x10d1   :  { %v9501_v9 = vpop.eup %9500  ;;  %v7664_v52 = vmul.f32 0.7978846, %v7656_v26  ;;  %v7655_v19 = vadd.f32 %v7647_v40, %v7601_v54  ;;  %v7634_v18 = vmul.f32 %v7616_v15, %v7616_v15  ;;  %v7611_v27 = vadd.f32 %v11647_v53, %v7610_v4 }
0x10d2   :  { %v7678_v37 = vadd.f32 1.0, %v9501_v9 }
0x10d3   :  { %v9503_v17 = vpop.eup %9502  ;;  %9504 = vtanh.f32 %v7664_v52  ;;  %v7663_v6 = vmul.f32 0.7978846, %v7655_v19  ;;  %v7642_v44 = vmul.f32 %v7634_v18, %v7616_v15  ;;  %v7633_v38 = vmul.f32 %v7611_v27, %v7611_v27 }
0x10d4   :  { %v7677_v48 = vadd.f32 1.0, %v9503_v17  ;;  %v7686_v1 = vmul.f32 0.5, %v7678_v37 }
0x10d5   :  { %9506 = vtanh.f32 %v7663_v6  ;;  %v7650_v14 = vmul.f32 0.044715, %v7642_v44  ;;  %v7641_v39 = vmul.f32 %v7633_v38, %v7611_v27 }
0x10d6   :  { %v7685_v61 = vmul.f32 0.5, %v7677_v48  ;;  %v7694_v60 = vmul.f32 %v7686_v1, %v7596_v16 }
0x10d7   :  { %v7658_v0 = vadd.f32 %v7650_v14, %v7616_v15  ;;  %v7649_v33 = vmul.f32 0.044715, %v7641_v39 }
0x10d8   :  { %v7693_v31 = vmul.f32 %v7685_v61, %v7591_v3 }
0x10d9   :  { %v7666_v5 = vmul.f32 0.7978846, %v7658_v0  ;;  %v7657_v7 = vadd.f32 %v7649_v33, %v7611_v27 }
0x10da   :  { %9244 = vmatprep.mubr.f32.mxu1 %v7693_v31 }
0x10db   :  { %9508 = vtanh.f32 %v7666_v5  ;;  %v7665_v10 = vmul.f32 0.7978846, %v7657_v7  ;;  %9245 = vmatmul.mubr.f32.vlgmr.msra.gmra.mxu1 %v7694_v60 }
0x10dd   :  { %9510 = vtanh.f32 %v7665_v10 }
0x10e0   :  { %v9505_v35 = vpop.eup %9504 }
0x10e1   :  { %v7680_v8 = vadd.f32 1.0, %v9505_v35 }
0x10e2   :  { %v9507_v43 = vpop.eup %9506 }
0x10e3   :  { %v7679_v32 = vadd.f32 1.0, %v9507_v43  ;;  %v7688_v22 = vmul.f32 0.5, %v7680_v8 }
0x10e5   :  { %v7687_v21 = vmul.f32 0.5, %v7679_v32  ;;  %v7696_v23 = vmul.f32 %v7688_v22, %v7606_v20 }
0x10e7   :  { %v7695_v42 = vmul.f32 %v7687_v21, %v7601_v54 }
0x10e8   :  { %v9509_v24 = vpop.eup %9508 }
0x10e9   :  { %9247 = vmatprep.mubr.f32.mxu1 %v7695_v42  ;;  %v7682_v51 = vadd.f32 1.0, %v9509_v24 }
0x10ea   :  { %v9511_v3 = vpop.eup %9510  ;;  %9248 = vmatmul.mubr.f32.gmra.mxu1 %v7696_v23 }
0x10eb   :  { %v7681_v16 = vadd.f32 1.0, %v9511_v3  ;;  %v7690_v63 = vmul.f32 0.5, %v7682_v51 }
0x10ed   :  { %v7689_v36 = vmul.f32 0.5, %v7681_v16  ;;  %v7698_v29 = vmul.f32 %v7690_v63, %v7616_v15 }
0x10ef   :  { %v7697_v13 = vmul.f32 %v7689_v36, %v7611_v27  ;;  %v8006_v36 = vld [vmem:[%s11853_s18 + $0x38] sm:$0xff] }
0x10f0   :  { %9256 = vmatprep.subr.mxu0 %v8006_v36 }
0x10f1   :  { %9250 = vmatprep.mubr.f32.mxu1 %v7697_v13  ;;  %9257 = vmatpush3.msra.mxu0 %v8006_v36  ;;  %v8005_v13 = vld [vmem:[%s11853_s18 + $0x30] sm:$0xff] }
0x10f2   :  { %9251 = vmatmul.mubr.f32.gmra.mxu1 %v7698_v29  ;;  %9258 = vmatprep.subr.mxu0 %v8005_v13  ;;  %v8004_v29 = vld [vmem:[%s11853_s18 + $0x28] sm:$0xff] }
0x10f3   :  { %9259 = vmatpush3.msra.mxu0 %v8005_v13 }
0x10f4   :  { %9260 = vmatprep.subr.mxu0 %v8004_v29 }
0x10f5   :  { %9261 = vmatpush3.msra.mxu0 %v8004_v29 }
0x110b   :  { %v9211_v2 = vpop.f32.mrf.mxu0 }
0x110c   :  { %v7626_v11 = vadd.f32 %v9211_v2, %v11647_v53  ;;  %v8003_v2 = vld [vmem:[%s11853_s18 + $0x20] sm:$0xff] }
0x110d   :  { %v7620_v49 = vpop.f32.mrf.mxu0  ;;  %9262 = vmatprep.subr.mxu0 %v8003_v2 }
0x110e   :  { %v7636_v45 = vmul.f32 %v7626_v11, %v7626_v11  ;;  %v7621_v41 = vadd.f32 %v11647_v53, %v7620_v49  ;;  %v11660_v53 = vld [vmem:[%s11850_s15 + $0x1] ss:$0 sm:$0xff]  ;;  %9263 = vmatpush3.msra.mxu0 %v8003_v2  ;;  %v8001_v49 = vld [vmem:[%s11853_s18 + $0x10] sm:$0xff] }
0x1110   :  { %v7644_v57 = vmul.f32 %v7636_v45, %v7626_v11  ;;  %v7635_v20 = vmul.f32 %v7621_v41, %v7621_v41  ;;  %v8000_v45 = vld [vmem:[%s11853_s18 + $0x8] sm:$0xff] }
0x1112   :  { %v7652_v54 = vmul.f32 0.044715, %v7644_v57  ;;  %v7643_v59 = vmul.f32 %v7635_v20, %v7621_v41 }
0x1114   :  { %v7660_v34 = vadd.f32 %v7652_v54, %v7626_v11  ;;  %v7651_v56 = vmul.f32 0.044715, %v7643_v59 }
0x1116   :  { %v7668_v28 = vmul.f32 0.7978846, %v7660_v34  ;;  %v7659_v55 = vadd.f32 %v7651_v56, %v7621_v41 }
0x1118   :  { %9512 = vtanh.f32 %v7668_v28  ;;  %v7667_v26 = vmul.f32 0.7978846, %v7659_v55 }
0x111a   :  { %9514 = vtanh.f32 %v7667_v26 }
0x1125   :  { %v9513_v40 = vpop.eup %9512 }
0x1126   :  { %v7684_v15 = vadd.f32 1.0, %v9513_v40 }
0x1127   :  { %v9515_v4 = vpop.eup %9514 }
0x1128   :  { %v7683_v9 = vadd.f32 1.0, %v9515_v4  ;;  %v7692_v52 = vmul.f32 0.5, %v7684_v15 }
0x112a   :  { %v7691_v19 = vmul.f32 0.5, %v7683_v9  ;;  %v7700_v27 = vmul.f32 %v7692_v52, %v7626_v11  ;;  %v8002_v11 = vld [vmem:[%s11853_s18 + $0x18] sm:$0xff] }
0x112b   :  { %9264 = vmatprep.subr.mxu0 %v8002_v11 }
0x112c   :  { %v7699_v18 = vmul.f32 %v7691_v19, %v7621_v41  ;;  %9265 = vmatpush3.msra.mxu0 %v8002_v11  ;;  %v7999_v41 = vld [vmem:[%s11853_s18] sm:$0xff] }
0x112d   :  { %9266 = vmatprep.subr.mxu0 %v8001_v49 }
0x112e   :  { %9253 = vmatprep.mubr.f32.mxu1 %v7699_v18  ;;  %9267 = vmatpush3.msra.mxu0 %v8001_v49 }
0x112f   :  { %9254 = vmatmul.mubr.f32.gmra.mxu1 %v7700_v27  ;;  %9268 = vmatprep.subr.mxu0 %v8000_v45 }
0x1130   :  { %9269 = vmatpush3.msra.mxu0 %v8000_v45 }
0x1131   :  { %9270 = vmatprep.subr.mxu0 %v7999_v41 }
0x1132   :  { %9271 = vmatpush3.msra.mxu0 %v7999_v41 }
0x119b   :  { %v9246_v37 = vpop.f32.mrf.mxu1 }
0x119c   :  { %v7798_v17 = vadd.f32 %v9246_v37, %v11660_v53 }
0x119d   :  { %v7792_v6 = vpop.f32.mrf.mxu1 }
0x119e   :  { %v11664_v44 = vadd.f32 %v7798_v17, %v11548_v25  ;;  %v7793_v38 = vadd.f32 %v11660_v53, %v7792_v6 }
0x11a0   :  { %v11668_v48 = vadd.f32 %v7793_v38, %v11545_v58  ;;  %v7846_v1 = vsel %vm272_vm1, %v11664_v44, 0.0  ;;  %v7876_v14 = vmul.f32 %v11664_v44, %v11664_v44 }
0x11a1   :  { %7847 = vadd.xlane.f32.xlu1 %v7846_v1 }
0x11a2   :  { %v7843_v39 = vsel %vm272_vm1, %v11668_v48, 0.0  ;;  %v7875_v61 = vmul.f32 %v11668_v48, %v11668_v48  ;;  %v7886_v25 = vsel %vm272_vm1, %v7876_v14, 0.0 }
0x11a3   :  { %7844 = vadd.xlane.f32.xlu0 %v7843_v39 }
0x11a4   :  { %v7883_v58 = vsel %vm272_vm1, %v7875_v61, 0.0 }
0x11a5   :  { %7887 = vadd.xlane.f32.xlu1 %v7886_v25 }
0x11a7   :  { %7884 = vadd.xlane.f32.xlu0 %v7883_v58 }
0x11aa   :  { %v9249_v0 = vpop.f32.mrf.mxu1 }
0x11ab   :  { %v7808_v33 = vadd.f32 %v9249_v0, %v11660_v53 }
0x11ac   :  { %v7802_v31 = vpop.f32.mrf.mxu1 }
0x11ad   :  { %v11682_v60 = vadd.f32 %v7808_v33, %v11563_v47  ;;  %v7803_v5 = vadd.f32 %v11660_v53, %v7802_v31 }
0x11af   :  { %v11686_v7 = vadd.f32 %v7803_v5, %v11560_v30  ;;  %v7852_v10 = vsel %vm272_vm1, %v11682_v60, 0.0  ;;  %v7878_v35 = vmul.f32 %v11682_v60, %v11682_v60 }
0x11b0   :  { %7853 = vadd.xlane.f32.xlu1 %v7852_v10 }
0x11b1   :  { %v7849_v8 = vsel %vm272_vm1, %v11686_v7, 0.0  ;;  %v7877_v43 = vmul.f32 %v11686_v7, %v11686_v7  ;;  %v7892_v30 = vsel %vm272_vm1, %v7878_v35, 0.0 }
0x11b2   :  { %v9252_v47 = vpop.f32.mrf.mxu1  ;;  %7850 = vadd.xlane.f32.xlu0 %v7849_v8 }
0x11b3   :  { %v7818_v32 = vadd.f32 %v9252_v47, %v11660_v53  ;;  %v7889_v24 = vsel %vm272_vm1, %v7877_v43, 0.0 }
0x11b4   :  { %7893 = vadd.xlane.f32.xlu1 %v7892_v30  ;;  %v7812_v22 = vpop.f32.mrf.mxu1 }
0x11b5   :  { %v11699_v21 = vadd.f32 %v7818_v32, %v11576_v50  ;;  %v7813_v42 = vadd.f32 %v11660_v53, %v7812_v22 }
0x11b6   :  { %7890 = vadd.xlane.f32.xlu0 %v7889_v24 }
0x11b7   :  { %v11704_v23 = vadd.f32 %v7813_v42, %v11573_v46  ;;  %v7858_v51 = vsel %vm272_vm1, %v11699_v21, 0.0  ;;  %v7880_v3 = vmul.f32 %v11699_v21, %v11699_v21 }
0x11b8   :  { %7859 = vadd.xlane.f32.xlu1 %v7858_v51 }
0x11b9   :  { %v7855_v16 = vsel %vm272_vm1, %v11704_v23, 0.0  ;;  %v7879_v50 = vmul.f32 %v11704_v23, %v11704_v23  ;;  %v7898_v63 = vsel %vm272_vm1, %v7880_v3, 0.0 }
0x11ba   :  { %7856 = vadd.xlane.f32.xlu0 %v7855_v16  ;;  %v11762_v16 = vld [vmem:[%s11851_s16 + $0x1] ss:$0 sm:$0xff] }
0x11bb   :  { %v7895_v46 = vsel %vm272_vm1, %v7879_v50, 0.0 }
0x11bc   :  { %7899 = vadd.xlane.f32.xlu1 %v7898_v63 }
0x11be   :  { %7896 = vadd.xlane.f32.xlu0 %v7895_v46 }
0x11ef   :  { %v9255_v57 = vpop.f32.mrf.mxu1 }
0x11f0   :  { %v7828_v20 = vadd.f32 %v9255_v57, %v11660_v53 }
0x11f1   :  { %v7822_v54 = vpop.f32.mrf.mxu1 }
0x11f2   :  { %v11742_v59 = vadd.f32 %v7828_v20, %v11611_v12  ;;  %v7823_v34 = vadd.f32 %v11660_v53, %v7822_v54 }
0x11f4   :  { %v11746_v56 = vadd.f32 %v7823_v34, %v11608_v62  ;;  %v7864_v28 = vsel %vm272_vm1, %v11742_v59, 0.0  ;;  %v7882_v55 = vmul.f32 %v11742_v59, %v11742_v59 }
0x11f5   :  { %7865 = vadd.xlane.f32.xlu1 %v7864_v28 }
0x11f6   :  { %v7861_v26 = vsel %vm272_vm1, %v11746_v56, 0.0  ;;  %v7881_v40 = vmul.f32 %v11746_v56, %v11746_v56  ;;  %v7904_v12 = vsel %vm272_vm1, %v7882_v55, 0.0 }
0x11f7   :  { %7862 = vadd.xlane.f32.xlu0 %v7861_v26 }
0x11f8   :  { %v7901_v62 = vsel %vm272_vm1, %v7881_v40, 0.0 }
0x11f9   :  { %7905 = vadd.xlane.f32.xlu1 %v7904_v12 }
0x11fb   :  { %7902 = vadd.xlane.f32.xlu0 %v7901_v62 }
0x122a   :  { %v7848_v15 = vpop.xlane.xlu1 %7847 }
0x122b   :  { %v7868_v4 = vmul.f32 0.015625, %v7848_v15 }
0x122c   :  { %v7845_v9 = vpop.xlane.xlu0 %7844 }
0x122d   :  { %v7867_v52 = vmul.f32 0.015625, %v7845_v9  ;;  %v7916_v18 = vmul.f32 %v7868_v4, %v7868_v4  ;;  %v7940_v24 = vsub.f32 %v11664_v44, %v7868_v4 }
0x122e   :  { %v7888_v19 = vpop.xlane.xlu1 %7887 }
0x122f   :  { %v7908_v27 = vmul.f32 0.015625, %v7888_v19  ;;  %v7915_v37 = vmul.f32 %v7867_v52, %v7867_v52  ;;  %v7939_v46 = vsub.f32 %v11668_v48, %v7867_v52  ;;  %v11769_v48 = vld [vmem:[%s11852_s17 + $0x1] ss:$0 sm:$0xff] }
0x1230   :  { %v7885_v53 = vpop.xlane.xlu0 %7884 }
0x1231   :  { %v7924_v17 = vsub.f32 %v7908_v27, %v7916_v18  ;;  %v7907_v6 = vmul.f32 0.015625, %v7885_v53 }
0x1233   :  { %v7932_v38 = vmax.f32 %v7924_v17, 0.0  ;;  %v7923_v1 = vsub.f32 %v7907_v6, %v7915_v37 }
0x1235   :  { %v7948_v14 = vadd.f32 1e-12, %v7932_v38  ;;  %v7931_v39 = vmax.f32 %v7923_v1, 0.0 }
0x1237   :  { %9516 = vrsqrt.f32 %v7948_v14  ;;  %v7947_v61 = vadd.f32 1e-12, %v7931_v39 }
0x1239   :  { %9518 = vrsqrt.f32 %v7947_v61  ;;  %v7854_v25 = vpop.xlane.xlu1 %7853 }
0x123a   :  { %v7870_v58 = vmul.f32 0.015625, %v7854_v25 }
0x123b   :  { %v7851_v0 = vpop.xlane.xlu0 %7850 }
0x123c   :  { %v7869_v33 = vmul.f32 0.015625, %v7851_v0  ;;  %v7918_v5 = vmul.f32 %v7870_v58, %v7870_v58  ;;  %v7942_v9 = vsub.f32 %v11682_v60, %v7870_v58 }
0x123d   :  { %v7894_v31 = vpop.xlane.xlu1 %7893 }
0x123e   :  { %v7910_v10 = vmul.f32 0.015625, %v7894_v31  ;;  %v7917_v8 = vmul.f32 %v7869_v33, %v7869_v33  ;;  %v7941_v19 = vsub.f32 %v11686_v7, %v7869_v33 }
0x123f   :  { %v7891_v35 = vpop.xlane.xlu0 %7890 }
0x1240   :  { %v7926_v43 = vsub.f32 %v7910_v10, %v7918_v5  ;;  %v7909_v47 = vmul.f32 0.015625, %v7891_v35 }
0x1241   :  { %v7860_v32 = vpop.xlane.xlu1 %7859 }
0x1242   :  { %v7934_v30 = vmax.f32 %v7926_v43, 0.0  ;;  %v7925_v22 = vsub.f32 %v7909_v47, %v7917_v8  ;;  %v7872_v42 = vmul.f32 0.015625, %v7860_v32 }
0x1243   :  { %v7857_v51 = vpop.xlane.xlu0 %7856 }
0x1244   :  { %v9517_v3 = vpop.eup %9516  ;;  %v7950_v50 = vadd.f32 1e-12, %v7934_v30  ;;  %v7933_v63 = vmax.f32 %v7925_v22, 0.0  ;;  %v7871_v13 = vmul.f32 0.015625, %v7857_v51  ;;  %v7920_v49 = vmul.f32 %v7872_v42, %v7872_v42 }
0x1245   :  { %v7964_v36 = vmul.f32 %v9517_v3, %v7940_v24  ;;  %v7900_v29 = vpop.xlane.xlu1 %7899  ;;  %v7944_v6 = vsub.f32 %v11699_v21, %v7872_v42 }
0x1246   :  { %v9519_v2 = vpop.eup %9518  ;;  %9520 = vrsqrt.f32 %v7950_v50  ;;  %v7949_v11 = vadd.f32 1e-12, %v7933_v63  ;;  %v7912_v45 = vmul.f32 0.015625, %v7900_v29  ;;  %v7919_v20 = vmul.f32 %v7871_v13, %v7871_v13 }
0x1247   :  { %v7978_v44 = vmul.f32 %v11762_v16, %v7964_v36  ;;  %v7897_v41 = vpop.xlane.xlu0 %7896  ;;  %v7963_v57 = vmul.f32 %v9519_v2, %v7939_v46  ;;  %v7943_v39 = vsub.f32 %v11704_v23, %v7871_v13 }
0x1248   :  { %9522 = vrsqrt.f32 %v7949_v11  ;;  %v7928_v54 = vsub.f32 %v7912_v45, %v7920_v49  ;;  %v7911_v34 = vmul.f32 0.015625, %v7897_v41 }
0x1249   :  { %v7977_v28 = vmul.f32 %v11762_v16, %v7963_v57  ;;  %v7992_v12 = vadd.f32 %v11769_v48, %v7978_v44 }
0x124a   :  { %v7936_v55 = vmax.f32 %v7928_v54, 0.0  ;;  %v7927_v26 = vsub.f32 %v7911_v34, %v7919_v20 }
0x124b   :  { %v7991_v40 = vadd.f32 %v11769_v48, %v7977_v28 }
0x124c   :  { %v7952_v62 = vadd.f32 1e-12, %v7936_v55  ;;  %v7935_v15 = vmax.f32 %v7927_v26, 0.0 }
0x124d   :  { %9272 = vmatprep.mubr.msk.f32.mxu0 %vm272_vm1, %v7991_v40 }
0x124e   :  { %9524 = vrsqrt.f32 %v7952_v62  ;;  %v7951_v4 = vadd.f32 1e-12, %v7935_v15  ;;  %9273 = vmatmul.mubr.msk.f32.vlgmr.msra.gmra.mxu0 %vm272_vm1, %v7992_v12 }
0x1250   :  { %9526 = vrsqrt.f32 %v7951_v4 }
0x1253   :  { %v9521_v52 = vpop.eup %9520 }
0x1254   :  { %v7966_v18 = vmul.f32 %v9521_v52, %v7942_v9 }
0x1255   :  { %v9523_v27 = vpop.eup %9522 }
0x1256   :  { %v7965_v53 = vmul.f32 %v9523_v27, %v7941_v19  ;;  %v7980_v37 = vmul.f32 %v11762_v16, %v7966_v18 }
0x1258   :  { %v7979_v17 = vmul.f32 %v11762_v16, %v7965_v53  ;;  %v7994_v14 = vadd.f32 %v11769_v48, %v7980_v37 }
0x125a   :  { %v7993_v38 = vadd.f32 %v11769_v48, %v7979_v17 }
0x125b   :  { %v9525_v1 = vpop.eup %9524 }
0x125c   :  { %9275 = vmatprep.mubr.msk.f32.mxu0 %vm272_vm1, %v7993_v38  ;;  %v7968_v60 = vmul.f32 %v9525_v1, %v7944_v6 }
0x125d   :  { %v9527_v7 = vpop.eup %9526  ;;  %9276 = vmatmul.mubr.msk.f32.gmra.mxu0 %vm272_vm1, %v7994_v14 }
0x125e   :  { %v7967_v61 = vmul.f32 %v9527_v7, %v7943_v39  ;;  %v7982_v25 = vmul.f32 %v11762_v16, %v7968_v60 }
0x1260   :  { %v7981_v58 = vmul.f32 %v11762_v16, %v7967_v61  ;;  %v7996_v0 = vadd.f32 %v11769_v48, %v7982_v25 }
0x1262   :  { %v7995_v21 = vadd.f32 %v11769_v48, %v7981_v58 }
0x1264   :  { %9278 = vmatprep.mubr.msk.f32.mxu0 %vm272_vm1, %v7995_v21 }
0x1265   :  { %9279 = vmatmul.mubr.msk.f32.gmra.mxu0 %vm272_vm1, %v7996_v0 }
0x127e   :  { %v7866_v23 = vpop.xlane.xlu1 %7865 }
0x127f   :  { %v7874_v33 = vmul.f32 0.015625, %v7866_v23 }
0x1280   :  { %v7863_v31 = vpop.xlane.xlu0 %7862 }
0x1281   :  { %v7873_v5 = vmul.f32 0.015625, %v7863_v31  ;;  %v7922_v35 = vmul.f32 %v7874_v33, %v7874_v33  ;;  %v7946_v50 = vsub.f32 %v11742_v59, %v7874_v33  ;;  %v8399_v59 = vld [vmem:[%s11854_s19] ss:$0 sm:$0xff] }
0x1282   :  { %v7906_v10 = vpop.xlane.xlu1 %7905 }
0x1283   :  { %v7914_v8 = vmul.f32 0.015625, %v7906_v10  ;;  %v7921_v47 = vmul.f32 %v7873_v5, %v7873_v5  ;;  %v7945_v46 = vsub.f32 %v11746_v56, %v7873_v5 }
0x1284   :  { %v7903_v43 = vpop.xlane.xlu0 %7902 }
0x1285   :  { %v7930_v32 = vsub.f32 %v7914_v8, %v7922_v35  ;;  %v7913_v30 = vmul.f32 0.015625, %v7903_v43 }
0x1287   :  { %v7938_v22 = vmax.f32 %v7930_v32, 0.0  ;;  %v7929_v42 = vsub.f32 %v7913_v30, %v7921_v47 }
0x1289   :  { %v7954_v24 = vadd.f32 1e-12, %v7938_v22  ;;  %v7937_v51 = vmax.f32 %v7929_v42, 0.0 }
0x128b   :  { %9528 = vrsqrt.f32 %v7954_v24  ;;  %v7953_v3 = vadd.f32 1e-12, %v7937_v51 }
0x128d   :  { %9530 = vrsqrt.f32 %v7953_v3 }
0x1298   :  { %v9529_v63 = vpop.eup %9528 }
0x1299   :  { %v7970_v36 = vmul.f32 %v9529_v63, %v7946_v50 }
0x129a   :  { %v9531_v13 = vpop.eup %9530 }
0x129b   :  { %v7969_v29 = vmul.f32 %v9531_v13, %v7945_v46  ;;  %v7984_v2 = vmul.f32 %v11762_v16, %v7970_v36 }
0x129d   :  { %v7983_v11 = vmul.f32 %v11762_v16, %v7969_v29  ;;  %v7998_v45 = vadd.f32 %v11769_v48, %v7984_v2 }
0x129f   :  { %v7997_v49 = vadd.f32 %v11769_v48, %v7983_v11 }
0x12a1   :  { %9281 = vmatprep.mubr.msk.f32.mxu0 %vm272_vm1, %v7997_v49 }
0x12a2   :  { %9282 = vmatmul.mubr.msk.f32.gmra.mxu0 %vm272_vm1, %v7998_v45 }
0x130e   :  { %v9274_v56 = vpop.f32.mrf.mxu0 }
0x130f   :  { %v8110_v44 = vadd.f32 %v9274_v56, %v8399_v59 }
0x1310   :  { %v8104_v41 = vpop.f32.mrf.mxu0 }
0x1311   :  { %8144 = vst.msk [vmem:[%s11855_s20 + $0x8] sm:$0xff] %vm131_vm0, %v8110_v44  ;;  %v8105_v16 = vadd.f32 %v8399_v59, %v8104_v41 }
0x1313   :  { %8143 = vst.msk [vmem:[%s11855_s20] sm:$0xff] %vm131_vm0, %v8105_v16 }
0x131d   :  { %v9277_v57 = vpop.f32.mrf.mxu0 }
0x131e   :  { %v8120_v20 = vadd.f32 %v9277_v57, %v8399_v59 }
0x131f   :  { %v8114_v54 = vpop.f32.mrf.mxu0 }
0x1320   :  { %8146 = vst.msk [vmem:[%s11855_s20 + $0x18] sm:$0xff] %vm131_vm0, %v8120_v20  ;;  %v8115_v34 = vadd.f32 %v8399_v59, %v8114_v54 }
0x1322   :  { %8145 = vst.msk [vmem:[%s11855_s20 + $0x10] sm:$0xff] %vm131_vm0, %v8115_v34 }
0x1325   :  { %v9280_v48 = vpop.f32.mrf.mxu0 }
0x1326   :  { %v8130_v28 = vadd.f32 %v9280_v48, %v8399_v59 }
0x1327   :  { %v8124_v55 = vpop.f32.mrf.mxu0 }
0x1328   :  { %8148 = vst.msk [vmem:[%s11855_s20 + $0x28] sm:$0xff] %vm131_vm0, %v8130_v28  ;;  %v8125_v26 = vadd.f32 %v8399_v59, %v8124_v55 }
0x132a   :  { %8147 = vst.msk [vmem:[%s11855_s20 + $0x20] sm:$0xff] %vm131_vm0, %v8125_v26 }
0x1362   :  { %v9283_v40 = vpop.f32.mrf.mxu0 }
0x1363   :  { %v8140_v12 = vadd.f32 %v9283_v40, %v8399_v59 }
0x1364   :  { %v8134_v62 = vpop.f32.mrf.mxu0 }
0x1365   :  { %8150 = vst.msk [vmem:[%s11855_s20 + $0x38] sm:$0xff] %vm131_vm0, %v8140_v12  ;;  %v8135_v15 = vadd.f32 %v8399_v59, %v8134_v62 }
0x1367   :  { %8149 = vst.msk [vmem:[%s11855_s20 + $0x30] sm:$0xff] %vm131_vm0, %v8135_v15 }
0x1368   :  { %8155 = vsyncpa [#allocation3], 1 }
0x1369   :  { %8156 = vsyncpa [#allocation5], 1 }
0x136a   :  { %8157 = vsyncpa [#allocation8], 1 }

</bundles_post_ra>
